<compile_context>
chip_gen: v5e
topology: v5e:2x2
jax: 0.10.0
libtpu: 0.0.40
codegen_flags: <defaults>
</compile_context>

<pallas_src>
import jax
import jax.numpy as jnp
from jax.experimental import pallas as pl
from jax.experimental.pallas import tpu as pltpu

# ----- model / problem sizes (small, consistent with the module defaults) -----
B = 8          # batch_size
T_ENC = 8      # encoder sequence length
T_PRED = 4     # pred_seq_len
ENC_IN = 6     # Encoder input_size
DEC_EMB = 5    # Decoder input_size (before +1 teacher channel)
DEC_IN = DEC_EMB + 1
H = 32         # hidden_size
L = 3          # num_layers


def deepar_kernel(enc_x_ref, dec_in_ref, noise_ref,
                  enc_wih0_ref, enc_whh0_ref, enc_wl12_ref, enc_b_ref,
                  dec_wih0_ref, dec_whh0_ref, dec_wl12_ref, dec_b_ref,
                  w_out_ref, b_out_ref,
                  out_ref):
    # Constant lane mask: lanes [2H, 3H) of the fused (B, 4H) gates vreg hold the
    # "g" gate (tanh); all others (i, f, o) use sigmoid.  Hoisted once.
    lane = jax.lax.broadcasted_iota(jnp.int32, (B, 4 * H), 1)
    g_mask = jnp.logical_and(lane >= 2 * H, lane < 3 * H)

    def cell(gates, c):
        # 2 EUP passes over the full (8,128) vreg instead of 4 per-gate passes.
        sig = jax.nn.sigmoid(gates)
        th = jnp.tanh(gates)
        act = jnp.where(g_mask, th, sig)
        i = act[:, 0:H]
        f = act[:, H:2 * H]
        g = act[:, 2 * H:3 * H]
        o = act[:, 3 * H:4 * H]
        c_new = f * c + i * g
        h_new = o * jnp.tanh(c_new)
        return h_new, c_new

    # initial LSTM state (zeros, as in nn.LSTM default)
    h = [jnp.zeros((B, H), jnp.float32) for _ in range(L)]
    c = [jnp.zeros((B, H), jnp.float32) for _ in range(L)]

    # ---------------- encoder: 3-layer LSTM over T_ENC steps ----------------
    # Hoisted weight loads / bias broadcasts (layers 1,2; layer-0 bias folded
    # into the batched input projection below).
    enc_whh0 = enc_whh0_ref[...]                       # (H, 4H)
    enc_w1 = enc_wl12_ref[0]                           # (2H, 4H)  [W_ih; W_hh]
    enc_w2 = enc_wl12_ref[1]                           # (2H, 4H)
    enc_b1 = jnp.broadcast_to(enc_b_ref[1:2, :], (B, 4 * H))
    enc_b2 = jnp.broadcast_to(enc_b_ref[2:3, :], (B, 4 * H))

    # Layer-0 input projection for ALL encoder steps as one (T_ENC*B, ENC_IN) matmul.
    enc_proj = (jnp.dot(enc_x_ref[...], enc_wih0_ref[...],
                        preferred_element_type=jnp.float32)
                + jnp.broadcast_to(enc_b_ref[0:1, :], (T_ENC * B, 4 * H)))

    for t in range(T_ENC):
        # layer 0: precomputed input projection + recurrent matmul only
        g0 = enc_proj[t * B:(t + 1) * B, :] + jnp.dot(
            h[0], enc_whh0, preferred_element_type=jnp.float32)
        h[0], c[0] = cell(g0, c[0])
        # layers 1..2: single fused [x, h] @ [W_ih; W_hh] matmul per cell
        g1 = jnp.dot(jnp.concatenate([h[0], h[1]], axis=-1), enc_w1,
                     preferred_element_type=jnp.float32) + enc_b1
        h[1], c[1] = cell(g1, c[1])
        g2 = jnp.dot(jnp.concatenate([h[1], h[2]], axis=-1), enc_w2,
                     preferred_element_type=jnp.float32) + enc_b2
        h[2], c[2] = cell(g2, c[2])

    # ------------- decoder: teacher-forced 3-layer LSTM over T_PRED steps -------------
    dec_whh0 = dec_whh0_ref[...]
    dec_w1 = dec_wl12_ref[0]
    dec_w2 = dec_wl12_ref[1]
    dec_b1 = jnp.broadcast_to(dec_b_ref[1:2, :], (B, 4 * H))
    dec_b2 = jnp.broadcast_to(dec_b_ref[2:3, :], (B, 4 * H))

    # Decoder inputs are fully known under teacher forcing -> one batched projection.
    dec_proj = (jnp.dot(dec_in_ref[...], dec_wih0_ref[...],
                        preferred_element_type=jnp.float32)
                + jnp.broadcast_to(dec_b_ref[0:1, :], (T_PRED * B, 4 * H)))

    ys = []
    for t in range(T_PRED):
        g0 = dec_proj[t * B:(t + 1) * B, :] + jnp.dot(
            h[0], dec_whh0, preferred_element_type=jnp.float32)
        h[0], c[0] = cell(g0, c[0])
        g1 = jnp.dot(jnp.concatenate([h[0], h[1]], axis=-1), dec_w1,
                     preferred_element_type=jnp.float32) + dec_b1
        h[1], c[1] = cell(g1, c[1])
        g2 = jnp.dot(jnp.concatenate([h[1], h[2]], axis=-1), dec_w2,
                     preferred_element_type=jnp.float32) + dec_b2
        h[2], c[2] = cell(g2, c[2])
        ys.append(h[2])

    # ------------- Gaussian head: vectorized epilogue (off the recurrence) -------------
    y_all = jnp.concatenate(ys, axis=0)                        # (T_PRED*B, H) time-major
    head = (jnp.dot(y_all, w_out_ref[...], preferred_element_type=jnp.float32)
            + b_out_ref[...])                                  # (T_PRED*B, 2)
    mu = head[:, 0:1]
    sigma = jax.nn.softplus(head[:, 1:2])
    out_ref[...] = mu + sigma * noise_ref[...]                 # (T_PRED*B, 1)


def deepar_forward(enc_x, dec_emb, dec_teacher, noise, params):
    # Layout plumbing outside the kernel: pre-concat decoder inputs and flatten
    # both sequences time-major so per-step slices are aligned 8-sublane blocks.
    enc_x_flat = jnp.transpose(enc_x, (1, 0, 2)).reshape(T_ENC * B, ENC_IN)
    dec_in = jnp.concatenate([dec_emb, dec_teacher], axis=-1)          # (B,T_PRED,DEC_IN)
    dec_in_flat = jnp.transpose(dec_in, (1, 0, 2)).reshape(T_PRED * B, DEC_IN)
    noise_flat = noise.T.reshape(T_PRED * B, 1)                        # time-major

    args = (enc_x_flat, dec_in_flat, noise_flat,
            params["enc_wih0"], params["enc_whh0"], params["enc_wl12"], params["enc_b"],
            params["dec_wih0"], params["dec_whh0"], params["dec_wl12"], params["dec_b"],
            params["w_out"], params["b_out"])
    vmem = pl.BlockSpec(memory_space=pltpu.MemorySpace.VMEM)
    out_flat = pl.pallas_call(
        deepar_kernel,
        out_shape=jax.ShapeDtypeStruct((T_PRED * B, 1), jnp.float32),
        in_specs=[vmem] * len(args),
        out_specs=vmem,
    )(*args)
    # time-major (T_PRED*B, 1) -> (B, T_PRED)
    return out_flat.reshape(T_PRED, B).T


def init_params(key):
    """Deterministic PyTorch-style uniform(-1/sqrt(H), 1/sqrt(H)) init.

    Weight layout is (in, 4H) — transposed relative to PyTorch's (4H, in); gate
    block order is i, f, g, o.  Layers 1..2 store [W_ih; W_hh] stacked as (2H, 4H)
    so each cell issues a single fused MXU matmul.
    """
    k = 1.0 / (H ** 0.5)
    keys = jax.random.split(key, 16)

    def u(kk, shape):
        return jax.random.uniform(kk, shape, jnp.float32, minval=-k, maxval=k)

    enc_wih12 = u(keys[1], (L - 1, H, 4 * H))
    enc_whh = u(keys[2], (L, H, 4 * H))
    dec_wih12 = u(keys[6], (L - 1, H, 4 * H))
    dec_whh = u(keys[7], (L, H, 4 * H))

    params = {
        # encoder LSTM (input_size=6)
        "enc_wih0": u(keys[0], (ENC_IN, 4 * H)),
        "enc_whh0": enc_whh[0],                                        # (H, 4H)
        "enc_wl12": jnp.concatenate([enc_wih12, enc_whh[1:]], axis=1),  # (2, 2H, 4H)
        "enc_b": u(keys[3], (L, 4 * H)) + u(keys[4], (L, 4 * H)),      # b_ih + b_hh
        # decoder LSTM (input_size=5+1)
        "dec_wih0": u(keys[5], (DEC_IN, 4 * H)),
        "dec_whh0": dec_whh[0],
        "dec_wl12": jnp.concatenate([dec_wih12, dec_whh[1:]], axis=1),
        "dec_b": u(keys[8], (L, 4 * H)) + u(keys[9], (L, 4 * H)),
        # GenerateFromNormal: two Linear(H, 1) packed as one (H, 2) matmul
        "w_out": u(keys[10], (H, 2)),
        "b_out": u(keys[11], (1, 2)),
    }
    return params


if __name__ == "__main__":
    key = jax.random.PRNGKey(0)
    k_in, k_emb, k_teach, k_noise, k_par = jax.random.split(key, 5)

    enc_x = jax.random.normal(k_in, (B, T_ENC, ENC_IN), jnp.float32)
    dec_emb = jax.random.normal(k_emb, (B, T_PRED, DEC_EMB), jnp.float32)
    dec_teacher = jax.random.normal(k_teach, (B, T_PRED, 1), jnp.float32)
    noise = jax.random.normal(k_noise, (B, T_PRED), jnp.float32)  # torch.normal stand-in

    params = init_params(k_par)

    outputs = deepar_forward(enc_x, dec_emb, dec_teacher, noise, params)
    outputs = jax.block_until_ready(outputs)
    assert outputs.shape == (B, T_PRED) and outputs.dtype == jnp.float32
    assert bool(jnp.all(jnp.isfinite(outputs)))
    print("KERNEL_OK")
</pallas_src>

<mosaic_0001>
module attributes {stable_mosaic.version = 11 : i64} {
  func.func @deepar_kernel(%arg0: memref<64x6xf32, #tpu.memory_space<vmem>>, %arg1: memref<32x6xf32, #tpu.memory_space<vmem>>, %arg2: memref<32x1xf32, #tpu.memory_space<vmem>>, %arg3: memref<6x128xf32, #tpu.memory_space<vmem>>, %arg4: memref<32x128xf32, #tpu.memory_space<vmem>>, %arg5: memref<2x64x128xf32, #tpu.memory_space<vmem>>, %arg6: memref<3x128xf32, #tpu.memory_space<vmem>>, %arg7: memref<6x128xf32, #tpu.memory_space<vmem>>, %arg8: memref<32x128xf32, #tpu.memory_space<vmem>>, %arg9: memref<2x64x128xf32, #tpu.memory_space<vmem>>, %arg10: memref<3x128xf32, #tpu.memory_space<vmem>>, %arg11: memref<32x2xf32, #tpu.memory_space<vmem>>, %arg12: memref<1x2xf32, #tpu.memory_space<vmem>>, %arg13: memref<32x1xf32, #tpu.memory_space<vmem>>) attributes {dimension_semantics = [], scalar_prefetch = 0 : i64, scratch_operands = 0 : i64, tpu.core_type = #tpu.core_type<tc>} {
    %0 = tpu.iota {dimensions = array<i32: 1>} : vector<8x128xi32>
    %c64_i32 = arith.constant 64 : i32
    %1 = vector.broadcast %c64_i32 : i32 to vector<8x128xi32>
    %2 = arith.cmpi sge, %0, %1 : vector<8x128xi32>
    %c96_i32 = arith.constant 96 : i32
    %3 = vector.broadcast %c96_i32 : i32 to vector<8x128xi32>
    %4 = arith.cmpi slt, %0, %3 : vector<8x128xi32>
    %5 = arith.andi %2, %4 : vector<8x128xi1>
    %cst = arith.constant 0.000000e+00 : f32
    %6 = vector.broadcast %cst : f32 to vector<8x32xf32>
    %cst_0 = arith.constant 0.000000e+00 : f32
    %7 = vector.broadcast %cst_0 : f32 to vector<8x32xf32>
    %cst_1 = arith.constant 0.000000e+00 : f32
    %8 = vector.broadcast %cst_1 : f32 to vector<8x32xf32>
    %cst_2 = arith.constant 0.000000e+00 : f32
    %9 = vector.broadcast %cst_2 : f32 to vector<8x32xf32>
    %cst_3 = arith.constant 0.000000e+00 : f32
    %10 = vector.broadcast %cst_3 : f32 to vector<8x32xf32>
    %cst_4 = arith.constant 0.000000e+00 : f32
    %11 = vector.broadcast %cst_4 : f32 to vector<8x32xf32>
    %c0 = arith.constant 0 : index
    %c0_5 = arith.constant 0 : index
    %12 = vector.load %arg4[%c0, %c0_5] : memref<32x128xf32, #tpu.memory_space<vmem>>, vector<32x128xf32>
    %c0_6 = arith.constant 0 : index
    %c0_7 = arith.constant 0 : index
    %c0_8 = arith.constant 0 : index
    %13 = vector.load %arg5[%c0_6, %c0_7, %c0_8] : memref<2x64x128xf32, #tpu.memory_space<vmem>>, vector<1x64x128xf32>
    %14 = vector.shape_cast %13 : vector<1x64x128xf32> to vector<64x128xf32>
    %c1 = arith.constant 1 : index
    %c0_9 = arith.constant 0 : index
    %c0_10 = arith.constant 0 : index
    %15 = vector.load %arg5[%c1, %c0_9, %c0_10] : memref<2x64x128xf32, #tpu.memory_space<vmem>>, vector<1x64x128xf32>
    %16 = vector.shape_cast %15 : vector<1x64x128xf32> to vector<64x128xf32>
    %c1_11 = arith.constant 1 : index
    %c0_12 = arith.constant 0 : index
    %17 = vector.load %arg6[%c1_11, %c0_12] : memref<3x128xf32, #tpu.memory_space<vmem>>, vector<1x128xf32>
    %18 = vector.shape_cast %17 : vector<1x128xf32> to vector<1x128xf32>
    %19 = vector.broadcast %18 : vector<1x128xf32> to vector<8x128xf32>
    %c2 = arith.constant 2 : index
    %c0_13 = arith.constant 0 : index
    %20 = vector.load %arg6[%c2, %c0_13] : memref<3x128xf32, #tpu.memory_space<vmem>>, vector<1x128xf32>
    %21 = vector.shape_cast %20 : vector<1x128xf32> to vector<1x128xf32>
    %22 = vector.broadcast %21 : vector<1x128xf32> to vector<8x128xf32>
    %c0_14 = arith.constant 0 : index
    %c0_15 = arith.constant 0 : index
    %23 = vector.load %arg0[%c0_14, %c0_15] : memref<64x6xf32, #tpu.memory_space<vmem>>, vector<64x6xf32>
    %c0_16 = arith.constant 0 : index
    %c0_17 = arith.constant 0 : index
    %24 = vector.load %arg3[%c0_16, %c0_17] : memref<6x128xf32, #tpu.memory_space<vmem>>, vector<6x128xf32>
    %cst_18 = arith.constant dense<0.000000e+00> : vector<64x128xf32>
    %25 = tpu.matmul %23, %24, %cst_18 {dimension_numbers = #tpu.dot_dimension_numbers<[1], [0], [0], [1], [0, 0, 1, 1], [], []>} : vector<64x6xf32>, vector<6x128xf32>, vector<64x128xf32> -> vector<64x128xf32>
    %c0_19 = arith.constant 0 : index
    %c0_20 = arith.constant 0 : index
    %26 = vector.load %arg6[%c0_19, %c0_20] : memref<3x128xf32, #tpu.memory_space<vmem>>, vector<1x128xf32>
    %27 = vector.shape_cast %26 : vector<1x128xf32> to vector<1x128xf32>
    %28 = vector.broadcast %27 : vector<1x128xf32> to vector<64x128xf32>
    %29 = arith.addf %25, %28 : vector<64x128xf32>
    %30 = vector.extract_strided_slice %29 {offsets = [0, 0], sizes = [8, 128], strides = [1, 1]} : vector<64x128xf32> to vector<8x128xf32>
    %cst_21 = arith.constant dense<0.000000e+00> : vector<8x128xf32>
    %31 = tpu.matmul %6, %12, %cst_21 {dimension_numbers = #tpu.dot_dimension_numbers<[1], [0], [0], [1], [0, 0, 1, 1], [], []>} : vector<8x32xf32>, vector<32x128xf32>, vector<8x128xf32> -> vector<8x128xf32>
    %32 = arith.addf %30, %31 : vector<8x128xf32>
    %33 = arith.negf %32 : vector<8x128xf32>
    %34 = math.exp %33 : vector<8x128xf32>
    %cst_22 = arith.constant 1.000000e+00 : f32
    %35 = vector.broadcast %cst_22 : f32 to vector<8x128xf32>
    %36 = arith.addf %35, %34 : vector<8x128xf32>
    %37 = arith.divf %35, %36 : vector<8x128xf32>
    %38 = math.tanh %32 : vector<8x128xf32>
    %39 = arith.select %5, %38, %37 : vector<8x128xi1>, vector<8x128xf32>
    %40 = vector.extract_strided_slice %39 {offsets = [0, 0], sizes = [8, 32], strides = [1, 1]} : vector<8x128xf32> to vector<8x32xf32>
    %41 = vector.extract_strided_slice %39 {offsets = [0, 32], sizes = [8, 32], strides = [1, 1]} : vector<8x128xf32> to vector<8x32xf32>
    %42 = vector.extract_strided_slice %39 {offsets = [0, 64], sizes = [8, 32], strides = [1, 1]} : vector<8x128xf32> to vector<8x32xf32>
    %43 = vector.extract_strided_slice %39 {offsets = [0, 96], sizes = [8, 32], strides = [1, 1]} : vector<8x128xf32> to vector<8x32xf32>
    %44 = arith.mulf %41, %9 : vector<8x32xf32>
    %45 = arith.mulf %40, %42 : vector<8x32xf32>
    %46 = arith.addf %44, %45 : vector<8x32xf32>
    %47 = math.tanh %46 : vector<8x32xf32>
    %48 = arith.mulf %43, %47 : vector<8x32xf32>
    %49 = tpu.concatenate %48, %7 in 1 : vector<8x32xf32>, vector<8x32xf32> -> vector<8x64xf32>
    %cst_23 = arith.constant dense<0.000000e+00> : vector<8x128xf32>
    %50 = tpu.matmul %49, %14, %cst_23 {dimension_numbers = #tpu.dot_dimension_numbers<[1], [0], [0], [1], [0, 0, 1, 1], [], []>} : vector<8x64xf32>, vector<64x128xf32>, vector<8x128xf32> -> vector<8x128xf32>
    %51 = arith.addf %50, %19 : vector<8x128xf32>
    %52 = arith.negf %51 : vector<8x128xf32>
    %53 = math.exp %52 : vector<8x128xf32>
    %cst_24 = arith.constant 1.000000e+00 : f32
    %54 = vector.broadcast %cst_24 : f32 to vector<8x128xf32>
    %55 = arith.addf %54, %53 : vector<8x128xf32>
    %56 = arith.divf %54, %55 : vector<8x128xf32>
    %57 = math.tanh %51 : vector<8x128xf32>
    %58 = arith.select %5, %57, %56 : vector<8x128xi1>, vector<8x128xf32>
    %59 = vector.extract_strided_slice %58 {offsets = [0, 0], sizes = [8, 32], strides = [1, 1]} : vector<8x128xf32> to vector<8x32xf32>
    %60 = vector.extract_strided_slice %58 {offsets = [0, 32], sizes = [8, 32], strides = [1, 1]} : vector<8x128xf32> to vector<8x32xf32>
    %61 = vector.extract_strided_slice %58 {offsets = [0, 64], sizes = [8, 32], strides = [1, 1]} : vector<8x128xf32> to vector<8x32xf32>
    %62 = vector.extract_strided_slice %58 {offsets = [0, 96], sizes = [8, 32], strides = [1, 1]} : vector<8x128xf32> to vector<8x32xf32>
    %63 = arith.mulf %60, %10 : vector<8x32xf32>
    %64 = arith.mulf %59, %61 : vector<8x32xf32>
    %65 = arith.addf %63, %64 : vector<8x32xf32>
    %66 = math.tanh %65 : vector<8x32xf32>
    %67 = arith.mulf %62, %66 : vector<8x32xf32>
    %68 = tpu.concatenate %67, %8 in 1 : vector<8x32xf32>, vector<8x32xf32> -> vector<8x64xf32>
    %cst_25 = arith.constant dense<0.000000e+00> : vector<8x128xf32>
    %69 = tpu.matmul %68, %16, %cst_25 {dimension_numbers = #tpu.dot_dimension_numbers<[1], [0], [0], [1], [0, 0, 1, 1], [], []>} : vector<8x64xf32>, vector<64x128xf32>, vector<8x128xf32> -> vector<8x128xf32>
    %70 = arith.addf %69, %22 : vector<8x128xf32>
    %71 = arith.negf %70 : vector<8x128xf32>
    %72 = math.exp %71 : vector<8x128xf32>
    %cst_26 = arith.constant 1.000000e+00 : f32
    %73 = vector.broadcast %cst_26 : f32 to vector<8x128xf32>
    %74 = arith.addf %73, %72 : vector<8x128xf32>
    %75 = arith.divf %73, %74 : vector<8x128xf32>
    %76 = math.tanh %70 : vector<8x128xf32>
    %77 = arith.select %5, %76, %75 : vector<8x128xi1>, vector<8x128xf32>
    %78 = vector.extract_strided_slice %77 {offsets = [0, 0], sizes = [8, 32], strides = [1, 1]} : vector<8x128xf32> to vector<8x32xf32>
    %79 = vector.extract_strided_slice %77 {offsets = [0, 32], sizes = [8, 32], strides = [1, 1]} : vector<8x128xf32> to vector<8x32xf32>
    %80 = vector.extract_strided_slice %77 {offsets = [0, 64], sizes = [8, 32], strides = [1, 1]} : vector<8x128xf32> to vector<8x32xf32>
    %81 = vector.extract_strided_slice %77 {offsets = [0, 96], sizes = [8, 32], strides = [1, 1]} : vector<8x128xf32> to vector<8x32xf32>
    %82 = arith.mulf %79, %11 : vector<8x32xf32>
    %83 = arith.mulf %78, %80 : vector<8x32xf32>
    %84 = arith.addf %82, %83 : vector<8x32xf32>
    %85 = math.tanh %84 : vector<8x32xf32>
    %86 = arith.mulf %81, %85 : vector<8x32xf32>
    %87 = vector.extract_strided_slice %29 {offsets = [8, 0], sizes = [8, 128], strides = [1, 1]} : vector<64x128xf32> to vector<8x128xf32>
    %cst_27 = arith.constant dense<0.000000e+00> : vector<8x128xf32>
    %88 = tpu.matmul %48, %12, %cst_27 {dimension_numbers = #tpu.dot_dimension_numbers<[1], [0], [0], [1], [0, 0, 1, 1], [], []>} : vector<8x32xf32>, vector<32x128xf32>, vector<8x128xf32> -> vector<8x128xf32>
    %89 = arith.addf %87, %88 : vector<8x128xf32>
    %90 = arith.negf %89 : vector<8x128xf32>
    %91 = math.exp %90 : vector<8x128xf32>
    %cst_28 = arith.constant 1.000000e+00 : f32
    %92 = vector.broadcast %cst_28 : f32 to vector<8x128xf32>
    %93 = arith.addf %92, %91 : vector<8x128xf32>
    %94 = arith.divf %92, %93 : vector<8x128xf32>
    %95 = math.tanh %89 : vector<8x128xf32>
    %96 = arith.select %5, %95, %94 : vector<8x128xi1>, vector<8x128xf32>
    %97 = vector.extract_strided_slice %96 {offsets = [0, 0], sizes = [8, 32], strides = [1, 1]} : vector<8x128xf32> to vector<8x32xf32>
    %98 = vector.extract_strided_slice %96 {offsets = [0, 32], sizes = [8, 32], strides = [1, 1]} : vector<8x128xf32> to vector<8x32xf32>
    %99 = vector.extract_strided_slice %96 {offsets = [0, 64], sizes = [8, 32], strides = [1, 1]} : vector<8x128xf32> to vector<8x32xf32>
    %100 = vector.extract_strided_slice %96 {offsets = [0, 96], sizes = [8, 32], strides = [1, 1]} : vector<8x128xf32> to vector<8x32xf32>
    %101 = arith.mulf %98, %46 : vector<8x32xf32>
    %102 = arith.mulf %97, %99 : vector<8x32xf32>
    %103 = arith.addf %101, %102 : vector<8x32xf32>
    %104 = math.tanh %103 : vector<8x32xf32>
    %105 = arith.mulf %100, %104 : vector<8x32xf32>
    %106 = tpu.concatenate %105, %67 in 1 : vector<8x32xf32>, vector<8x32xf32> -> vector<8x64xf32>
    %cst_29 = arith.constant dense<0.000000e+00> : vector<8x128xf32>
    %107 = tpu.matmul %106, %14, %cst_29 {dimension_numbers = #tpu.dot_dimension_numbers<[1], [0], [0], [1], [0, 0, 1, 1], [], []>} : vector<8x64xf32>, vector<64x128xf32>, vector<8x128xf32> -> vector<8x128xf32>
    %108 = arith.addf %107, %19 : vector<8x128xf32>
    %109 = arith.negf %108 : vector<8x128xf32>
    %110 = math.exp %109 : vector<8x128xf32>
    %cst_30 = arith.constant 1.000000e+00 : f32
    %111 = vector.broadcast %cst_30 : f32 to vector<8x128xf32>
    %112 = arith.addf %111, %110 : vector<8x128xf32>
    %113 = arith.divf %111, %112 : vector<8x128xf32>
    %114 = math.tanh %108 : vector<8x128xf32>
    %115 = arith.select %5, %114, %113 : vector<8x128xi1>, vector<8x128xf32>
    %116 = vector.extract_strided_slice %115 {offsets = [0, 0], sizes = [8, 32], strides = [1, 1]} : vector<8x128xf32> to vector<8x32xf32>
    %117 = vector.extract_strided_slice %115 {offsets = [0, 32], sizes = [8, 32], strides = [1, 1]} : vector<8x128xf32> to vector<8x32xf32>
    %118 = vector.extract_strided_slice %115 {offsets = [0, 64], sizes = [8, 32], strides = [1, 1]} : vector<8x128xf32> to vector<8x32xf32>
    %119 = vector.extract_strided_slice %115 {offsets = [0, 96], sizes = [8, 32], strides = [1, 1]} : vector<8x128xf32> to vector<8x32xf32>
    %120 = arith.mulf %117, %65 : vector<8x32xf32>
    %121 = arith.mulf %116, %118 : vector<8x32xf32>
    %122 = arith.addf %120, %121 : vector<8x32xf32>
    %123 = math.tanh %122 : vector<8x32xf32>
    %124 = arith.mulf %119, %123 : vector<8x32xf32>
    %125 = tpu.concatenate %124, %86 in 1 : vector<8x32xf32>, vector<8x32xf32> -> vector<8x64xf32>
    %cst_31 = arith.constant dense<0.000000e+00> : vector<8x128xf32>
    %126 = tpu.matmul %125, %16, %cst_31 {dimension_numbers = #tpu.dot_dimension_numbers<[1], [0], [0], [1], [0, 0, 1, 1], [], []>} : vector<8x64xf32>, vector<64x128xf32>, vector<8x128xf32> -> vector<8x128xf32>
    %127 = arith.addf %126, %22 : vector<8x128xf32>
    %128 = arith.negf %127 : vector<8x128xf32>
    %129 = math.exp %128 : vector<8x128xf32>
    %cst_32 = arith.constant 1.000000e+00 : f32
    %130 = vector.broadcast %cst_32 : f32 to vector<8x128xf32>
    %131 = arith.addf %130, %129 : vector<8x128xf32>
    %132 = arith.divf %130, %131 : vector<8x128xf32>
    %133 = math.tanh %127 : vector<8x128xf32>
    %134 = arith.select %5, %133, %132 : vector<8x128xi1>, vector<8x128xf32>
    %135 = vector.extract_strided_slice %134 {offsets = [0, 0], sizes = [8, 32], strides = [1, 1]} : vector<8x128xf32> to vector<8x32xf32>
    %136 = vector.extract_strided_slice %134 {offsets = [0, 32], sizes = [8, 32], strides = [1, 1]} : vector<8x128xf32> to vector<8x32xf32>
    %137 = vector.extract_strided_slice %134 {offsets = [0, 64], sizes = [8, 32], strides = [1, 1]} : vector<8x128xf32> to vector<8x32xf32>
    %138 = vector.extract_strided_slice %134 {offsets = [0, 96], sizes = [8, 32], strides = [1, 1]} : vector<8x128xf32> to vector<8x32xf32>
    %139 = arith.mulf %136, %84 : vector<8x32xf32>
    %140 = arith.mulf %135, %137 : vector<8x32xf32>
    %141 = arith.addf %139, %140 : vector<8x32xf32>
    %142 = math.tanh %141 : vector<8x32xf32>
    %143 = arith.mulf %138, %142 : vector<8x32xf32>
    %144 = vector.extract_strided_slice %29 {offsets = [16, 0], sizes = [8, 128], strides = [1, 1]} : vector<64x128xf32> to vector<8x128xf32>
    %cst_33 = arith.constant dense<0.000000e+00> : vector<8x128xf32>
    %145 = tpu.matmul %105, %12, %cst_33 {dimension_numbers = #tpu.dot_dimension_numbers<[1], [0], [0], [1], [0, 0, 1, 1], [], []>} : vector<8x32xf32>, vector<32x128xf32>, vector<8x128xf32> -> vector<8x128xf32>
    %146 = arith.addf %144, %145 : vector<8x128xf32>
    %147 = arith.negf %146 : vector<8x128xf32>
    %148 = math.exp %147 : vector<8x128xf32>
    %cst_34 = arith.constant 1.000000e+00 : f32
    %149 = vector.broadcast %cst_34 : f32 to vector<8x128xf32>
    %150 = arith.addf %149, %148 : vector<8x128xf32>
    %151 = arith.divf %149, %150 : vector<8x128xf32>
    %152 = math.tanh %146 : vector<8x128xf32>
    %153 = arith.select %5, %152, %151 : vector<8x128xi1>, vector<8x128xf32>
    %154 = vector.extract_strided_slice %153 {offsets = [0, 0], sizes = [8, 32], strides = [1, 1]} : vector<8x128xf32> to vector<8x32xf32>
    %155 = vector.extract_strided_slice %153 {offsets = [0, 32], sizes = [8, 32], strides = [1, 1]} : vector<8x128xf32> to vector<8x32xf32>
    %156 = vector.extract_strided_slice %153 {offsets = [0, 64], sizes = [8, 32], strides = [1, 1]} : vector<8x128xf32> to vector<8x32xf32>
    %157 = vector.extract_strided_slice %153 {offsets = [0, 96], sizes = [8, 32], strides = [1, 1]} : vector<8x128xf32> to vector<8x32xf32>
    %158 = arith.mulf %155, %103 : vector<8x32xf32>
    %159 = arith.mulf %154, %156 : vector<8x32xf32>
    %160 = arith.addf %158, %159 : vector<8x32xf32>
    %161 = math.tanh %160 : vector<8x32xf32>
    %162 = arith.mulf %157, %161 : vector<8x32xf32>
    %163 = tpu.concatenate %162, %124 in 1 : vector<8x32xf32>, vector<8x32xf32> -> vector<8x64xf32>
    %cst_35 = arith.constant dense<0.000000e+00> : vector<8x128xf32>
    %164 = tpu.matmul %163, %14, %cst_35 {dimension_numbers = #tpu.dot_dimension_numbers<[1], [0], [0], [1], [0, 0, 1, 1], [], []>} : vector<8x64xf32>, vector<64x128xf32>, vector<8x128xf32> -> vector<8x128xf32>
    %165 = arith.addf %164, %19 : vector<8x128xf32>
    %166 = arith.negf %165 : vector<8x128xf32>
    %167 = math.exp %166 : vector<8x128xf32>
    %cst_36 = arith.constant 1.000000e+00 : f32
    %168 = vector.broadcast %cst_36 : f32 to vector<8x128xf32>
    %169 = arith.addf %168, %167 : vector<8x128xf32>
    %170 = arith.divf %168, %169 : vector<8x128xf32>
    %171 = math.tanh %165 : vector<8x128xf32>
    %172 = arith.select %5, %171, %170 : vector<8x128xi1>, vector<8x128xf32>
    %173 = vector.extract_strided_slice %172 {offsets = [0, 0], sizes = [8, 32], strides = [1, 1]} : vector<8x128xf32> to vector<8x32xf32>
    %174 = vector.extract_strided_slice %172 {offsets = [0, 32], sizes = [8, 32], strides = [1, 1]} : vector<8x128xf32> to vector<8x32xf32>
    %175 = vector.extract_strided_slice %172 {offsets = [0, 64], sizes = [8, 32], strides = [1, 1]} : vector<8x128xf32> to vector<8x32xf32>
    %176 = vector.extract_strided_slice %172 {offsets = [0, 96], sizes = [8, 32], strides = [1, 1]} : vector<8x128xf32> to vector<8x32xf32>
    %177 = arith.mulf %174, %122 : vector<8x32xf32>
    %178 = arith.mulf %173, %175 : vector<8x32xf32>
    %179 = arith.addf %177, %178 : vector<8x32xf32>
    %180 = math.tanh %179 : vector<8x32xf32>
    %181 = arith.mulf %176, %180 : vector<8x32xf32>
    %182 = tpu.concatenate %181, %143 in 1 : vector<8x32xf32>, vector<8x32xf32> -> vector<8x64xf32>
    %cst_37 = arith.constant dense<0.000000e+00> : vector<8x128xf32>
    %183 = tpu.matmul %182, %16, %cst_37 {dimension_numbers = #tpu.dot_dimension_numbers<[1], [0], [0], [1], [0, 0, 1, 1], [], []>} : vector<8x64xf32>, vector<64x128xf32>, vector<8x128xf32> -> vector<8x128xf32>
    %184 = arith.addf %183, %22 : vector<8x128xf32>
    %185 = arith.negf %184 : vector<8x128xf32>
    %186 = math.exp %185 : vector<8x128xf32>
    %cst_38 = arith.constant 1.000000e+00 : f32
    %187 = vector.broadcast %cst_38 : f32 to vector<8x128xf32>
    %188 = arith.addf %187, %186 : vector<8x128xf32>
    %189 = arith.divf %187, %188 : vector<8x128xf32>
    %190 = math.tanh %184 : vector<8x128xf32>
    %191 = arith.select %5, %190, %189 : vector<8x128xi1>, vector<8x128xf32>
    %192 = vector.extract_strided_slice %191 {offsets = [0, 0], sizes = [8, 32], strides = [1, 1]} : vector<8x128xf32> to vector<8x32xf32>
    %193 = vector.extract_strided_slice %191 {offsets = [0, 32], sizes = [8, 32], strides = [1, 1]} : vector<8x128xf32> to vector<8x32xf32>
    %194 = vector.extract_strided_slice %191 {offsets = [0, 64], sizes = [8, 32], strides = [1, 1]} : vector<8x128xf32> to vector<8x32xf32>
    %195 = vector.extract_strided_slice %191 {offsets = [0, 96], sizes = [8, 32], strides = [1, 1]} : vector<8x128xf32> to vector<8x32xf32>
    %196 = arith.mulf %193, %141 : vector<8x32xf32>
    %197 = arith.mulf %192, %194 : vector<8x32xf32>
    %198 = arith.addf %196, %197 : vector<8x32xf32>
    %199 = math.tanh %198 : vector<8x32xf32>
    %200 = arith.mulf %195, %199 : vector<8x32xf32>
    %201 = vector.extract_strided_slice %29 {offsets = [24, 0], sizes = [8, 128], strides = [1, 1]} : vector<64x128xf32> to vector<8x128xf32>
    %cst_39 = arith.constant dense<0.000000e+00> : vector<8x128xf32>
    %202 = tpu.matmul %162, %12, %cst_39 {dimension_numbers = #tpu.dot_dimension_numbers<[1], [0], [0], [1], [0, 0, 1, 1], [], []>} : vector<8x32xf32>, vector<32x128xf32>, vector<8x128xf32> -> vector<8x128xf32>
    %203 = arith.addf %201, %202 : vector<8x128xf32>
    %204 = arith.negf %203 : vector<8x128xf32>
    %205 = math.exp %204 : vector<8x128xf32>
    %cst_40 = arith.constant 1.000000e+00 : f32
    %206 = vector.broadcast %cst_40 : f32 to vector<8x128xf32>
    %207 = arith.addf %206, %205 : vector<8x128xf32>
    %208 = arith.divf %206, %207 : vector<8x128xf32>
    %209 = math.tanh %203 : vector<8x128xf32>
    %210 = arith.select %5, %209, %208 : vector<8x128xi1>, vector<8x128xf32>
    %211 = vector.extract_strided_slice %210 {offsets = [0, 0], sizes = [8, 32], strides = [1, 1]} : vector<8x128xf32> to vector<8x32xf32>
    %212 = vector.extract_strided_slice %210 {offsets = [0, 32], sizes = [8, 32], strides = [1, 1]} : vector<8x128xf32> to vector<8x32xf32>
    %213 = vector.extract_strided_slice %210 {offsets = [0, 64], sizes = [8, 32], strides = [1, 1]} : vector<8x128xf32> to vector<8x32xf32>
    %214 = vector.extract_strided_slice %210 {offsets = [0, 96], sizes = [8, 32], strides = [1, 1]} : vector<8x128xf32> to vector<8x32xf32>
    %215 = arith.mulf %212, %160 : vector<8x32xf32>
    %216 = arith.mulf %211, %213 : vector<8x32xf32>
    %217 = arith.addf %215, %216 : vector<8x32xf32>
    %218 = math.tanh %217 : vector<8x32xf32>
    %219 = arith.mulf %214, %218 : vector<8x32xf32>
    %220 = tpu.concatenate %219, %181 in 1 : vector<8x32xf32>, vector<8x32xf32> -> vector<8x64xf32>
    %cst_41 = arith.constant dense<0.000000e+00> : vector<8x128xf32>
    %221 = tpu.matmul %220, %14, %cst_41 {dimension_numbers = #tpu.dot_dimension_numbers<[1], [0], [0], [1], [0, 0, 1, 1], [], []>} : vector<8x64xf32>, vector<64x128xf32>, vector<8x128xf32> -> vector<8x128xf32>
    %222 = arith.addf %221, %19 : vector<8x128xf32>
    %223 = arith.negf %222 : vector<8x128xf32>
    %224 = math.exp %223 : vector<8x128xf32>
    %cst_42 = arith.constant 1.000000e+00 : f32
    %225 = vector.broadcast %cst_42 : f32 to vector<8x128xf32>
    %226 = arith.addf %225, %224 : vector<8x128xf32>
    %227 = arith.divf %225, %226 : vector<8x128xf32>
    %228 = math.tanh %222 : vector<8x128xf32>
    %229 = arith.select %5, %228, %227 : vector<8x128xi1>, vector<8x128xf32>
    %230 = vector.extract_strided_slice %229 {offsets = [0, 0], sizes = [8, 32], strides = [1, 1]} : vector<8x128xf32> to vector<8x32xf32>
    %231 = vector.extract_strided_slice %229 {offsets = [0, 32], sizes = [8, 32], strides = [1, 1]} : vector<8x128xf32> to vector<8x32xf32>
    %232 = vector.extract_strided_slice %229 {offsets = [0, 64], sizes = [8, 32], strides = [1, 1]} : vector<8x128xf32> to vector<8x32xf32>
    %233 = vector.extract_strided_slice %229 {offsets = [0, 96], sizes = [8, 32], strides = [1, 1]} : vector<8x128xf32> to vector<8x32xf32>
    %234 = arith.mulf %231, %179 : vector<8x32xf32>
    %235 = arith.mulf %230, %232 : vector<8x32xf32>
    %236 = arith.addf %234, %235 : vector<8x32xf32>
    %237 = math.tanh %236 : vector<8x32xf32>
    %238 = arith.mulf %233, %237 : vector<8x32xf32>
    %239 = tpu.concatenate %238, %200 in 1 : vector<8x32xf32>, vector<8x32xf32> -> vector<8x64xf32>
    %cst_43 = arith.constant dense<0.000000e+00> : vector<8x128xf32>
    %240 = tpu.matmul %239, %16, %cst_43 {dimension_numbers = #tpu.dot_dimension_numbers<[1], [0], [0], [1], [0, 0, 1, 1], [], []>} : vector<8x64xf32>, vector<64x128xf32>, vector<8x128xf32> -> vector<8x128xf32>
    %241 = arith.addf %240, %22 : vector<8x128xf32>
    %242 = arith.negf %241 : vector<8x128xf32>
    %243 = math.exp %242 : vector<8x128xf32>
    %cst_44 = arith.constant 1.000000e+00 : f32
    %244 = vector.broadcast %cst_44 : f32 to vector<8x128xf32>
    %245 = arith.addf %244, %243 : vector<8x128xf32>
    %246 = arith.divf %244, %245 : vector<8x128xf32>
    %247 = math.tanh %241 : vector<8x128xf32>
    %248 = arith.select %5, %247, %246 : vector<8x128xi1>, vector<8x128xf32>
    %249 = vector.extract_strided_slice %248 {offsets = [0, 0], sizes = [8, 32], strides = [1, 1]} : vector<8x128xf32> to vector<8x32xf32>
    %250 = vector.extract_strided_slice %248 {offsets = [0, 32], sizes = [8, 32], strides = [1, 1]} : vector<8x128xf32> to vector<8x32xf32>
    %251 = vector.extract_strided_slice %248 {offsets = [0, 64], sizes = [8, 32], strides = [1, 1]} : vector<8x128xf32> to vector<8x32xf32>
    %252 = vector.extract_strided_slice %248 {offsets = [0, 96], sizes = [8, 32], strides = [1, 1]} : vector<8x128xf32> to vector<8x32xf32>
    %253 = arith.mulf %250, %198 : vector<8x32xf32>
    %254 = arith.mulf %249, %251 : vector<8x32xf32>
    %255 = arith.addf %253, %254 : vector<8x32xf32>
    %256 = math.tanh %255 : vector<8x32xf32>
    %257 = arith.mulf %252, %256 : vector<8x32xf32>
    %258 = vector.extract_strided_slice %29 {offsets = [32, 0], sizes = [8, 128], strides = [1, 1]} : vector<64x128xf32> to vector<8x128xf32>
    %cst_45 = arith.constant dense<0.000000e+00> : vector<8x128xf32>
    %259 = tpu.matmul %219, %12, %cst_45 {dimension_numbers = #tpu.dot_dimension_numbers<[1], [0], [0], [1], [0, 0, 1, 1], [], []>} : vector<8x32xf32>, vector<32x128xf32>, vector<8x128xf32> -> vector<8x128xf32>
    %260 = arith.addf %258, %259 : vector<8x128xf32>
    %261 = arith.negf %260 : vector<8x128xf32>
    %262 = math.exp %261 : vector<8x128xf32>
    %cst_46 = arith.constant 1.000000e+00 : f32
    %263 = vector.broadcast %cst_46 : f32 to vector<8x128xf32>
    %264 = arith.addf %263, %262 : vector<8x128xf32>
    %265 = arith.divf %263, %264 : vector<8x128xf32>
    %266 = math.tanh %260 : vector<8x128xf32>
    %267 = arith.select %5, %266, %265 : vector<8x128xi1>, vector<8x128xf32>
    %268 = vector.extract_strided_slice %267 {offsets = [0, 0], sizes = [8, 32], strides = [1, 1]} : vector<8x128xf32> to vector<8x32xf32>
    %269 = vector.extract_strided_slice %267 {offsets = [0, 32], sizes = [8, 32], strides = [1, 1]} : vector<8x128xf32> to vector<8x32xf32>
    %270 = vector.extract_strided_slice %267 {offsets = [0, 64], sizes = [8, 32], strides = [1, 1]} : vector<8x128xf32> to vector<8x32xf32>
    %271 = vector.extract_strided_slice %267 {offsets = [0, 96], sizes = [8, 32], strides = [1, 1]} : vector<8x128xf32> to vector<8x32xf32>
    %272 = arith.mulf %269, %217 : vector<8x32xf32>
    %273 = arith.mulf %268, %270 : vector<8x32xf32>
    %274 = arith.addf %272, %273 : vector<8x32xf32>
    %275 = math.tanh %274 : vector<8x32xf32>
    %276 = arith.mulf %271, %275 : vector<8x32xf32>
    %277 = tpu.concatenate %276, %238 in 1 : vector<8x32xf32>, vector<8x32xf32> -> vector<8x64xf32>
    %cst_47 = arith.constant dense<0.000000e+00> : vector<8x128xf32>
    %278 = tpu.matmul %277, %14, %cst_47 {dimension_numbers = #tpu.dot_dimension_numbers<[1], [0], [0], [1], [0, 0, 1, 1], [], []>} : vector<8x64xf32>, vector<64x128xf32>, vector<8x128xf32> -> vector<8x128xf32>
    %279 = arith.addf %278, %19 : vector<8x128xf32>
    %280 = arith.negf %279 : vector<8x128xf32>
    %281 = math.exp %280 : vector<8x128xf32>
    %cst_48 = arith.constant 1.000000e+00 : f32
    %282 = vector.broadcast %cst_48 : f32 to vector<8x128xf32>
    %283 = arith.addf %282, %281 : vector<8x128xf32>
    %284 = arith.divf %282, %283 : vector<8x128xf32>
    %285 = math.tanh %279 : vector<8x128xf32>
    %286 = arith.select %5, %285, %284 : vector<8x128xi1>, vector<8x128xf32>
    %287 = vector.extract_strided_slice %286 {offsets = [0, 0], sizes = [8, 32], strides = [1, 1]} : vector<8x128xf32> to vector<8x32xf32>
    %288 = vector.extract_strided_slice %286 {offsets = [0, 32], sizes = [8, 32], strides = [1, 1]} : vector<8x128xf32> to vector<8x32xf32>
    %289 = vector.extract_strided_slice %286 {offsets = [0, 64], sizes = [8, 32], strides = [1, 1]} : vector<8x128xf32> to vector<8x32xf32>
    %290 = vector.extract_strided_slice %286 {offsets = [0, 96], sizes = [8, 32], strides = [1, 1]} : vector<8x128xf32> to vector<8x32xf32>
    %291 = arith.mulf %288, %236 : vector<8x32xf32>
    %292 = arith.mulf %287, %289 : vector<8x32xf32>
    %293 = arith.addf %291, %292 : vector<8x32xf32>
    %294 = math.tanh %293 : vector<8x32xf32>
    %295 = arith.mulf %290, %294 : vector<8x32xf32>
    %296 = tpu.concatenate %295, %257 in 1 : vector<8x32xf32>, vector<8x32xf32> -> vector<8x64xf32>
    %cst_49 = arith.constant dense<0.000000e+00> : vector<8x128xf32>
    %297 = tpu.matmul %296, %16, %cst_49 {dimension_numbers = #tpu.dot_dimension_numbers<[1], [0], [0], [1], [0, 0, 1, 1], [], []>} : vector<8x64xf32>, vector<64x128xf32>, vector<8x128xf32> -> vector<8x128xf32>
    %298 = arith.addf %297, %22 : vector<8x128xf32>
    %299 = arith.negf %298 : vector<8x128xf32>
    %300 = math.exp %299 : vector<8x128xf32>
    %cst_50 = arith.constant 1.000000e+00 : f32
    %301 = vector.broadcast %cst_50 : f32 to vector<8x128xf32>
    %302 = arith.addf %301, %300 : vector<8x128xf32>
    %303 = arith.divf %301, %302 : vector<8x128xf32>
    %304 = math.tanh %298 : vector<8x128xf32>
    %305 = arith.select %5, %304, %303 : vector<8x128xi1>, vector<8x128xf32>
    %306 = vector.extract_strided_slice %305 {offsets = [0, 0], sizes = [8, 32], strides = [1, 1]} : vector<8x128xf32> to vector<8x32xf32>
    %307 = vector.extract_strided_slice %305 {offsets = [0, 32], sizes = [8, 32], strides = [1, 1]} : vector<8x128xf32> to vector<8x32xf32>
    %308 = vector.extract_strided_slice %305 {offsets = [0, 64], sizes = [8, 32], strides = [1, 1]} : vector<8x128xf32> to vector<8x32xf32>
    %309 = vector.extract_strided_slice %305 {offsets = [0, 96], sizes = [8, 32], strides = [1, 1]} : vector<8x128xf32> to vector<8x32xf32>
    %310 = arith.mulf %307, %255 : vector<8x32xf32>
    %311 = arith.mulf %306, %308 : vector<8x32xf32>
    %312 = arith.addf %310, %311 : vector<8x32xf32>
    %313 = math.tanh %312 : vector<8x32xf32>
    %314 = arith.mulf %309, %313 : vector<8x32xf32>
    %315 = vector.extract_strided_slice %29 {offsets = [40, 0], sizes = [8, 128], strides = [1, 1]} : vector<64x128xf32> to vector<8x128xf32>
    %cst_51 = arith.constant dense<0.000000e+00> : vector<8x128xf32>
    %316 = tpu.matmul %276, %12, %cst_51 {dimension_numbers = #tpu.dot_dimension_numbers<[1], [0], [0], [1], [0, 0, 1, 1], [], []>} : vector<8x32xf32>, vector<32x128xf32>, vector<8x128xf32> -> vector<8x128xf32>
    %317 = arith.addf %315, %316 : vector<8x128xf32>
    %318 = arith.negf %317 : vector<8x128xf32>
    %319 = math.exp %318 : vector<8x128xf32>
    %cst_52 = arith.constant 1.000000e+00 : f32
    %320 = vector.broadcast %cst_52 : f32 to vector<8x128xf32>
    %321 = arith.addf %320, %319 : vector<8x128xf32>
    %322 = arith.divf %320, %321 : vector<8x128xf32>
    %323 = math.tanh %317 : vector<8x128xf32>
    %324 = arith.select %5, %323, %322 : vector<8x128xi1>, vector<8x128xf32>
    %325 = vector.extract_strided_slice %324 {offsets = [0, 0], sizes = [8, 32], strides = [1, 1]} : vector<8x128xf32> to vector<8x32xf32>
    %326 = vector.extract_strided_slice %324 {offsets = [0, 32], sizes = [8, 32], strides = [1, 1]} : vector<8x128xf32> to vector<8x32xf32>
    %327 = vector.extract_strided_slice %324 {offsets = [0, 64], sizes = [8, 32], strides = [1, 1]} : vector<8x128xf32> to vector<8x32xf32>
    %328 = vector.extract_strided_slice %324 {offsets = [0, 96], sizes = [8, 32], strides = [1, 1]} : vector<8x128xf32> to vector<8x32xf32>
    %329 = arith.mulf %326, %274 : vector<8x32xf32>
    %330 = arith.mulf %325, %327 : vector<8x32xf32>
    %331 = arith.addf %329, %330 : vector<8x32xf32>
    %332 = math.tanh %331 : vector<8x32xf32>
    %333 = arith.mulf %328, %332 : vector<8x32xf32>
    %334 = tpu.concatenate %333, %295 in 1 : vector<8x32xf32>, vector<8x32xf32> -> vector<8x64xf32>
    %cst_53 = arith.constant dense<0.000000e+00> : vector<8x128xf32>
    %335 = tpu.matmul %334, %14, %cst_53 {dimension_numbers = #tpu.dot_dimension_numbers<[1], [0], [0], [1], [0, 0, 1, 1], [], []>} : vector<8x64xf32>, vector<64x128xf32>, vector<8x128xf32> -> vector<8x128xf32>
    %336 = arith.addf %335, %19 : vector<8x128xf32>
    %337 = arith.negf %336 : vector<8x128xf32>
    %338 = math.exp %337 : vector<8x128xf32>
    %cst_54 = arith.constant 1.000000e+00 : f32
    %339 = vector.broadcast %cst_54 : f32 to vector<8x128xf32>
    %340 = arith.addf %339, %338 : vector<8x128xf32>
    %341 = arith.divf %339, %340 : vector<8x128xf32>
    %342 = math.tanh %336 : vector<8x128xf32>
    %343 = arith.select %5, %342, %341 : vector<8x128xi1>, vector<8x128xf32>
    %344 = vector.extract_strided_slice %343 {offsets = [0, 0], sizes = [8, 32], strides = [1, 1]} : vector<8x128xf32> to vector<8x32xf32>
    %345 = vector.extract_strided_slice %343 {offsets = [0, 32], sizes = [8, 32], strides = [1, 1]} : vector<8x128xf32> to vector<8x32xf32>
    %346 = vector.extract_strided_slice %343 {offsets = [0, 64], sizes = [8, 32], strides = [1, 1]} : vector<8x128xf32> to vector<8x32xf32>
    %347 = vector.extract_strided_slice %343 {offsets = [0, 96], sizes = [8, 32], strides = [1, 1]} : vector<8x128xf32> to vector<8x32xf32>
    %348 = arith.mulf %345, %293 : vector<8x32xf32>
    %349 = arith.mulf %344, %346 : vector<8x32xf32>
    %350 = arith.addf %348, %349 : vector<8x32xf32>
    %351 = math.tanh %350 : vector<8x32xf32>
    %352 = arith.mulf %347, %351 : vector<8x32xf32>
    %353 = tpu.concatenate %352, %314 in 1 : vector<8x32xf32>, vector<8x32xf32> -> vector<8x64xf32>
    %cst_55 = arith.constant dense<0.000000e+00> : vector<8x128xf32>
    %354 = tpu.matmul %353, %16, %cst_55 {dimension_numbers = #tpu.dot_dimension_numbers<[1], [0], [0], [1], [0, 0, 1, 1], [], []>} : vector<8x64xf32>, vector<64x128xf32>, vector<8x128xf32> -> vector<8x128xf32>
    %355 = arith.addf %354, %22 : vector<8x128xf32>
    %356 = arith.negf %355 : vector<8x128xf32>
    %357 = math.exp %356 : vector<8x128xf32>
    %cst_56 = arith.constant 1.000000e+00 : f32
    %358 = vector.broadcast %cst_56 : f32 to vector<8x128xf32>
    %359 = arith.addf %358, %357 : vector<8x128xf32>
    %360 = arith.divf %358, %359 : vector<8x128xf32>
    %361 = math.tanh %355 : vector<8x128xf32>
    %362 = arith.select %5, %361, %360 : vector<8x128xi1>, vector<8x128xf32>
    %363 = vector.extract_strided_slice %362 {offsets = [0, 0], sizes = [8, 32], strides = [1, 1]} : vector<8x128xf32> to vector<8x32xf32>
    %364 = vector.extract_strided_slice %362 {offsets = [0, 32], sizes = [8, 32], strides = [1, 1]} : vector<8x128xf32> to vector<8x32xf32>
    %365 = vector.extract_strided_slice %362 {offsets = [0, 64], sizes = [8, 32], strides = [1, 1]} : vector<8x128xf32> to vector<8x32xf32>
    %366 = vector.extract_strided_slice %362 {offsets = [0, 96], sizes = [8, 32], strides = [1, 1]} : vector<8x128xf32> to vector<8x32xf32>
    %367 = arith.mulf %364, %312 : vector<8x32xf32>
    %368 = arith.mulf %363, %365 : vector<8x32xf32>
    %369 = arith.addf %367, %368 : vector<8x32xf32>
    %370 = math.tanh %369 : vector<8x32xf32>
    %371 = arith.mulf %366, %370 : vector<8x32xf32>
    %372 = vector.extract_strided_slice %29 {offsets = [48, 0], sizes = [8, 128], strides = [1, 1]} : vector<64x128xf32> to vector<8x128xf32>
    %cst_57 = arith.constant dense<0.000000e+00> : vector<8x128xf32>
    %373 = tpu.matmul %333, %12, %cst_57 {dimension_numbers = #tpu.dot_dimension_numbers<[1], [0], [0], [1], [0, 0, 1, 1], [], []>} : vector<8x32xf32>, vector<32x128xf32>, vector<8x128xf32> -> vector<8x128xf32>
    %374 = arith.addf %372, %373 : vector<8x128xf32>
    %375 = arith.negf %374 : vector<8x128xf32>
    %376 = math.exp %375 : vector<8x128xf32>
    %cst_58 = arith.constant 1.000000e+00 : f32
    %377 = vector.broadcast %cst_58 : f32 to vector<8x128xf32>
    %378 = arith.addf %377, %376 : vector<8x128xf32>
    %379 = arith.divf %377, %378 : vector<8x128xf32>
    %380 = math.tanh %374 : vector<8x128xf32>
    %381 = arith.select %5, %380, %379 : vector<8x128xi1>, vector<8x128xf32>
    %382 = vector.extract_strided_slice %381 {offsets = [0, 0], sizes = [8, 32], strides = [1, 1]} : vector<8x128xf32> to vector<8x32xf32>
    %383 = vector.extract_strided_slice %381 {offsets = [0, 32], sizes = [8, 32], strides = [1, 1]} : vector<8x128xf32> to vector<8x32xf32>
    %384 = vector.extract_strided_slice %381 {offsets = [0, 64], sizes = [8, 32], strides = [1, 1]} : vector<8x128xf32> to vector<8x32xf32>
    %385 = vector.extract_strided_slice %381 {offsets = [0, 96], sizes = [8, 32], strides = [1, 1]} : vector<8x128xf32> to vector<8x32xf32>
    %386 = arith.mulf %383, %331 : vector<8x32xf32>
    %387 = arith.mulf %382, %384 : vector<8x32xf32>
    %388 = arith.addf %386, %387 : vector<8x32xf32>
    %389 = math.tanh %388 : vector<8x32xf32>
    %390 = arith.mulf %385, %389 : vector<8x32xf32>
    %391 = tpu.concatenate %390, %352 in 1 : vector<8x32xf32>, vector<8x32xf32> -> vector<8x64xf32>
    %cst_59 = arith.constant dense<0.000000e+00> : vector<8x128xf32>
    %392 = tpu.matmul %391, %14, %cst_59 {dimension_numbers = #tpu.dot_dimension_numbers<[1], [0], [0], [1], [0, 0, 1, 1], [], []>} : vector<8x64xf32>, vector<64x128xf32>, vector<8x128xf32> -> vector<8x128xf32>
    %393 = arith.addf %392, %19 : vector<8x128xf32>
    %394 = arith.negf %393 : vector<8x128xf32>
    %395 = math.exp %394 : vector<8x128xf32>
    %cst_60 = arith.constant 1.000000e+00 : f32
    %396 = vector.broadcast %cst_60 : f32 to vector<8x128xf32>
    %397 = arith.addf %396, %395 : vector<8x128xf32>
    %398 = arith.divf %396, %397 : vector<8x128xf32>
    %399 = math.tanh %393 : vector<8x128xf32>
    %400 = arith.select %5, %399, %398 : vector<8x128xi1>, vector<8x128xf32>
    %401 = vector.extract_strided_slice %400 {offsets = [0, 0], sizes = [8, 32], strides = [1, 1]} : vector<8x128xf32> to vector<8x32xf32>
    %402 = vector.extract_strided_slice %400 {offsets = [0, 32], sizes = [8, 32], strides = [1, 1]} : vector<8x128xf32> to vector<8x32xf32>
    %403 = vector.extract_strided_slice %400 {offsets = [0, 64], sizes = [8, 32], strides = [1, 1]} : vector<8x128xf32> to vector<8x32xf32>
    %404 = vector.extract_strided_slice %400 {offsets = [0, 96], sizes = [8, 32], strides = [1, 1]} : vector<8x128xf32> to vector<8x32xf32>
    %405 = arith.mulf %402, %350 : vector<8x32xf32>
    %406 = arith.mulf %401, %403 : vector<8x32xf32>
    %407 = arith.addf %405, %406 : vector<8x32xf32>
    %408 = math.tanh %407 : vector<8x32xf32>
    %409 = arith.mulf %404, %408 : vector<8x32xf32>
    %410 = tpu.concatenate %409, %371 in 1 : vector<8x32xf32>, vector<8x32xf32> -> vector<8x64xf32>
    %cst_61 = arith.constant dense<0.000000e+00> : vector<8x128xf32>
    %411 = tpu.matmul %410, %16, %cst_61 {dimension_numbers = #tpu.dot_dimension_numbers<[1], [0], [0], [1], [0, 0, 1, 1], [], []>} : vector<8x64xf32>, vector<64x128xf32>, vector<8x128xf32> -> vector<8x128xf32>
    %412 = arith.addf %411, %22 : vector<8x128xf32>
    %413 = arith.negf %412 : vector<8x128xf32>
    %414 = math.exp %413 : vector<8x128xf32>
    %cst_62 = arith.constant 1.000000e+00 : f32
    %415 = vector.broadcast %cst_62 : f32 to vector<8x128xf32>
    %416 = arith.addf %415, %414 : vector<8x128xf32>
    %417 = arith.divf %415, %416 : vector<8x128xf32>
    %418 = math.tanh %412 : vector<8x128xf32>
    %419 = arith.select %5, %418, %417 : vector<8x128xi1>, vector<8x128xf32>
    %420 = vector.extract_strided_slice %419 {offsets = [0, 0], sizes = [8, 32], strides = [1, 1]} : vector<8x128xf32> to vector<8x32xf32>
    %421 = vector.extract_strided_slice %419 {offsets = [0, 32], sizes = [8, 32], strides = [1, 1]} : vector<8x128xf32> to vector<8x32xf32>
    %422 = vector.extract_strided_slice %419 {offsets = [0, 64], sizes = [8, 32], strides = [1, 1]} : vector<8x128xf32> to vector<8x32xf32>
    %423 = vector.extract_strided_slice %419 {offsets = [0, 96], sizes = [8, 32], strides = [1, 1]} : vector<8x128xf32> to vector<8x32xf32>
    %424 = arith.mulf %421, %369 : vector<8x32xf32>
    %425 = arith.mulf %420, %422 : vector<8x32xf32>
    %426 = arith.addf %424, %425 : vector<8x32xf32>
    %427 = math.tanh %426 : vector<8x32xf32>
    %428 = arith.mulf %423, %427 : vector<8x32xf32>
    %429 = vector.extract_strided_slice %29 {offsets = [56, 0], sizes = [8, 128], strides = [1, 1]} : vector<64x128xf32> to vector<8x128xf32>
    %cst_63 = arith.constant dense<0.000000e+00> : vector<8x128xf32>
    %430 = tpu.matmul %390, %12, %cst_63 {dimension_numbers = #tpu.dot_dimension_numbers<[1], [0], [0], [1], [0, 0, 1, 1], [], []>} : vector<8x32xf32>, vector<32x128xf32>, vector<8x128xf32> -> vector<8x128xf32>
    %431 = arith.addf %429, %430 : vector<8x128xf32>
    %432 = arith.negf %431 : vector<8x128xf32>
    %433 = math.exp %432 : vector<8x128xf32>
    %cst_64 = arith.constant 1.000000e+00 : f32
    %434 = vector.broadcast %cst_64 : f32 to vector<8x128xf32>
    %435 = arith.addf %434, %433 : vector<8x128xf32>
    %436 = arith.divf %434, %435 : vector<8x128xf32>
    %437 = math.tanh %431 : vector<8x128xf32>
    %438 = arith.select %5, %437, %436 : vector<8x128xi1>, vector<8x128xf32>
    %439 = vector.extract_strided_slice %438 {offsets = [0, 0], sizes = [8, 32], strides = [1, 1]} : vector<8x128xf32> to vector<8x32xf32>
    %440 = vector.extract_strided_slice %438 {offsets = [0, 32], sizes = [8, 32], strides = [1, 1]} : vector<8x128xf32> to vector<8x32xf32>
    %441 = vector.extract_strided_slice %438 {offsets = [0, 64], sizes = [8, 32], strides = [1, 1]} : vector<8x128xf32> to vector<8x32xf32>
    %442 = vector.extract_strided_slice %438 {offsets = [0, 96], sizes = [8, 32], strides = [1, 1]} : vector<8x128xf32> to vector<8x32xf32>
    %443 = arith.mulf %440, %388 : vector<8x32xf32>
    %444 = arith.mulf %439, %441 : vector<8x32xf32>
    %445 = arith.addf %443, %444 : vector<8x32xf32>
    %446 = math.tanh %445 : vector<8x32xf32>
    %447 = arith.mulf %442, %446 : vector<8x32xf32>
    %448 = tpu.concatenate %447, %409 in 1 : vector<8x32xf32>, vector<8x32xf32> -> vector<8x64xf32>
    %cst_65 = arith.constant dense<0.000000e+00> : vector<8x128xf32>
    %449 = tpu.matmul %448, %14, %cst_65 {dimension_numbers = #tpu.dot_dimension_numbers<[1], [0], [0], [1], [0, 0, 1, 1], [], []>} : vector<8x64xf32>, vector<64x128xf32>, vector<8x128xf32> -> vector<8x128xf32>
    %450 = arith.addf %449, %19 : vector<8x128xf32>
    %451 = arith.negf %450 : vector<8x128xf32>
    %452 = math.exp %451 : vector<8x128xf32>
    %cst_66 = arith.constant 1.000000e+00 : f32
    %453 = vector.broadcast %cst_66 : f32 to vector<8x128xf32>
    %454 = arith.addf %453, %452 : vector<8x128xf32>
    %455 = arith.divf %453, %454 : vector<8x128xf32>
    %456 = math.tanh %450 : vector<8x128xf32>
    %457 = arith.select %5, %456, %455 : vector<8x128xi1>, vector<8x128xf32>
    %458 = vector.extract_strided_slice %457 {offsets = [0, 0], sizes = [8, 32], strides = [1, 1]} : vector<8x128xf32> to vector<8x32xf32>
    %459 = vector.extract_strided_slice %457 {offsets = [0, 32], sizes = [8, 32], strides = [1, 1]} : vector<8x128xf32> to vector<8x32xf32>
    %460 = vector.extract_strided_slice %457 {offsets = [0, 64], sizes = [8, 32], strides = [1, 1]} : vector<8x128xf32> to vector<8x32xf32>
    %461 = vector.extract_strided_slice %457 {offsets = [0, 96], sizes = [8, 32], strides = [1, 1]} : vector<8x128xf32> to vector<8x32xf32>
    %462 = arith.mulf %459, %407 : vector<8x32xf32>
    %463 = arith.mulf %458, %460 : vector<8x32xf32>
    %464 = arith.addf %462, %463 : vector<8x32xf32>
    %465 = math.tanh %464 : vector<8x32xf32>
    %466 = arith.mulf %461, %465 : vector<8x32xf32>
    %467 = tpu.concatenate %466, %428 in 1 : vector<8x32xf32>, vector<8x32xf32> -> vector<8x64xf32>
    %cst_67 = arith.constant dense<0.000000e+00> : vector<8x128xf32>
    %468 = tpu.matmul %467, %16, %cst_67 {dimension_numbers = #tpu.dot_dimension_numbers<[1], [0], [0], [1], [0, 0, 1, 1], [], []>} : vector<8x64xf32>, vector<64x128xf32>, vector<8x128xf32> -> vector<8x128xf32>
    %469 = arith.addf %468, %22 : vector<8x128xf32>
    %470 = arith.negf %469 : vector<8x128xf32>
    %471 = math.exp %470 : vector<8x128xf32>
    %cst_68 = arith.constant 1.000000e+00 : f32
    %472 = vector.broadcast %cst_68 : f32 to vector<8x128xf32>
    %473 = arith.addf %472, %471 : vector<8x128xf32>
    %474 = arith.divf %472, %473 : vector<8x128xf32>
    %475 = math.tanh %469 : vector<8x128xf32>
    %476 = arith.select %5, %475, %474 : vector<8x128xi1>, vector<8x128xf32>
    %477 = vector.extract_strided_slice %476 {offsets = [0, 0], sizes = [8, 32], strides = [1, 1]} : vector<8x128xf32> to vector<8x32xf32>
    %478 = vector.extract_strided_slice %476 {offsets = [0, 32], sizes = [8, 32], strides = [1, 1]} : vector<8x128xf32> to vector<8x32xf32>
    %479 = vector.extract_strided_slice %476 {offsets = [0, 64], sizes = [8, 32], strides = [1, 1]} : vector<8x128xf32> to vector<8x32xf32>
    %480 = vector.extract_strided_slice %476 {offsets = [0, 96], sizes = [8, 32], strides = [1, 1]} : vector<8x128xf32> to vector<8x32xf32>
    %481 = arith.mulf %478, %426 : vector<8x32xf32>
    %482 = arith.mulf %477, %479 : vector<8x32xf32>
    %483 = arith.addf %481, %482 : vector<8x32xf32>
    %484 = math.tanh %483 : vector<8x32xf32>
    %485 = arith.mulf %480, %484 : vector<8x32xf32>
    %c0_69 = arith.constant 0 : index
    %c0_70 = arith.constant 0 : index
    %486 = vector.load %arg8[%c0_69, %c0_70] : memref<32x128xf32, #tpu.memory_space<vmem>>, vector<32x128xf32>
    %c0_71 = arith.constant 0 : index
    %c0_72 = arith.constant 0 : index
    %c0_73 = arith.constant 0 : index
    %487 = vector.load %arg9[%c0_71, %c0_72, %c0_73] : memref<2x64x128xf32, #tpu.memory_space<vmem>>, vector<1x64x128xf32>
    %488 = vector.shape_cast %487 : vector<1x64x128xf32> to vector<64x128xf32>
    %c1_74 = arith.constant 1 : index
    %c0_75 = arith.constant 0 : index
    %c0_76 = arith.constant 0 : index
    %489 = vector.load %arg9[%c1_74, %c0_75, %c0_76] : memref<2x64x128xf32, #tpu.memory_space<vmem>>, vector<1x64x128xf32>
    %490 = vector.shape_cast %489 : vector<1x64x128xf32> to vector<64x128xf32>
    %c1_77 = arith.constant 1 : index
    %c0_78 = arith.constant 0 : index
    %491 = vector.load %arg10[%c1_77, %c0_78] : memref<3x128xf32, #tpu.memory_space<vmem>>, vector<1x128xf32>
    %492 = vector.shape_cast %491 : vector<1x128xf32> to vector<1x128xf32>
    %493 = vector.broadcast %492 : vector<1x128xf32> to vector<8x128xf32>
    %c2_79 = arith.constant 2 : index
    %c0_80 = arith.constant 0 : index
    %494 = vector.load %arg10[%c2_79, %c0_80] : memref<3x128xf32, #tpu.memory_space<vmem>>, vector<1x128xf32>
    %495 = vector.shape_cast %494 : vector<1x128xf32> to vector<1x128xf32>
    %496 = vector.broadcast %495 : vector<1x128xf32> to vector<8x128xf32>
    %c0_81 = arith.constant 0 : index
    %c0_82 = arith.constant 0 : index
    %497 = vector.load %arg1[%c0_81, %c0_82] : memref<32x6xf32, #tpu.memory_space<vmem>>, vector<32x6xf32>
    %c0_83 = arith.constant 0 : index
    %c0_84 = arith.constant 0 : index
    %498 = vector.load %arg7[%c0_83, %c0_84] : memref<6x128xf32, #tpu.memory_space<vmem>>, vector<6x128xf32>
    %cst_85 = arith.constant dense<0.000000e+00> : vector<32x128xf32>
    %499 = tpu.matmul %497, %498, %cst_85 {dimension_numbers = #tpu.dot_dimension_numbers<[1], [0], [0], [1], [0, 0, 1, 1], [], []>} : vector<32x6xf32>, vector<6x128xf32>, vector<32x128xf32> -> vector<32x128xf32>
    %c0_86 = arith.constant 0 : index
    %c0_87 = arith.constant 0 : index
    %500 = vector.load %arg10[%c0_86, %c0_87] : memref<3x128xf32, #tpu.memory_space<vmem>>, vector<1x128xf32>
    %501 = vector.shape_cast %500 : vector<1x128xf32> to vector<1x128xf32>
    %502 = vector.broadcast %501 : vector<1x128xf32> to vector<32x128xf32>
    %503 = arith.addf %499, %502 : vector<32x128xf32>
    %504 = vector.extract_strided_slice %503 {offsets = [0, 0], sizes = [8, 128], strides = [1, 1]} : vector<32x128xf32> to vector<8x128xf32>
    %cst_88 = arith.constant dense<0.000000e+00> : vector<8x128xf32>
    %505 = tpu.matmul %447, %486, %cst_88 {dimension_numbers = #tpu.dot_dimension_numbers<[1], [0], [0], [1], [0, 0, 1, 1], [], []>} : vector<8x32xf32>, vector<32x128xf32>, vector<8x128xf32> -> vector<8x128xf32>
    %506 = arith.addf %504, %505 : vector<8x128xf32>
    %507 = arith.negf %506 : vector<8x128xf32>
    %508 = math.exp %507 : vector<8x128xf32>
    %cst_89 = arith.constant 1.000000e+00 : f32
    %509 = vector.broadcast %cst_89 : f32 to vector<8x128xf32>
    %510 = arith.addf %509, %508 : vector<8x128xf32>
    %511 = arith.divf %509, %510 : vector<8x128xf32>
    %512 = math.tanh %506 : vector<8x128xf32>
    %513 = arith.select %5, %512, %511 : vector<8x128xi1>, vector<8x128xf32>
    %514 = vector.extract_strided_slice %513 {offsets = [0, 0], sizes = [8, 32], strides = [1, 1]} : vector<8x128xf32> to vector<8x32xf32>
    %515 = vector.extract_strided_slice %513 {offsets = [0, 32], sizes = [8, 32], strides = [1, 1]} : vector<8x128xf32> to vector<8x32xf32>
    %516 = vector.extract_strided_slice %513 {offsets = [0, 64], sizes = [8, 32], strides = [1, 1]} : vector<8x128xf32> to vector<8x32xf32>
    %517 = vector.extract_strided_slice %513 {offsets = [0, 96], sizes = [8, 32], strides = [1, 1]} : vector<8x128xf32> to vector<8x32xf32>
    %518 = arith.mulf %515, %445 : vector<8x32xf32>
    %519 = arith.mulf %514, %516 : vector<8x32xf32>
    %520 = arith.addf %518, %519 : vector<8x32xf32>
    %521 = math.tanh %520 : vector<8x32xf32>
    %522 = arith.mulf %517, %521 : vector<8x32xf32>
    %523 = tpu.concatenate %522, %466 in 1 : vector<8x32xf32>, vector<8x32xf32> -> vector<8x64xf32>
    %cst_90 = arith.constant dense<0.000000e+00> : vector<8x128xf32>
    %524 = tpu.matmul %523, %488, %cst_90 {dimension_numbers = #tpu.dot_dimension_numbers<[1], [0], [0], [1], [0, 0, 1, 1], [], []>} : vector<8x64xf32>, vector<64x128xf32>, vector<8x128xf32> -> vector<8x128xf32>
    %525 = arith.addf %524, %493 : vector<8x128xf32>
    %526 = arith.negf %525 : vector<8x128xf32>
    %527 = math.exp %526 : vector<8x128xf32>
    %cst_91 = arith.constant 1.000000e+00 : f32
    %528 = vector.broadcast %cst_91 : f32 to vector<8x128xf32>
    %529 = arith.addf %528, %527 : vector<8x128xf32>
    %530 = arith.divf %528, %529 : vector<8x128xf32>
    %531 = math.tanh %525 : vector<8x128xf32>
    %532 = arith.select %5, %531, %530 : vector<8x128xi1>, vector<8x128xf32>
    %533 = vector.extract_strided_slice %532 {offsets = [0, 0], sizes = [8, 32], strides = [1, 1]} : vector<8x128xf32> to vector<8x32xf32>
    %534 = vector.extract_strided_slice %532 {offsets = [0, 32], sizes = [8, 32], strides = [1, 1]} : vector<8x128xf32> to vector<8x32xf32>
    %535 = vector.extract_strided_slice %532 {offsets = [0, 64], sizes = [8, 32], strides = [1, 1]} : vector<8x128xf32> to vector<8x32xf32>
    %536 = vector.extract_strided_slice %532 {offsets = [0, 96], sizes = [8, 32], strides = [1, 1]} : vector<8x128xf32> to vector<8x32xf32>
    %537 = arith.mulf %534, %464 : vector<8x32xf32>
    %538 = arith.mulf %533, %535 : vector<8x32xf32>
    %539 = arith.addf %537, %538 : vector<8x32xf32>
    %540 = math.tanh %539 : vector<8x32xf32>
    %541 = arith.mulf %536, %540 : vector<8x32xf32>
    %542 = tpu.concatenate %541, %485 in 1 : vector<8x32xf32>, vector<8x32xf32> -> vector<8x64xf32>
    %cst_92 = arith.constant dense<0.000000e+00> : vector<8x128xf32>
    %543 = tpu.matmul %542, %490, %cst_92 {dimension_numbers = #tpu.dot_dimension_numbers<[1], [0], [0], [1], [0, 0, 1, 1], [], []>} : vector<8x64xf32>, vector<64x128xf32>, vector<8x128xf32> -> vector<8x128xf32>
    %544 = arith.addf %543, %496 : vector<8x128xf32>
    %545 = arith.negf %544 : vector<8x128xf32>
    %546 = math.exp %545 : vector<8x128xf32>
    %cst_93 = arith.constant 1.000000e+00 : f32
    %547 = vector.broadcast %cst_93 : f32 to vector<8x128xf32>
    %548 = arith.addf %547, %546 : vector<8x128xf32>
    %549 = arith.divf %547, %548 : vector<8x128xf32>
    %550 = math.tanh %544 : vector<8x128xf32>
    %551 = arith.select %5, %550, %549 : vector<8x128xi1>, vector<8x128xf32>
    %552 = vector.extract_strided_slice %551 {offsets = [0, 0], sizes = [8, 32], strides = [1, 1]} : vector<8x128xf32> to vector<8x32xf32>
    %553 = vector.extract_strided_slice %551 {offsets = [0, 32], sizes = [8, 32], strides = [1, 1]} : vector<8x128xf32> to vector<8x32xf32>
    %554 = vector.extract_strided_slice %551 {offsets = [0, 64], sizes = [8, 32], strides = [1, 1]} : vector<8x128xf32> to vector<8x32xf32>
    %555 = vector.extract_strided_slice %551 {offsets = [0, 96], sizes = [8, 32], strides = [1, 1]} : vector<8x128xf32> to vector<8x32xf32>
    %556 = arith.mulf %553, %483 : vector<8x32xf32>
    %557 = arith.mulf %552, %554 : vector<8x32xf32>
    %558 = arith.addf %556, %557 : vector<8x32xf32>
    %559 = math.tanh %558 : vector<8x32xf32>
    %560 = arith.mulf %555, %559 : vector<8x32xf32>
    %561 = vector.extract_strided_slice %503 {offsets = [8, 0], sizes = [8, 128], strides = [1, 1]} : vector<32x128xf32> to vector<8x128xf32>
    %cst_94 = arith.constant dense<0.000000e+00> : vector<8x128xf32>
    %562 = tpu.matmul %522, %486, %cst_94 {dimension_numbers = #tpu.dot_dimension_numbers<[1], [0], [0], [1], [0, 0, 1, 1], [], []>} : vector<8x32xf32>, vector<32x128xf32>, vector<8x128xf32> -> vector<8x128xf32>
    %563 = arith.addf %561, %562 : vector<8x128xf32>
    %564 = arith.negf %563 : vector<8x128xf32>
    %565 = math.exp %564 : vector<8x128xf32>
    %cst_95 = arith.constant 1.000000e+00 : f32
    %566 = vector.broadcast %cst_95 : f32 to vector<8x128xf32>
    %567 = arith.addf %566, %565 : vector<8x128xf32>
    %568 = arith.divf %566, %567 : vector<8x128xf32>
    %569 = math.tanh %563 : vector<8x128xf32>
    %570 = arith.select %5, %569, %568 : vector<8x128xi1>, vector<8x128xf32>
    %571 = vector.extract_strided_slice %570 {offsets = [0, 0], sizes = [8, 32], strides = [1, 1]} : vector<8x128xf32> to vector<8x32xf32>
    %572 = vector.extract_strided_slice %570 {offsets = [0, 32], sizes = [8, 32], strides = [1, 1]} : vector<8x128xf32> to vector<8x32xf32>
    %573 = vector.extract_strided_slice %570 {offsets = [0, 64], sizes = [8, 32], strides = [1, 1]} : vector<8x128xf32> to vector<8x32xf32>
    %574 = vector.extract_strided_slice %570 {offsets = [0, 96], sizes = [8, 32], strides = [1, 1]} : vector<8x128xf32> to vector<8x32xf32>
    %575 = arith.mulf %572, %520 : vector<8x32xf32>
    %576 = arith.mulf %571, %573 : vector<8x32xf32>
    %577 = arith.addf %575, %576 : vector<8x32xf32>
    %578 = math.tanh %577 : vector<8x32xf32>
    %579 = arith.mulf %574, %578 : vector<8x32xf32>
    %580 = tpu.concatenate %579, %541 in 1 : vector<8x32xf32>, vector<8x32xf32> -> vector<8x64xf32>
    %cst_96 = arith.constant dense<0.000000e+00> : vector<8x128xf32>
    %581 = tpu.matmul %580, %488, %cst_96 {dimension_numbers = #tpu.dot_dimension_numbers<[1], [0], [0], [1], [0, 0, 1, 1], [], []>} : vector<8x64xf32>, vector<64x128xf32>, vector<8x128xf32> -> vector<8x128xf32>
    %582 = arith.addf %581, %493 : vector<8x128xf32>
    %583 = arith.negf %582 : vector<8x128xf32>
    %584 = math.exp %583 : vector<8x128xf32>
    %cst_97 = arith.constant 1.000000e+00 : f32
    %585 = vector.broadcast %cst_97 : f32 to vector<8x128xf32>
    %586 = arith.addf %585, %584 : vector<8x128xf32>
    %587 = arith.divf %585, %586 : vector<8x128xf32>
    %588 = math.tanh %582 : vector<8x128xf32>
    %589 = arith.select %5, %588, %587 : vector<8x128xi1>, vector<8x128xf32>
    %590 = vector.extract_strided_slice %589 {offsets = [0, 0], sizes = [8, 32], strides = [1, 1]} : vector<8x128xf32> to vector<8x32xf32>
    %591 = vector.extract_strided_slice %589 {offsets = [0, 32], sizes = [8, 32], strides = [1, 1]} : vector<8x128xf32> to vector<8x32xf32>
    %592 = vector.extract_strided_slice %589 {offsets = [0, 64], sizes = [8, 32], strides = [1, 1]} : vector<8x128xf32> to vector<8x32xf32>
    %593 = vector.extract_strided_slice %589 {offsets = [0, 96], sizes = [8, 32], strides = [1, 1]} : vector<8x128xf32> to vector<8x32xf32>
    %594 = arith.mulf %591, %539 : vector<8x32xf32>
    %595 = arith.mulf %590, %592 : vector<8x32xf32>
    %596 = arith.addf %594, %595 : vector<8x32xf32>
    %597 = math.tanh %596 : vector<8x32xf32>
    %598 = arith.mulf %593, %597 : vector<8x32xf32>
    %599 = tpu.concatenate %598, %560 in 1 : vector<8x32xf32>, vector<8x32xf32> -> vector<8x64xf32>
    %cst_98 = arith.constant dense<0.000000e+00> : vector<8x128xf32>
    %600 = tpu.matmul %599, %490, %cst_98 {dimension_numbers = #tpu.dot_dimension_numbers<[1], [0], [0], [1], [0, 0, 1, 1], [], []>} : vector<8x64xf32>, vector<64x128xf32>, vector<8x128xf32> -> vector<8x128xf32>
    %601 = arith.addf %600, %496 : vector<8x128xf32>
    %602 = arith.negf %601 : vector<8x128xf32>
    %603 = math.exp %602 : vector<8x128xf32>
    %cst_99 = arith.constant 1.000000e+00 : f32
    %604 = vector.broadcast %cst_99 : f32 to vector<8x128xf32>
    %605 = arith.addf %604, %603 : vector<8x128xf32>
    %606 = arith.divf %604, %605 : vector<8x128xf32>
    %607 = math.tanh %601 : vector<8x128xf32>
    %608 = arith.select %5, %607, %606 : vector<8x128xi1>, vector<8x128xf32>
    %609 = vector.extract_strided_slice %608 {offsets = [0, 0], sizes = [8, 32], strides = [1, 1]} : vector<8x128xf32> to vector<8x32xf32>
    %610 = vector.extract_strided_slice %608 {offsets = [0, 32], sizes = [8, 32], strides = [1, 1]} : vector<8x128xf32> to vector<8x32xf32>
    %611 = vector.extract_strided_slice %608 {offsets = [0, 64], sizes = [8, 32], strides = [1, 1]} : vector<8x128xf32> to vector<8x32xf32>
    %612 = vector.extract_strided_slice %608 {offsets = [0, 96], sizes = [8, 32], strides = [1, 1]} : vector<8x128xf32> to vector<8x32xf32>
    %613 = arith.mulf %610, %558 : vector<8x32xf32>
    %614 = arith.mulf %609, %611 : vector<8x32xf32>
    %615 = arith.addf %613, %614 : vector<8x32xf32>
    %616 = math.tanh %615 : vector<8x32xf32>
    %617 = arith.mulf %612, %616 : vector<8x32xf32>
    %618 = vector.extract_strided_slice %503 {offsets = [16, 0], sizes = [8, 128], strides = [1, 1]} : vector<32x128xf32> to vector<8x128xf32>
    %cst_100 = arith.constant dense<0.000000e+00> : vector<8x128xf32>
    %619 = tpu.matmul %579, %486, %cst_100 {dimension_numbers = #tpu.dot_dimension_numbers<[1], [0], [0], [1], [0, 0, 1, 1], [], []>} : vector<8x32xf32>, vector<32x128xf32>, vector<8x128xf32> -> vector<8x128xf32>
    %620 = arith.addf %618, %619 : vector<8x128xf32>
    %621 = arith.negf %620 : vector<8x128xf32>
    %622 = math.exp %621 : vector<8x128xf32>
    %cst_101 = arith.constant 1.000000e+00 : f32
    %623 = vector.broadcast %cst_101 : f32 to vector<8x128xf32>
    %624 = arith.addf %623, %622 : vector<8x128xf32>
    %625 = arith.divf %623, %624 : vector<8x128xf32>
    %626 = math.tanh %620 : vector<8x128xf32>
    %627 = arith.select %5, %626, %625 : vector<8x128xi1>, vector<8x128xf32>
    %628 = vector.extract_strided_slice %627 {offsets = [0, 0], sizes = [8, 32], strides = [1, 1]} : vector<8x128xf32> to vector<8x32xf32>
    %629 = vector.extract_strided_slice %627 {offsets = [0, 32], sizes = [8, 32], strides = [1, 1]} : vector<8x128xf32> to vector<8x32xf32>
    %630 = vector.extract_strided_slice %627 {offsets = [0, 64], sizes = [8, 32], strides = [1, 1]} : vector<8x128xf32> to vector<8x32xf32>
    %631 = vector.extract_strided_slice %627 {offsets = [0, 96], sizes = [8, 32], strides = [1, 1]} : vector<8x128xf32> to vector<8x32xf32>
    %632 = arith.mulf %629, %577 : vector<8x32xf32>
    %633 = arith.mulf %628, %630 : vector<8x32xf32>
    %634 = arith.addf %632, %633 : vector<8x32xf32>
    %635 = math.tanh %634 : vector<8x32xf32>
    %636 = arith.mulf %631, %635 : vector<8x32xf32>
    %637 = tpu.concatenate %636, %598 in 1 : vector<8x32xf32>, vector<8x32xf32> -> vector<8x64xf32>
    %cst_102 = arith.constant dense<0.000000e+00> : vector<8x128xf32>
    %638 = tpu.matmul %637, %488, %cst_102 {dimension_numbers = #tpu.dot_dimension_numbers<[1], [0], [0], [1], [0, 0, 1, 1], [], []>} : vector<8x64xf32>, vector<64x128xf32>, vector<8x128xf32> -> vector<8x128xf32>
    %639 = arith.addf %638, %493 : vector<8x128xf32>
    %640 = arith.negf %639 : vector<8x128xf32>
    %641 = math.exp %640 : vector<8x128xf32>
    %cst_103 = arith.constant 1.000000e+00 : f32
    %642 = vector.broadcast %cst_103 : f32 to vector<8x128xf32>
    %643 = arith.addf %642, %641 : vector<8x128xf32>
    %644 = arith.divf %642, %643 : vector<8x128xf32>
    %645 = math.tanh %639 : vector<8x128xf32>
    %646 = arith.select %5, %645, %644 : vector<8x128xi1>, vector<8x128xf32>
    %647 = vector.extract_strided_slice %646 {offsets = [0, 0], sizes = [8, 32], strides = [1, 1]} : vector<8x128xf32> to vector<8x32xf32>
    %648 = vector.extract_strided_slice %646 {offsets = [0, 32], sizes = [8, 32], strides = [1, 1]} : vector<8x128xf32> to vector<8x32xf32>
    %649 = vector.extract_strided_slice %646 {offsets = [0, 64], sizes = [8, 32], strides = [1, 1]} : vector<8x128xf32> to vector<8x32xf32>
    %650 = vector.extract_strided_slice %646 {offsets = [0, 96], sizes = [8, 32], strides = [1, 1]} : vector<8x128xf32> to vector<8x32xf32>
    %651 = arith.mulf %648, %596 : vector<8x32xf32>
    %652 = arith.mulf %647, %649 : vector<8x32xf32>
    %653 = arith.addf %651, %652 : vector<8x32xf32>
    %654 = math.tanh %653 : vector<8x32xf32>
    %655 = arith.mulf %650, %654 : vector<8x32xf32>
    %656 = tpu.concatenate %655, %617 in 1 : vector<8x32xf32>, vector<8x32xf32> -> vector<8x64xf32>
    %cst_104 = arith.constant dense<0.000000e+00> : vector<8x128xf32>
    %657 = tpu.matmul %656, %490, %cst_104 {dimension_numbers = #tpu.dot_dimension_numbers<[1], [0], [0], [1], [0, 0, 1, 1], [], []>} : vector<8x64xf32>, vector<64x128xf32>, vector<8x128xf32> -> vector<8x128xf32>
    %658 = arith.addf %657, %496 : vector<8x128xf32>
    %659 = arith.negf %658 : vector<8x128xf32>
    %660 = math.exp %659 : vector<8x128xf32>
    %cst_105 = arith.constant 1.000000e+00 : f32
    %661 = vector.broadcast %cst_105 : f32 to vector<8x128xf32>
    %662 = arith.addf %661, %660 : vector<8x128xf32>
    %663 = arith.divf %661, %662 : vector<8x128xf32>
    %664 = math.tanh %658 : vector<8x128xf32>
    %665 = arith.select %5, %664, %663 : vector<8x128xi1>, vector<8x128xf32>
    %666 = vector.extract_strided_slice %665 {offsets = [0, 0], sizes = [8, 32], strides = [1, 1]} : vector<8x128xf32> to vector<8x32xf32>
    %667 = vector.extract_strided_slice %665 {offsets = [0, 32], sizes = [8, 32], strides = [1, 1]} : vector<8x128xf32> to vector<8x32xf32>
    %668 = vector.extract_strided_slice %665 {offsets = [0, 64], sizes = [8, 32], strides = [1, 1]} : vector<8x128xf32> to vector<8x32xf32>
    %669 = vector.extract_strided_slice %665 {offsets = [0, 96], sizes = [8, 32], strides = [1, 1]} : vector<8x128xf32> to vector<8x32xf32>
    %670 = arith.mulf %667, %615 : vector<8x32xf32>
    %671 = arith.mulf %666, %668 : vector<8x32xf32>
    %672 = arith.addf %670, %671 : vector<8x32xf32>
    %673 = math.tanh %672 : vector<8x32xf32>
    %674 = arith.mulf %669, %673 : vector<8x32xf32>
    %675 = vector.extract_strided_slice %503 {offsets = [24, 0], sizes = [8, 128], strides = [1, 1]} : vector<32x128xf32> to vector<8x128xf32>
    %cst_106 = arith.constant dense<0.000000e+00> : vector<8x128xf32>
    %676 = tpu.matmul %636, %486, %cst_106 {dimension_numbers = #tpu.dot_dimension_numbers<[1], [0], [0], [1], [0, 0, 1, 1], [], []>} : vector<8x32xf32>, vector<32x128xf32>, vector<8x128xf32> -> vector<8x128xf32>
    %677 = arith.addf %675, %676 : vector<8x128xf32>
    %678 = arith.negf %677 : vector<8x128xf32>
    %679 = math.exp %678 : vector<8x128xf32>
    %cst_107 = arith.constant 1.000000e+00 : f32
    %680 = vector.broadcast %cst_107 : f32 to vector<8x128xf32>
    %681 = arith.addf %680, %679 : vector<8x128xf32>
    %682 = arith.divf %680, %681 : vector<8x128xf32>
    %683 = math.tanh %677 : vector<8x128xf32>
    %684 = arith.select %5, %683, %682 : vector<8x128xi1>, vector<8x128xf32>
    %685 = vector.extract_strided_slice %684 {offsets = [0, 0], sizes = [8, 32], strides = [1, 1]} : vector<8x128xf32> to vector<8x32xf32>
    %686 = vector.extract_strided_slice %684 {offsets = [0, 32], sizes = [8, 32], strides = [1, 1]} : vector<8x128xf32> to vector<8x32xf32>
    %687 = vector.extract_strided_slice %684 {offsets = [0, 64], sizes = [8, 32], strides = [1, 1]} : vector<8x128xf32> to vector<8x32xf32>
    %688 = vector.extract_strided_slice %684 {offsets = [0, 96], sizes = [8, 32], strides = [1, 1]} : vector<8x128xf32> to vector<8x32xf32>
    %689 = arith.mulf %686, %634 : vector<8x32xf32>
    %690 = arith.mulf %685, %687 : vector<8x32xf32>
    %691 = arith.addf %689, %690 : vector<8x32xf32>
    %692 = math.tanh %691 : vector<8x32xf32>
    %693 = arith.mulf %688, %692 : vector<8x32xf32>
    %694 = tpu.concatenate %693, %655 in 1 : vector<8x32xf32>, vector<8x32xf32> -> vector<8x64xf32>
    %cst_108 = arith.constant dense<0.000000e+00> : vector<8x128xf32>
    %695 = tpu.matmul %694, %488, %cst_108 {dimension_numbers = #tpu.dot_dimension_numbers<[1], [0], [0], [1], [0, 0, 1, 1], [], []>} : vector<8x64xf32>, vector<64x128xf32>, vector<8x128xf32> -> vector<8x128xf32>
    %696 = arith.addf %695, %493 : vector<8x128xf32>
    %697 = arith.negf %696 : vector<8x128xf32>
    %698 = math.exp %697 : vector<8x128xf32>
    %cst_109 = arith.constant 1.000000e+00 : f32
    %699 = vector.broadcast %cst_109 : f32 to vector<8x128xf32>
    %700 = arith.addf %699, %698 : vector<8x128xf32>
    %701 = arith.divf %699, %700 : vector<8x128xf32>
    %702 = math.tanh %696 : vector<8x128xf32>
    %703 = arith.select %5, %702, %701 : vector<8x128xi1>, vector<8x128xf32>
    %704 = vector.extract_strided_slice %703 {offsets = [0, 0], sizes = [8, 32], strides = [1, 1]} : vector<8x128xf32> to vector<8x32xf32>
    %705 = vector.extract_strided_slice %703 {offsets = [0, 32], sizes = [8, 32], strides = [1, 1]} : vector<8x128xf32> to vector<8x32xf32>
    %706 = vector.extract_strided_slice %703 {offsets = [0, 64], sizes = [8, 32], strides = [1, 1]} : vector<8x128xf32> to vector<8x32xf32>
    %707 = vector.extract_strided_slice %703 {offsets = [0, 96], sizes = [8, 32], strides = [1, 1]} : vector<8x128xf32> to vector<8x32xf32>
    %708 = arith.mulf %705, %653 : vector<8x32xf32>
    %709 = arith.mulf %704, %706 : vector<8x32xf32>
    %710 = arith.addf %708, %709 : vector<8x32xf32>
    %711 = math.tanh %710 : vector<8x32xf32>
    %712 = arith.mulf %707, %711 : vector<8x32xf32>
    %713 = tpu.concatenate %712, %674 in 1 : vector<8x32xf32>, vector<8x32xf32> -> vector<8x64xf32>
    %cst_110 = arith.constant dense<0.000000e+00> : vector<8x128xf32>
    %714 = tpu.matmul %713, %490, %cst_110 {dimension_numbers = #tpu.dot_dimension_numbers<[1], [0], [0], [1], [0, 0, 1, 1], [], []>} : vector<8x64xf32>, vector<64x128xf32>, vector<8x128xf32> -> vector<8x128xf32>
    %715 = arith.addf %714, %496 : vector<8x128xf32>
    %716 = arith.negf %715 : vector<8x128xf32>
    %717 = math.exp %716 : vector<8x128xf32>
    %cst_111 = arith.constant 1.000000e+00 : f32
    %718 = vector.broadcast %cst_111 : f32 to vector<8x128xf32>
    %719 = arith.addf %718, %717 : vector<8x128xf32>
    %720 = arith.divf %718, %719 : vector<8x128xf32>
    %721 = math.tanh %715 : vector<8x128xf32>
    %722 = arith.select %5, %721, %720 : vector<8x128xi1>, vector<8x128xf32>
    %723 = vector.extract_strided_slice %722 {offsets = [0, 0], sizes = [8, 32], strides = [1, 1]} : vector<8x128xf32> to vector<8x32xf32>
    %724 = vector.extract_strided_slice %722 {offsets = [0, 32], sizes = [8, 32], strides = [1, 1]} : vector<8x128xf32> to vector<8x32xf32>
    %725 = vector.extract_strided_slice %722 {offsets = [0, 64], sizes = [8, 32], strides = [1, 1]} : vector<8x128xf32> to vector<8x32xf32>
    %726 = vector.extract_strided_slice %722 {offsets = [0, 96], sizes = [8, 32], strides = [1, 1]} : vector<8x128xf32> to vector<8x32xf32>
    %727 = arith.mulf %724, %672 : vector<8x32xf32>
    %728 = arith.mulf %723, %725 : vector<8x32xf32>
    %729 = arith.addf %727, %728 : vector<8x32xf32>
    %730 = math.tanh %729 : vector<8x32xf32>
    %731 = arith.mulf %726, %730 : vector<8x32xf32>
    %732 = tpu.concatenate %560, %617, %674, %731 in 0 : vector<8x32xf32>, vector<8x32xf32>, vector<8x32xf32>, vector<8x32xf32> -> vector<32x32xf32>
    %c0_112 = arith.constant 0 : index
    %c0_113 = arith.constant 0 : index
    %733 = vector.load %arg11[%c0_112, %c0_113] : memref<32x2xf32, #tpu.memory_space<vmem>>, vector<32x2xf32>
    %cst_114 = arith.constant dense<0.000000e+00> : vector<32x2xf32>
    %734 = tpu.matmul %732, %733, %cst_114 {dimension_numbers = #tpu.dot_dimension_numbers<[1], [0], [0], [1], [0, 0, 1, 1], [], []>} : vector<32x32xf32>, vector<32x2xf32>, vector<32x2xf32> -> vector<32x2xf32>
    %c0_115 = arith.constant 0 : index
    %c0_116 = arith.constant 0 : index
    %735 = vector.load %arg12[%c0_115, %c0_116] : memref<1x2xf32, #tpu.memory_space<vmem>>, vector<1x2xf32>
    %736 = vector.broadcast %735 : vector<1x2xf32> to vector<32x2xf32>
    %737 = arith.addf %734, %736 : vector<32x2xf32>
    %738 = vector.extract_strided_slice %737 {offsets = [0, 0], sizes = [32, 1], strides = [1, 1]} : vector<32x2xf32> to vector<32x1xf32>
    %739 = vector.extract_strided_slice %737 {offsets = [0, 1], sizes = [32, 1], strides = [1, 1]} : vector<32x2xf32> to vector<32x1xf32>
    %cst_117 = arith.constant 0.000000e+00 : f32
    %740 = vector.broadcast %cst_117 : f32 to vector<32x1xf32>
    %741 = arith.maximumf %739, %740 : vector<32x1xf32>
    %742 = vector.broadcast %cst_117 : f32 to vector<32x1xf32>
    %743 = arith.subf %739, %742 : vector<32x1xf32>
    %744 = arith.cmpf one, %743, %743 : vector<32x1xf32>
    %745 = vector.broadcast %cst_117 : f32 to vector<32x1xf32>
    %746 = arith.addf %739, %745 : vector<32x1xf32>
    %747 = math.absf %743 : vector<32x1xf32>
    %cst_118 = arith.constant 0.000000e+00 : f32
    %748 = vector.broadcast %cst_118 : f32 to vector<32x1xf32>
    %749 = arith.subf %748, %747 : vector<32x1xf32>
    %750 = math.exp %749 : vector<32x1xf32>
    %751 = math.log1p %750 : vector<32x1xf32>
    %752 = arith.addf %741, %751 : vector<32x1xf32>
    %753 = arith.select %744, %746, %752 : vector<32x1xi1>, vector<32x1xf32>
    %c0_119 = arith.constant 0 : index
    %c0_120 = arith.constant 0 : index
    %754 = vector.load %arg2[%c0_119, %c0_120] : memref<32x1xf32, #tpu.memory_space<vmem>>, vector<32x1xf32>
    %755 = arith.mulf %753, %754 : vector<32x1xf32>
    %756 = arith.addf %738, %755 : vector<32x1xf32>
    %c0_121 = arith.constant 0 : index
    %c0_122 = arith.constant 0 : index
    %757 = vector.load %arg13[%c0_121, %c0_122] : memref<32x1xf32, #tpu.memory_space<vmem>>, vector<32x1xf32>
    tpu.vector_store %arg13[%c0_121, %c0_122], %756 {strides = array<i32>} : memref<32x1xf32, #tpu.memory_space<vmem>>, vector<32x1xf32>,
    return
  }
}

</mosaic_0001>

<bundles_post_ra>
// kernel: tpu_custom_call.1
= control target key start
LH: loop header
LB: loop body
LE: loop exit
PB: predicated region body
PF: predicated region fallthrough
CT: control target
= control target key end

     0   :  { %18 = vsyncpa [#allocation3], 0  ;;  %s4386_s0 = inlined_call_operand.vmem [shape: f32[64,6], index: 0, kind: input, shape index: {}]   ;;  %s4387_s1 = inlined_call_operand.vmem [shape: f32[32,6], index: 1, kind: input, shape index: {}]   ;;  %s4388_s2 = inlined_call_operand.vmem [shape: f32[32,1], index: 2, kind: input, shape index: {}]   ;;  %s4389_s3 = inlined_call_operand.vmem [shape: f32[6,128], index: 3, kind: input, shape index: {}]   ;;  %s4390_s4 = inlined_call_operand.vmem [shape: f32[32,128], index: 4, kind: input, shape index: {}]   ;;  %s4391_s5 = inlined_call_operand.hbm [shape: f32[2,64,128], index: 5, kind: input, shape index: {}]   ;;  %s4392_s6 = inlined_call_operand.vmem [shape: f32[3,128], index: 6, kind: input, shape index: {}]   ;;  %s4393_s7 = inlined_call_operand.vmem [shape: f32[6,128], index: 7, kind: input, shape index: {}]   ;;  %s4394_s8 = inlined_call_operand.vmem [shape: f32[32,128], index: 8, kind: input, shape index: {}]   ;;  %s4395_s9 = inlined_call_operand.hbm [shape: f32[2,64,128], index: 9, kind: input, shape index: {}]   ;;  %s4396_s10 = inlined_call_operand.vmem [shape: f32[3,128], index: 10, kind: input, shape index: {}]   ;;  %s4397_s11 = inlined_call_operand.vmem [shape: f32[32,2], index: 11, kind: input, shape index: {}]   ;;  %s4398_s12 = inlined_call_operand.vmem [shape: f32[1,2], index: 12, kind: input, shape index: {}]   ;;  %s4399_s13 = inlined_call_operand.vmem [shape: f32[32,1], index: 13, kind: output, shape index: {}]  }
   0x1   :  { %s34_s27 = sshll.u32 %s4391_s5, 4  ;;  %s35_s27 = int_to_ptr.hbm [resolvable:$true] %s34_s27 }
   0x2   :  { %19 = vsyncpa [#allocation5], 0  ;;  %s3325_s28 = smov [#allocation2]   ;;  %s53_s15 = sshll.u32 %s4395_s9, 4  ;;  %s54_s15 = int_to_ptr.hbm [resolvable:$true] %s53_s15 }
   0x3   :  { %s36_s29 = sshll.u32 %s3325_s28, 4  ;;  %s3326_s16 = smov 128   ;;  %s37_s29 = int_to_ptr.vmem [resolvable:$true] %s36_s29 }
   0x4   :  { %s3327_s17 = smov 8   ;;  %s3328_s18 = smov [#allocation4]  }
   0x5   :  { %42 = dma.hbm_to_vmem [thread:$0]  %s35_s27, 2048, %s37_s29, [#allocation3], %s3326_s16, %s3326_s16, %s3327_s17  }
   0x6   :  { %s55_s19 = sshll.u32 %s3328_s18, 4  ;;  %s56_s19 = int_to_ptr.vmem [resolvable:$true] %s55_s19 }
   0x7   :  { %61 = dma.hbm_to_vmem [thread:$0]  %s54_s15, 2048, %s56_s19, [#allocation5], %s3326_s16, %s3326_s16, %s3327_s17  }
   0x8   :  { %3321 = dma.done.wait [#allocation3], 2048  }
   0x9   :  { %3322 = vsyncadd [#allocation3], 4294965248 }
   0xa   :  { %3323 = dma.done.wait [#allocation5], 2048  }
   0xb   :  { %3324 = vsyncadd [#allocation5], 4294965248  ;;  %vm142_vm0 = vcmask 1045504   ;;  %vm117_vm1 = vcmask 48128   ;;  %v3413_v0 = vld [vmem:[%s4390_s4 + $0x18] sm:$0xff]  ;;  %v3418_v1 = vld [vmem:[%s4390_s4 + $0x10] sm:$0xff]  ;;  %v76_v15 = vlaneseq }
   0xc   :  { %v114_v2 = vld [vmem:[%s4389_s3] sm:$0x3f]  ;;  %203 = vmatpush.msra.mxu1 %v3413_v0  ;;  %v3431_v4 = vld [vmem:[%s4390_s4 + $0x8] sm:$0xff]  ;;  %v3329_v6 = vmov 0.0   ;;  %s3330_s14 = smov 64   ;;  %s3331_s15 = smov 32  }
   0xd   :  { %2840 = vmatpush.msk.msra.mxu0 %vm142_vm0, %v114_v2  ;;  %v106_v3 = vld [vmem:[%s4386_s0] sm:$0xff]  ;;  %2929 = vmatpush.msk.msra.mxu2 %vm142_vm0, %v114_v2  ;;  %v77_v17 = vand.u32 127, %v76_v15  ;;  %v112_v36 = vld [vmem:[%s4386_s0 + $0x30] sm:$0xff]  ;;  %v3468_v37 = vld [vmem:[#allocation2 + $0x38] sm:$0xff]  ;;  %vm187_vm9 = vcmask 261120   ;;  %vm255_vm10 = vcmask 523264  }
   0xe   :  { %2841 = vmatmul.msk.f32.vlgmr.msra.gmra.mxu0 %vm117_vm1, %v106_v3  ;;  %204 = vmatpush.msra.mxu1 %v3418_v1  ;;  %v3439_v5 = vld [vmem:[%s4390_s4] sm:$0xff]  ;;  %v3471_v38 = vld [vmem:[#allocation2 + $0x30] sm:$0xff]  ;;  %v3476_v39 = vld [vmem:[#allocation2 + $0x28] sm:$0xff] }
   0xf   :  { %v3450_v7 = vld [vmem:[%s4392_s6] ss:$0 sm:$0xff]  ;;  %vm78_vm2 = vcmp.ge.s32.totalorder %v77_v17, 64  ;;  %vm79_vm3 = vcmp.lt.s32.totalorder %v77_v17, 96  ;;  %2847 = vmatmul.msk.f32.vlgmr.msra.gmra.mxu2 %vm117_vm1, %v112_v36  ;;  %1063 = vmatpush.msrb.mxu0 %v3468_v37  ;;  %v107_v40 = vld [vmem:[%s4386_s0 + $0x8] sm:$0xff]  ;;  %v113_v42 = vld [vmem:[%s4386_s0 + $0x38] sm:$0xff] }
  0x10   :  { %205 = vmatpush.msra.mxu1 %v3431_v4  ;;  %vm3453_vm5 = vmand %vm78_vm2, %vm79_vm3  ;;  %267 = vmatpush.msrb.mxu2 %v3468_v37  ;;  %v3484_v41 = vld [vmem:[#allocation2 + $0x20] sm:$0xff]  ;;  %v3492_v43 = vld [vmem:[#allocation2 + $0x18] sm:$0xff] }
  0x11   :  { %1064 = vmatpush.msrb.mxu0 %v3471_v38  ;;  %v3498_v44 = vld [vmem:[#allocation2 + $0x10] sm:$0xff]  ;;  %v3503_v45 = vld [vmem:[#allocation2 + $0x8] sm:$0xff]  ;;  %v3508_v46 = vld [vmem:[#allocation2] sm:$0xff] }
  0x12   :  { %206 = vmatpush.msra.mxu1 %v3439_v5  ;;  %268 = vmatpush.msrb.mxu2 %v3471_v38  ;;  %v3533_v58 = vld [vmem:[%s4392_s6 + $0x1] ss:$0 sm:$0xff] }
  0x13   :  { %207 = vmatmul.f32.vlgmr.msra.gmra.mxu1 %v3329_v6  ;;  %1065 = vmatpush.msrb.mxu0 %v3476_v39  ;;  %v2659_v23 = vld [vmem:[%s4397_s11] sm:$0xff] }
  0x14   :  { %397 = vmatpush.msrb.mxu1 %v3413_v0  ;;  %269 = vmatpush.msrb.mxu2 %v3476_v39 }
  0x15   :  { %1066 = vmatpush.msrb.mxu0 %v3484_v41 }
  0x16   :  { %398 = vmatpush.msrb.mxu1 %v3418_v1  ;;  %2842 = vmatmul.msk.f32.gmra.mxu0 %vm117_vm1, %v107_v40 }
  0x17   :  { %270 = vmatpush.msrb.mxu2 %v3484_v41  ;;  %1067 = vmatpush.msrb.mxu0 %v3492_v43 }
  0x18   :  { %399 = vmatpush.msrb.mxu1 %v3431_v4  ;;  %2848 = vmatmul.msk.f32.gmra.mxu2 %vm117_vm1, %v113_v42 }
  0x19   :  { %271 = vmatpush.msrb.mxu2 %v3492_v43  ;;  %1068 = vmatpush.msrb.mxu0 %v3498_v44 }
  0x1a   :  { %400 = vmatpush.msrb.mxu1 %v3439_v5 }
  0x1b   :  { %272 = vmatpush.msrb.mxu2 %v3498_v44  ;;  %1069 = vmatpush.msrb.mxu0 %v3503_v45 }
  0x1c   :  { %463 = vmatpush.msra.mxu1 %v3468_v37 }
  0x1d   :  { %273 = vmatpush.msrb.mxu2 %v3503_v45  ;;  %1070 = vmatpush.msrb.mxu0 %v3508_v46 }
  0x1e   :  { %464 = vmatpush.msra.mxu1 %v3471_v38 }
  0x1f   :  { %274 = vmatpush.msrb.mxu2 %v3508_v46  ;;  %1397 = vmatpush.msra.mxu0 %v3413_v0 }
  0x20   :  { %465 = vmatpush.msra.mxu1 %v3476_v39 }
  0x21   :  { %1398 = vmatpush.msra.mxu0 %v3418_v1 }
  0x22   :  { %466 = vmatpush.msra.mxu1 %v3484_v41 }
  0x23   :  { %1399 = vmatpush.msra.mxu0 %v3431_v4 }
  0x24   :  { %467 = vmatpush.msra.mxu1 %v3492_v43 }
  0x25   :  { %1400 = vmatpush.msra.mxu0 %v3439_v5 }
  0x26   :  { %468 = vmatpush.msra.mxu1 %v3498_v44 }
  0x28   :  { %469 = vmatpush.msra.mxu1 %v3503_v45 }
  0x2a   :  { %470 = vmatpush.msra.mxu1 %v3508_v46 }
  0x8b   :  { %v163_v8 = vpop.f32.mrf.mxu0 }
  0x8c   :  { %v164_v9 = vadd.f32 %v3450_v7, %v163_v8 }
  0x90   :  { %v208_v10 = vpop.f32.mrf.mxu1 }
  0x91   :  { %v211_v11 = vadd.f32 %v208_v10, %v164_v9 }
  0x92   :  { %v3525_v51 = vpop.f32.mrf.mxu2 }
  0x93   :  { %v2849_v12 = vmul.f32 -1.442695, %v211_v11  ;;  %v166_v52 = vpop.f32.mrf.mxu0 }
  0x94   :  { %v167_v53 = vadd.f32 %v3450_v7, %v166_v52 }
  0x95   :  { %2946 = vpow2.f32 %v2849_v12 }
  0x9b   :  { %v2947_v13 = vpop.eup %2946  ;;  %v3528_v54 = vpop.f32.mrf.mxu2 }
  0x9c   :  { %v215_v14 = vadd.f32 1.0, %v2947_v13 }
  0x9e   :  { %2948 = vrcp.f32 %v215_v14  ;;  %v227_v20 = vand.u32 2147483648, %v215_v14  ;;  %v225_v22 = vand.u32 2147483647, %v215_v14  ;;  %vm221_vm6 = vweird.f32 %v215_v14 }
  0x9f   :  { %2950 = vtanh.f32 %v211_v11 }
  0xa0   :  { %v228_v25 = vor.u32 1.1754944e-38, %v227_v20  ;;  %vm226_vm8 = vcmp.eq.f32.partialorder %v225_v22, 8.507059e+37 }
  0xa4   :  { %v2949_v16 = vpop.eup %2948 }
  0xa5   :  { %v217_v18 = vmul.f32 %v2949_v16, %v215_v14  ;;  %vm222_vm4 = vweird.f32 %v2949_v16  ;;  %v2951_v27 = vpop.eup %2950 }
  0xa6   :  { %vm223_vm7 = vmor %vm221_vm6, %vm222_vm4 }
  0xa7   :  { %v218_v19 = vsub.f32 1.0, %v217_v18 }
  0xa9   :  { %v219_v21 = vmul.f32 %v2949_v16, %v218_v19 }
  0xab   :  { %v220_v24 = vadd.f32 %v2949_v16, %v219_v21 }
  0xad   :  { %v224_v26 = vsel %vm223_vm7, %v2949_v16, %v220_v24 }
  0xae   :  { %v229_v28 = vsel %vm226_vm8, %v228_v25, %v224_v26 }
  0xaf   :  { %v232_v29 = vsel %vm3453_vm5, %v2951_v27, %v229_v28 }
  0xb0   :  { %235 = vrot.lane.b32.xlu0 %v232_v29, %s3330_s14  ;;  %v233_v32 = vmul.f32 0.0, %v232_v29 }
 0x122   :  { %v236_v30 = vpop.permute.xlu0 %235 }
 0x123   :  { %v238_v31 = vmul.f32 %v236_v30, %v232_v29 }
 0x125   :  { %240 = vrot.lane.b32.xlu0 %v238_v31, %s3331_s15 }
 0x197   :  { %v241_v33 = vpop.permute.xlu0 %240 }
 0x198   :  { %v3461_v34 = vadd.f32 %v241_v33, %v233_v32 }
 0x19a   :  { %2952 = vtanh.f32 %v3461_v34 }
 0x1a0   :  { %v2953_v35 = vpop.eup %2952 }
 0x1a1   :  { %246 = vrot.lane.b32.xlu1 %v2953_v35, %s3330_s14 }
 0x213   :  { %v247_v47 = vpop.permute.xlu1 %246 }
 0x214   :  { %v249_v48 = vmul.f32 %v247_v47, %v232_v29 }
 0x216   :  { %251 = vrot.lane.b32.xlu1 %v249_v48, %s3331_s15 }
 0x288   :  { %v252_v49 = vpop.permute.xlu1 %251 }
 0x289   :  { %2854 = vmatmul.msk.f32.vlgmr.msrb.gmra.mxu1 %vm187_vm9, %v252_v49  ;;  %v254_v50 = vsel %vm187_vm9, %v252_v49, 0.0 }
 0x28a   :  { %2850 = vmatmul.msk.f32.vlgmr.msrb.gmra.mxu2 %vm255_vm10, %v254_v50 }
 0x306   :  { %v402_v55 = vpop.f32.mrf.mxu1 }
 0x307   :  { %v405_v56 = vadd.f32 %v402_v55, %v167_v53 }
 0x309   :  { %v2855_v57 = vmul.f32 -1.442695, %v405_v56 }
 0x30b   :  { %2954 = vpow2.f32 %v2855_v57  ;;  %v3555_v57 = vld [vmem:[#allocation2 + $0x78] sm:$0xff] }
 0x30c   :  { %333 = vmatpush.msra.mxu3 %v3555_v57  ;;  %533 = vmatpush.msra.mxu2 %v3555_v57 }
 0x30d   :  { %v276_v59 = vpop.f32.mrf.mxu2  ;;  %733 = vmatpush.msrb.mxu1 %v3555_v57 }
 0x30e   :  { %v277_v60 = vadd.f32 %v3533_v58, %v276_v59  ;;  %v3561_v59 = vld [vmem:[#allocation2 + $0x68] sm:$0xff] }
 0x310   :  { %v2851_v61 = vmul.f32 -1.442695, %v277_v60 }
 0x311   :  { %v2955_v62 = vpop.eup %2954 }
 0x312   :  { %v409_v63 = vadd.f32 1.0, %v2955_v62  ;;  %2956 = vpow2.f32 %v2851_v61  ;;  %v3571_v61 = vld [vmem:[#allocation2 + $0x58] sm:$0xff]  ;;  %v3576_v62 = vld [vmem:[#allocation2 + $0x50] sm:$0xff] }
 0x314   :  { %2958 = vrcp.f32 %v409_v63  ;;  %v421_v24 = vand.u32 2147483648, %v409_v63  ;;  %vm415_vm2 = vweird.f32 %v409_v63  ;;  %v419_v26 = vand.u32 2147483647, %v409_v63 }
 0x316   :  { %v422_v28 = vor.u32 1.1754944e-38, %v421_v24  ;;  %vm420_vm4 = vcmp.eq.f32.partialorder %v419_v26, 8.507059e+37 }
 0x318   :  { %v2957_v2 = vpop.eup %2956 }
 0x319   :  { %v282_v3 = vadd.f32 1.0, %v2957_v2 }
 0x31a   :  { %v2959_v6 = vpop.eup %2958 }
 0x31b   :  { %2960 = vrcp.f32 %v282_v3  ;;  %v411_v8 = vmul.f32 %v2959_v6, %v409_v63  ;;  %v294_v13 = vand.u32 2147483648, %v282_v3  ;;  %v292_v15 = vand.u32 2147483647, %v282_v3  ;;  %v3581_v63 = vld [vmem:[#allocation2 + $0x48] sm:$0xff] }
 0x31c   :  { %2962 = vtanh.f32 %v277_v60  ;;  %vm288_vm12 = vweird.f32 %v282_v3  ;;  %vm416_vm15 = vweird.f32 %v2959_v6  ;;  %v3566_v60 = vld [vmem:[#allocation2 + $0x60] sm:$0xff] }
 0x31d   :  { %v412_v11 = vsub.f32 1.0, %v411_v8  ;;  %v295_v18 = vor.u32 1.1754944e-38, %v294_v13  ;;  %vm293_vm14 = vcmp.eq.f32.partialorder %v292_v15, 8.507059e+37  ;;  %2964 = vtanh.f32 %v405_v56  ;;  %vm417_vm3 = vmor %vm415_vm2, %vm416_vm15  ;;  %v108_v8 = vld [vmem:[%s4386_s0 + $0x10] sm:$0xff] }
 0x31e   :  { %2843 = vmatmul.msk.f32.gmra.mxu0 %vm117_vm1, %v108_v8 }
 0x31f   :  { %v413_v16 = vmul.f32 %v2959_v6, %v412_v11 }
 0x321   :  { %v2961_v9 = vpop.eup %2960  ;;  %v414_v20 = vadd.f32 %v2959_v6, %v413_v16 }
 0x322   :  { %v284_v10 = vmul.f32 %v2961_v9, %v282_v3  ;;  %vm289_vm11 = vweird.f32 %v2961_v9  ;;  %v2963_v21 = vpop.eup %2962 }
 0x323   :  { %vm290_vm13 = vmor %vm288_vm12, %vm289_vm11  ;;  %v418_v27 = vsel %vm417_vm3, %v2959_v6, %v414_v20  ;;  %v2965_v30 = vpop.eup %2964  ;;  %v3591_v6 = vld [vmem:[#allocation2 + $0x40] sm:$0xff] }
 0x324   :  { %v285_v12 = vsub.f32 1.0, %v284_v10  ;;  %v423_v29 = vsel %vm420_vm4, %v422_v28, %v418_v27 }
 0x325   :  { %v426_v31 = vsel %vm3453_vm5, %v2965_v30, %v423_v29 }
 0x326   :  { %v286_v14 = vmul.f32 %v2961_v9, %v285_v12  ;;  %v427_v48 = vmul.f32 %v426_v31, %v3461_v34  ;;  %v3557_v34 = vld [vmem:[#allocation2 + $0x70] sm:$0xff] }
 0x327   :  { %334 = vmatpush.msra.mxu3 %v3557_v34  ;;  %534 = vmatpush.msra.mxu2 %v3557_v34 }
 0x328   :  { %v287_v17 = vadd.f32 %v2961_v9, %v286_v14  ;;  %734 = vmatpush.msrb.mxu1 %v3557_v34  ;;  %v3636_v14 = vld [vmem:[%s4392_s6 + $0x2] ss:$0 sm:$0xff] }
 0x329   :  { %335 = vmatpush.msra.mxu3 %v3561_v59  ;;  %535 = vmatpush.msra.mxu2 %v3561_v59 }
 0x32a   :  { %v291_v19 = vsel %vm290_vm13, %v2961_v9, %v287_v17  ;;  %735 = vmatpush.msrb.mxu1 %v3561_v59 }
 0x32b   :  { %v296_v22 = vsel %vm293_vm14, %v295_v18, %v291_v19  ;;  %336 = vmatpush.msra.mxu3 %v3566_v60  ;;  %536 = vmatpush.msra.mxu2 %v3566_v60 }
 0x32c   :  { %v299_v25 = vsel %vm3453_vm5, %v2963_v21, %v296_v22  ;;  %736 = vmatpush.msrb.mxu1 %v3566_v60 }
 0x32d   :  { %302 = vrot.lane.b32.xlu2 %v299_v25, %s3330_s14  ;;  %v300_v40 = vmul.f32 0.0, %v299_v25  ;;  %337 = vmatpush.msra.mxu3 %v3571_v61 }
 0x32e   :  { %537 = vmatpush.msra.mxu2 %v3571_v61  ;;  %737 = vmatpush.msrb.mxu1 %v3571_v61 }
 0x32f   :  { %338 = vmatpush.msra.mxu3 %v3576_v62 }
 0x330   :  { %538 = vmatpush.msra.mxu2 %v3576_v62  ;;  %738 = vmatpush.msrb.mxu1 %v3576_v62 }
 0x331   :  { %339 = vmatpush.msra.mxu3 %v3581_v63 }
 0x332   :  { %539 = vmatpush.msra.mxu2 %v3581_v63  ;;  %739 = vmatpush.msrb.mxu1 %v3581_v63 }
 0x333   :  { %340 = vmatpush.msra.mxu3 %v3591_v6 }
 0x334   :  { %540 = vmatpush.msra.mxu2 %v3591_v6  ;;  %740 = vmatpush.msrb.mxu1 %v3591_v6 }
 0x335   :  { %429 = vrot.lane.b32.xlu2 %v426_v31, %s3330_s14  ;;  %597 = vmatpush.msrb.mxu3 %v3413_v0 }
 0x336   :  { %797 = vmatpush.msrb.mxu2 %v3413_v0 }
 0x337   :  { %598 = vmatpush.msrb.mxu3 %v3418_v1 }
 0x338   :  { %798 = vmatpush.msrb.mxu2 %v3418_v1 }
 0x339   :  { %599 = vmatpush.msrb.mxu3 %v3431_v4 }
 0x33a   :  { %799 = vmatpush.msrb.mxu2 %v3431_v4 }
 0x33b   :  { %600 = vmatpush.msrb.mxu3 %v3439_v5 }
 0x33c   :  { %800 = vmatpush.msrb.mxu2 %v3439_v5 }
 0x387   :  { %v303_v32 = vpop.permute.xlu2 %302 }
 0x388   :  { %v305_v33 = vmul.f32 %v303_v32, %v299_v25 }
 0x38a   :  { %307 = vrot.lane.b32.xlu0 %v305_v33, %s3331_s15 }
 0x38f   :  { %v430_v35 = vpop.permute.xlu2 %429 }
 0x390   :  { %v432_v36 = vmul.f32 %v430_v35, %v426_v31 }
 0x392   :  { %434 = vrot.lane.b32.xlu1 %v432_v36, %s3331_s15 }
 0x39b   :  { %v169_v18 = vpop.f32.mrf.mxu0 }
 0x39c   :  { %v170_v22 = vadd.f32 %v3450_v7, %v169_v18 }
 0x3fc   :  { %v308_v42 = vpop.permute.xlu0 %307 }
 0x3fd   :  { %v3544_v47 = vadd.f32 %v308_v42, %v300_v40 }
 0x3ff   :  { %2966 = vtanh.f32 %v3544_v47 }
 0x404   :  { %v435_v49 = vpop.permute.xlu1 %434 }
 0x405   :  { %v2967_v50 = vpop.eup %2966  ;;  %v3548_v52 = vadd.f32 %v435_v49, %v427_v48 }
 0x406   :  { %313 = vrot.lane.b32.xlu2 %v2967_v50, %s3330_s14 }
 0x407   :  { %2968 = vtanh.f32 %v3548_v52 }
 0x40d   :  { %v2969_v53 = vpop.eup %2968 }
 0x40e   :  { %440 = vrot.lane.b32.xlu0 %v2969_v53, %s3330_s14 }
 0x460   :  { %v314_v55 = vpop.permute.xlu2 %313 }
 0x461   :  { %v316_v56 = vmul.f32 %v314_v55, %v299_v25 }
 0x463   :  { %448 = vrot.lane.b32.xlu0 %v316_v56, %s3330_s14  ;;  %318 = vrot.lane.b32.xlu1 %v316_v56, %s3331_s15 }
 0x480   :  { %v441_v2 = vpop.permute.xlu0 %440 }
 0x481   :  { %v443_v3 = vmul.f32 %v441_v2, %v426_v31 }
 0x483   :  { %445 = vrot.lane.b32.xlu2 %v443_v3, %s3331_s15 }
 0x4d5   :  { %v319_v9 = vpop.permute.xlu1 %318  ;;  %v449_v11 = vpop.permute.xlu0 %448 }
 0x4d6   :  { %v321_v10 = vsel %vm187_vm9, %v319_v9, 0.0 }
 0x4d7   :  { %2852 = vmatmul.msk.f32.vlgmr.msra.gmra.mxu3 %vm255_vm10, %v321_v10 }
 0x4d8   :  { %663 = vmatpush.msra.mxu3 %v3468_v37 }
 0x4da   :  { %664 = vmatpush.msra.mxu3 %v3471_v38 }
 0x4dc   :  { %665 = vmatpush.msra.mxu3 %v3476_v39 }
 0x4dd   :  { %v446_v12 = vpop.permute.xlu2 %445 }
 0x4de   :  { %v451_v13 = vsel %vm187_vm9, %v446_v12, %v449_v11  ;;  %666 = vmatpush.msra.mxu3 %v3484_v41 }
 0x4df   :  { %2856 = vmatmul.msk.f32.vlgmr.msra.gmra.mxu1 %vm255_vm10, %v451_v13  ;;  %2860 = vmatmul.msk.f32.vlgmr.msrb.gmra.mxu3 %vm187_vm9, %v446_v12 }
 0x4e0   :  { %667 = vmatpush.msra.mxu3 %v3492_v43  ;;  %997 = vmatpush.msra.mxu1 %v3413_v0 }
 0x4e2   :  { %668 = vmatpush.msra.mxu3 %v3498_v44  ;;  %998 = vmatpush.msra.mxu1 %v3418_v1 }
 0x4e4   :  { %669 = vmatpush.msra.mxu3 %v3503_v45  ;;  %999 = vmatpush.msra.mxu1 %v3431_v4 }
 0x4e6   :  { %670 = vmatpush.msra.mxu3 %v3508_v46  ;;  %1000 = vmatpush.msra.mxu1 %v3439_v5 }
 0x4e8   :  { %933 = vmatpush.msrb.mxu3 %v3555_v57 }
 0x4ea   :  { %934 = vmatpush.msrb.mxu3 %v3557_v34 }
 0x4ec   :  { %935 = vmatpush.msrb.mxu3 %v3561_v59 }
 0x4ee   :  { %936 = vmatpush.msrb.mxu3 %v3566_v60 }
 0x4f0   :  { %937 = vmatpush.msrb.mxu3 %v3571_v61 }
 0x4f2   :  { %938 = vmatpush.msrb.mxu3 %v3576_v62 }
 0x4f4   :  { %939 = vmatpush.msrb.mxu3 %v3581_v63 }
 0x4f6   :  { %940 = vmatpush.msrb.mxu3 %v3591_v6 }
 0x55a   :  { %v342_v15 = vpop.f32.mrf.mxu3 }
 0x55b   :  { %v343_v16 = vadd.f32 %v3636_v14, %v342_v15 }
 0x55c   :  { %v472_v17 = vpop.f32.mrf.mxu1 }
 0x55d   :  { %v2853_v19 = vmul.f32 -1.442695, %v343_v16  ;;  %v473_v20 = vadd.f32 %v3533_v58, %v472_v17 }
 0x55f   :  { %2970 = vpow2.f32 %v2853_v19  ;;  %v2857_v21 = vmul.f32 -1.442695, %v473_v20 }
 0x561   :  { %2972 = vpow2.f32 %v2857_v21 }
 0x562   :  { %v602_v24 = vpop.f32.mrf.mxu3 }
 0x563   :  { %v605_v25 = vadd.f32 %v602_v24, %v170_v22 }
 0x565   :  { %v2971_v26 = vpop.eup %2970  ;;  %v2861_v27 = vmul.f32 -1.442695, %v605_v25 }
 0x566   :  { %v348_v28 = vadd.f32 1.0, %v2971_v26 }
 0x567   :  { %v2973_v29 = vpop.eup %2972  ;;  %2974 = vpow2.f32 %v2861_v27 }
 0x568   :  { %2976 = vrcp.f32 %v348_v28  ;;  %v478_v30 = vadd.f32 1.0, %v2973_v29  ;;  %v358_v48 = vand.u32 2147483647, %v348_v28  ;;  %v360_v49 = vand.u32 2147483648, %v348_v28 }
 0x569   :  { %vm354_vm7 = vweird.f32 %v348_v28 }
 0x56a   :  { %2978 = vrcp.f32 %v478_v30  ;;  %v490_v55 = vand.u32 2147483648, %v478_v30  ;;  %v488_v3 = vand.u32 2147483647, %v478_v30  ;;  %vm359_vm12 = vcmp.eq.f32.partialorder %v358_v48, 8.507059e+37 }
 0x56b   :  { %v361_v9 = vor.u32 1.1754944e-38, %v360_v49  ;;  %vm484_vm13 = vweird.f32 %v478_v30 }
 0x56c   :  { %vm489_vm15 = vcmp.eq.f32.partialorder %v488_v3, 8.507059e+37 }
 0x56d   :  { %v2975_v31 = vpop.eup %2974 }
 0x56e   :  { %v2977_v32 = vpop.eup %2976  ;;  %v609_v33 = vadd.f32 1.0, %v2975_v31 }
 0x56f   :  { %v350_v35 = vmul.f32 %v2977_v32, %v348_v28  ;;  %vm355_vm6 = vweird.f32 %v2977_v32 }
 0x570   :  { %v2979_v36 = vpop.eup %2978  ;;  %2980 = vrcp.f32 %v609_v33  ;;  %vm356_vm11 = vmor %vm354_vm7, %vm355_vm6  ;;  %v621_v22 = vand.u32 2147483648, %v609_v33  ;;  %v619_v27 = vand.u32 2147483647, %v609_v33  ;;  %vm615_vm3 = vweird.f32 %v609_v33 }
 0x571   :  { %v351_v40 = vsub.f32 1.0, %v350_v35  ;;  %v480_v42 = vmul.f32 %v2979_v36, %v478_v30  ;;  %2982 = vtanh.f32 %v343_v16  ;;  %vm485_vm8 = vweird.f32 %v2979_v36 }
 0x572   :  { %2984 = vtanh.f32 %v473_v20  ;;  %vm486_vm14 = vmor %vm484_vm13, %vm485_vm8  ;;  %v491_v16 = vor.u32 1.1754944e-38, %v490_v55  ;;  %v622_v29 = vor.u32 1.1754944e-38, %v621_v22  ;;  %vm620_vm6 = vcmp.eq.f32.partialorder %v619_v27, 8.507059e+37  ;;  %v109_v22 = vld [vmem:[%s4386_s0 + $0x18] sm:$0xff] }
 0x573   :  { %v352_v50 = vmul.f32 %v2977_v32, %v351_v40  ;;  %v481_v53 = vsub.f32 1.0, %v480_v42  ;;  %2986 = vtanh.f32 %v605_v25  ;;  %2844 = vmatmul.msk.f32.gmra.mxu0 %vm117_vm1, %v109_v22 }
 0x575   :  { %v353_v56 = vadd.f32 %v2977_v32, %v352_v50  ;;  %v482_v2 = vmul.f32 %v2979_v36, %v481_v53 }
 0x576   :  { %v2981_v8 = vpop.eup %2980 }
 0x577   :  { %v357_v10 = vsel %vm356_vm11, %v2977_v32, %v353_v56  ;;  %v483_v11 = vadd.f32 %v2979_v36, %v482_v2  ;;  %v611_v12 = vmul.f32 %v2981_v8, %v609_v33  ;;  %v2983_v13 = vpop.eup %2982  ;;  %vm616_vm2 = vweird.f32 %v2981_v8 }
 0x578   :  { %v362_v15 = vsel %vm359_vm12, %v361_v9, %v357_v10  ;;  %v2985_v20 = vpop.eup %2984  ;;  %vm617_vm4 = vmor %vm615_vm3, %vm616_vm2 }
 0x579   :  { %v365_v17 = vsel %vm3453_vm5, %v2983_v13, %v362_v15  ;;  %v487_v18 = vsel %vm486_vm14, %v2979_v36, %v483_v11  ;;  %v612_v19 = vsub.f32 1.0, %v611_v12  ;;  %v2987_v31 = vpop.eup %2986 }
 0x57a   :  { %368 = vrot.lane.b32.xlu1 %v365_v17, %s3330_s14  ;;  %v492_v21 = vsel %vm489_vm15, %v491_v16, %v487_v18  ;;  %v366_v56 = vmul.f32 0.0, %v365_v17 }
 0x57b   :  { %v495_v24 = vsel %vm3453_vm5, %v2985_v20, %v492_v21  ;;  %v613_v26 = vmul.f32 %v2981_v8, %v612_v19 }
 0x57c   :  { %498 = vrot.lane.b32.xlu2 %v495_v24, %s3330_s14  ;;  %v496_v49 = vmul.f32 %v495_v24, %v3544_v47 }
 0x57d   :  { %v614_v28 = vadd.f32 %v2981_v8, %v613_v26 }
 0x57f   :  { %v618_v30 = vsel %vm617_vm4, %v2981_v8, %v614_v28 }
 0x580   :  { %v623_v25 = vsel %vm620_vm6, %v622_v29, %v618_v30 }
 0x581   :  { %v626_v32 = vsel %vm3453_vm5, %v2987_v31, %v623_v25 }
 0x582   :  { %629 = vrot.lane.b32.xlu0 %v626_v32, %s3330_s14  ;;  %v627_v8 = vmul.f32 %v626_v32, %v3548_v52 }
 0x5d6   :  { %v499_v35 = vpop.permute.xlu2 %498 }
 0x5d7   :  { %v501_v36 = vmul.f32 %v499_v35, %v495_v24 }
 0x5d9   :  { %503 = vrot.lane.b32.xlu2 %v501_v36, %s3331_s15 }
 0x5ec   :  { %v369_v40 = vpop.permute.xlu1 %368 }
 0x5ed   :  { %v371_v42 = vmul.f32 %v369_v40, %v365_v17 }
 0x5ef   :  { %373 = vrot.lane.b32.xlu1 %v371_v42, %s3331_s15 }
 0x5f0   :  { %v172_v25 = vpop.f32.mrf.mxu0 }
 0x5f1   :  { %v173_v40 = vadd.f32 %v3450_v7, %v172_v25 }
 0x5f4   :  { %v630_v33 = vpop.permute.xlu0 %629 }
 0x5f5   :  { %v632_v48 = vmul.f32 %v630_v33, %v626_v32 }
 0x5f7   :  { %634 = vrot.lane.b32.xlu0 %v632_v48, %s3331_s15 }
 0x633   :  { %v504_v50 = vpop.permute.xlu2 %503 }
 0x634   :  { %v3654_v53 = vadd.f32 %v504_v50, %v496_v49 }
 0x636   :  { %2988 = vtanh.f32 %v3654_v53 }
 0x63c   :  { %v2989_v55 = vpop.eup %2988 }
 0x63d   :  { %509 = vrot.lane.b32.xlu2 %v2989_v55, %s3330_s14 }
 0x661   :  { %v374_v2 = vpop.permute.xlu1 %373 }
 0x662   :  { %v3658_v3 = vadd.f32 %v374_v2, %v366_v56 }
 0x664   :  { %2990 = vtanh.f32 %v3658_v3 }
 0x669   :  { %v635_v9 = vpop.permute.xlu0 %634 }
 0x66a   :  { %v2991_v10 = vpop.eup %2990  ;;  %v3662_v11 = vadd.f32 %v635_v9, %v627_v8 }
 0x66b   :  { %379 = vrot.lane.b32.xlu1 %v2991_v10, %s3330_s14 }
 0x66c   :  { %2992 = vtanh.f32 %v3662_v11 }
 0x672   :  { %v2993_v47 = vpop.eup %2992 }
 0x673   :  { %640 = vrot.lane.b32.xlu0 %v2993_v47, %s3330_s14 }
 0x697   :  { %v510_v12 = vpop.permute.xlu2 %509 }
 0x698   :  { %v512_v13 = vmul.f32 %v510_v12, %v495_v24 }
 0x69a   :  { %514 = vrot.lane.b32.xlu1 %v512_v13, %s3331_s15 }
 0x6a2   :  { %648 = vrot.lane.b32.xlu1 %v512_v13, %s3330_s14 }
 0x6dd   :  { %v380_v15 = vpop.permute.xlu1 %379 }
 0x6de   :  { %v382_v16 = vmul.f32 %v380_v15, %v365_v17 }
 0x6e0   :  { %518 = vrot.lane.b32.xlu2 %v382_v16, %s3330_s14 }
 0x6e5   :  { %v641_v52 = vpop.permute.xlu0 %640 }
 0x6e6   :  { %v643_v18 = vmul.f32 %v641_v52, %v626_v32 }
 0x6e8   :  { %645 = vrot.lane.b32.xlu0 %v643_v18, %s3331_s15 }
 0x70c   :  { %v515_v19 = vpop.permute.xlu1 %514 }
 0x714   :  { %v649_v17 = vpop.permute.xlu1 %648 }
 0x73a   :  { %v519_v20 = vpop.permute.xlu2 %518 }
 0x73b   :  { %v521_v21 = vsel %vm187_vm9, %v515_v19, %v519_v20 }
 0x73c   :  { %2858 = vmatmul.msk.f32.vlgmr.msra.gmra.mxu2 %vm255_vm10, %v521_v21 }
 0x73d   :  { %863 = vmatpush.msra.mxu2 %v3468_v37 }
 0x73f   :  { %864 = vmatpush.msra.mxu2 %v3471_v38 }
 0x741   :  { %865 = vmatpush.msra.mxu2 %v3476_v39 }
 0x743   :  { %866 = vmatpush.msra.mxu2 %v3484_v41 }
 0x745   :  { %867 = vmatpush.msra.mxu2 %v3492_v43 }
 0x747   :  { %868 = vmatpush.msra.mxu2 %v3498_v44 }
 0x749   :  { %869 = vmatpush.msra.mxu2 %v3503_v45 }
 0x74b   :  { %870 = vmatpush.msra.mxu2 %v3508_v46 }
 0x75a   :  { %v646_v24 = vpop.permute.xlu0 %645 }
 0x75b   :  { %v651_v26 = vsel %vm187_vm9, %v646_v24, %v649_v17  ;;  %2866 = vmatmul.msk.f32.vlgmr.msrb.gmra.mxu2 %vm187_vm9, %v646_v24 }
 0x75c   :  { %2862 = vmatmul.msk.f32.vlgmr.msra.gmra.mxu3 %vm255_vm10, %v651_v26  ;;  %1197 = vmatpush.msrb.mxu2 %v3413_v0 }
 0x75d   :  { %1263 = vmatpush.msra.mxu3 %v3468_v37 }
 0x75e   :  { %1198 = vmatpush.msrb.mxu2 %v3418_v1 }
 0x75f   :  { %1264 = vmatpush.msra.mxu3 %v3471_v38 }
 0x760   :  { %1199 = vmatpush.msrb.mxu2 %v3431_v4 }
 0x761   :  { %1265 = vmatpush.msra.mxu3 %v3476_v39 }
 0x762   :  { %1200 = vmatpush.msrb.mxu2 %v3439_v5 }
 0x763   :  { %1266 = vmatpush.msra.mxu3 %v3484_v41 }
 0x765   :  { %1267 = vmatpush.msra.mxu3 %v3492_v43 }
 0x767   :  { %1268 = vmatpush.msra.mxu3 %v3498_v44 }
 0x769   :  { %1269 = vmatpush.msra.mxu3 %v3503_v45 }
 0x76b   :  { %1270 = vmatpush.msra.mxu3 %v3508_v46 }
 0x7bf   :  { %v542_v0 = vpop.f32.mrf.mxu2 }
 0x7c0   :  { %v543_v1 = vadd.f32 %v3636_v14, %v542_v0 }
 0x7c2   :  { %v2859_v27 = vmul.f32 -1.442695, %v543_v1 }
 0x7c4   :  { %2994 = vpow2.f32 %v2859_v27 }
 0x7ca   :  { %v2995_v4 = vpop.eup %2994 }
 0x7cb   :  { %v548_v28 = vadd.f32 1.0, %v2995_v4 }
 0x7cd   :  { %2996 = vrcp.f32 %v548_v28  ;;  %v560_v31 = vand.u32 2147483648, %v548_v28  ;;  %v558_v35 = vand.u32 2147483647, %v548_v28  ;;  %vm554_vm8 = vweird.f32 %v548_v28 }
 0x7ce   :  { %2998 = vtanh.f32 %v543_v1 }
 0x7cf   :  { %v561_v42 = vor.u32 1.1754944e-38, %v560_v31  ;;  %vm559_vm12 = vcmp.eq.f32.partialorder %v558_v35, 8.507059e+37 }
 0x7d3   :  { %v2997_v29 = vpop.eup %2996 }
 0x7d4   :  { %v550_v5 = vmul.f32 %v2997_v29, %v548_v28  ;;  %vm555_vm7 = vweird.f32 %v2997_v29  ;;  %v2999_v48 = vpop.eup %2998 }
 0x7d5   :  { %vm556_vm11 = vmor %vm554_vm8, %vm555_vm7 }
 0x7d6   :  { %v551_v30 = vsub.f32 1.0, %v550_v5 }
 0x7d8   :  { %v552_v32 = vmul.f32 %v2997_v29, %v551_v30 }
 0x7da   :  { %v553_v36 = vadd.f32 %v2997_v29, %v552_v32 }
 0x7dc   :  { %v557_v33 = vsel %vm556_vm11, %v2997_v29, %v553_v36 }
 0x7dd   :  { %v562_v49 = vsel %vm559_vm12, %v561_v42, %v557_v33 }
 0x7de   :  { %v802_v50 = vpop.f32.mrf.mxu2  ;;  %v3704_v55 = vsel %vm3453_vm5, %v2999_v48, %v562_v49 }
 0x7df   :  { %v805_v56 = vadd.f32 %v802_v50, %v173_v40  ;;  %v672_v2 = vpop.f32.mrf.mxu3  ;;  %568 = vrot.lane.b32.xlu2 %v3704_v55, %s3330_s14 }
 0x7e0   :  { %v673_v8 = vadd.f32 %v3533_v58, %v672_v2 }
 0x7e1   :  { %v2867_v9 = vmul.f32 -1.442695, %v805_v56 }
 0x7e2   :  { %v2863_v7 = vmul.f32 -1.442695, %v673_v8 }
 0x7e3   :  { %3000 = vpow2.f32 %v2867_v9 }
 0x7e4   :  { %3002 = vpow2.f32 %v2863_v7 }
 0x7e9   :  { %v3001_v10 = vpop.eup %3000 }
 0x7ea   :  { %v3003_v47 = vpop.eup %3002  ;;  %v809_v12 = vadd.f32 1.0, %v3001_v10 }
 0x7eb   :  { %v678_v13 = vadd.f32 1.0, %v3003_v47 }
 0x7ec   :  { %3004 = vrcp.f32 %v809_v12  ;;  %v821_v20 = vand.u32 2147483648, %v809_v12  ;;  %v819_v17 = vand.u32 2147483647, %v809_v12  ;;  %vm815_vm15 = vweird.f32 %v809_v12 }
 0x7ed   :  { %3006 = vrcp.f32 %v678_v13  ;;  %v690_v24 = vand.u32 2147483648, %v678_v13  ;;  %v688_v0 = vand.u32 2147483647, %v678_v13  ;;  %vm684_vm3 = vweird.f32 %v678_v13 }
 0x7ee   :  { %3008 = vtanh.f32 %v805_v56  ;;  %v822_v27 = vor.u32 1.1754944e-38, %v821_v20  ;;  %vm820_vm4 = vcmp.eq.f32.partialorder %v819_v17, 8.507059e+37  ;;  %v566_v56 = vmul.f32 %v3704_v55, %v3658_v3 }
 0x7ef   :  { %3010 = vtanh.f32 %v673_v8  ;;  %v691_v5 = vor.u32 1.1754944e-38, %v690_v24  ;;  %vm689_vm7 = vcmp.eq.f32.partialorder %v688_v0, 8.507059e+37 }
 0x7f2   :  { %v3005_v15 = vpop.eup %3004 }
 0x7f3   :  { %v3007_v16 = vpop.eup %3006  ;;  %v811_v52 = vmul.f32 %v3005_v15, %v809_v12  ;;  %vm816_vm13 = vweird.f32 %v3005_v15 }
 0x7f4   :  { %v680_v18 = vmul.f32 %v3007_v16, %v678_v13  ;;  %vm685_vm14 = vweird.f32 %v3007_v16  ;;  %vm817_vm2 = vmor %vm815_vm15, %vm816_vm13  ;;  %v3009_v28 = vpop.eup %3008 }
 0x7f5   :  { %v812_v19 = vsub.f32 1.0, %v811_v52  ;;  %vm686_vm6 = vmor %vm684_vm3, %vm685_vm14  ;;  %v3011_v30 = vpop.eup %3010 }
 0x7f6   :  { %v681_v21 = vsub.f32 1.0, %v680_v18 }
 0x7f7   :  { %v813_v22 = vmul.f32 %v3005_v15, %v812_v19 }
 0x7f8   :  { %v682_v26 = vmul.f32 %v3007_v16, %v681_v21  ;;  %v110_v21 = vld [vmem:[%s4386_s0 + $0x20] sm:$0xff] }
 0x7f9   :  { %v814_v1 = vadd.f32 %v3005_v15, %v813_v22  ;;  %2845 = vmatmul.msk.f32.gmra.mxu0 %vm117_vm1, %v110_v21 }
 0x7fa   :  { %v683_v4 = vadd.f32 %v3007_v16, %v682_v26 }
 0x7fb   :  { %v818_v29 = vsel %vm817_vm2, %v3005_v15, %v814_v1 }
 0x7fc   :  { %v823_v31 = vsel %vm820_vm4, %v822_v27, %v818_v29  ;;  %v687_v25 = vsel %vm686_vm6, %v3007_v16, %v683_v4 }
 0x7fd   :  { %v826_v32 = vsel %vm3453_vm5, %v3009_v28, %v823_v31  ;;  %v692_v35 = vsel %vm689_vm7, %v691_v5, %v687_v25 }
 0x7fe   :  { %829 = vrot.lane.b32.xlu1 %v826_v32, %s3330_s14  ;;  %v695_v36 = vsel %vm3453_vm5, %v3011_v30, %v692_v35  ;;  %v827_v7 = vmul.f32 %v826_v32, %v3662_v11 }
 0x7ff   :  { %698 = vrot.lane.b32.xlu0 %v695_v36, %s3330_s14  ;;  %v696_v47 = vmul.f32 %v695_v36, %v3654_v53 }
 0x839   :  { %v569_v40 = vpop.permute.xlu2 %568 }
 0x83a   :  { %v571_v42 = vmul.f32 %v569_v40, %v3704_v55 }
 0x83c   :  { %573 = vrot.lane.b32.xlu2 %v571_v42, %s3331_s15 }
 0x870   :  { %v830_v33 = vpop.permute.xlu1 %829 }
 0x871   :  { %v832_v48 = vmul.f32 %v830_v33, %v826_v32  ;;  %v699_v49 = vpop.permute.xlu0 %698 }
 0x872   :  { %v701_v50 = vmul.f32 %v699_v49, %v695_v36 }
 0x873   :  { %834 = vrot.lane.b32.xlu1 %v832_v48, %s3331_s15 }
 0x874   :  { %703 = vrot.lane.b32.xlu0 %v701_v50, %s3331_s15 }
 0x876   :  { %v175_v1 = vpop.f32.mrf.mxu0 }
 0x896   :  { %v574_v2 = vpop.permute.xlu2 %573 }
 0x897   :  { %v3721_v8 = vadd.f32 %v574_v2, %v566_v56 }
 0x899   :  { %3012 = vtanh.f32 %v3721_v8 }
 0x89f   :  { %v3013_v9 = vpop.eup %3012 }
 0x8a0   :  { %579 = vrot.lane.b32.xlu2 %v3013_v9, %s3330_s14 }
 0x8e5   :  { %v835_v10 = vpop.permute.xlu1 %834 }
 0x8e6   :  { %v3727_v12 = vadd.f32 %v835_v10, %v827_v7  ;;  %v704_v13 = vpop.permute.xlu0 %703 }
 0x8e7   :  { %v3729_v15 = vadd.f32 %v704_v13, %v696_v47 }
 0x8e8   :  { %3014 = vtanh.f32 %v3727_v12 }
 0x8e9   :  { %3016 = vtanh.f32 %v3729_v15 }
 0x8ee   :  { %v3015_v3 = vpop.eup %3014 }
 0x8ef   :  { %v3017_v16 = vpop.eup %3016  ;;  %840 = vrot.lane.b32.xlu1 %v3015_v3, %s3330_s14 }
 0x8f0   :  { %709 = vrot.lane.b32.xlu0 %v3017_v16, %s3330_s14 }
 0x8fa   :  { %v580_v52 = vpop.permute.xlu2 %579 }
 0x8fb   :  { %v582_v11 = vmul.f32 %v580_v52, %v3704_v55 }
 0x8fd   :  { %718 = vrot.lane.b32.xlu0 %v582_v11, %s3330_s14 }
 0x961   :  { %v841_v53 = vpop.permute.xlu1 %840 }
 0x962   :  { %v843_v18 = vmul.f32 %v841_v53, %v826_v32  ;;  %v710_v19 = vpop.permute.xlu0 %709 }
 0x963   :  { %v712_v20 = vmul.f32 %v710_v19, %v695_v36 }
 0x964   :  { %845 = vrot.lane.b32.xlu1 %v843_v18, %s3331_s15 }
 0x965   :  { %714 = vrot.lane.b32.xlu2 %v712_v20, %s3331_s15 }
 0x96d   :  { %848 = vrot.lane.b32.xlu2 %v712_v20, %s3330_s14 }
 0x96f   :  { %v719_v22 = vpop.permute.xlu0 %718 }
 0x9bf   :  { %v715_v55 = vpop.permute.xlu2 %714 }
 0x9c0   :  { %v721_v17 = vsel %vm187_vm9, %v715_v55, %v719_v22 }
 0x9c1   :  { %2864 = vmatmul.msk.f32.vlgmr.msrb.gmra.mxu1 %vm255_vm10, %v721_v17 }
 0x9c2   :  { %1133 = vmatpush.msrb.mxu1 %v3555_v57 }
 0x9c4   :  { %1134 = vmatpush.msrb.mxu1 %v3557_v34 }
 0x9c6   :  { %1135 = vmatpush.msrb.mxu1 %v3561_v59 }
 0x9c7   :  { %v849_v24 = vpop.permute.xlu2 %848 }
 0x9c8   :  { %1136 = vmatpush.msrb.mxu1 %v3566_v60 }
 0x9ca   :  { %1137 = vmatpush.msrb.mxu1 %v3571_v61 }
 0x9cc   :  { %1138 = vmatpush.msrb.mxu1 %v3576_v62 }
 0x9ce   :  { %1139 = vmatpush.msrb.mxu1 %v3581_v63 }
 0x9d0   :  { %1140 = vmatpush.msrb.mxu1 %v3591_v6 }
 0x9d6   :  { %v846_v26 = vpop.permute.xlu1 %845 }
 0x9d7   :  { %v851_v0 = vsel %vm187_vm9, %v846_v26, %v849_v24  ;;  %2872 = vmatmul.msk.f32.vlgmr.msra.gmra.mxu1 %vm187_vm9, %v846_v26 }
 0x9d8   :  { %2868 = vmatmul.msk.f32.vlgmr.msra.gmra.mxu2 %vm255_vm10, %v851_v0  ;;  %1463 = vmatpush.msra.mxu1 %v3468_v37 }
 0x9d9   :  { %1333 = vmatpush.msra.mxu2 %v3555_v57 }
 0x9da   :  { %1464 = vmatpush.msra.mxu1 %v3471_v38 }
 0x9db   :  { %1334 = vmatpush.msra.mxu2 %v3557_v34 }
 0x9dc   :  { %1465 = vmatpush.msra.mxu1 %v3476_v39 }
 0x9dd   :  { %1335 = vmatpush.msra.mxu2 %v3561_v59 }
 0x9de   :  { %1466 = vmatpush.msra.mxu1 %v3484_v41 }
 0x9df   :  { %1336 = vmatpush.msra.mxu2 %v3566_v60 }
 0x9e0   :  { %1467 = vmatpush.msra.mxu1 %v3492_v43 }
 0x9e1   :  { %1337 = vmatpush.msra.mxu2 %v3571_v61 }
 0x9e2   :  { %1468 = vmatpush.msra.mxu1 %v3498_v44  ;;  %v3777_v44 = vld [vmem:[%s4392_s6] ss:$0 sm:$0xff] }
 0x9e3   :  { %1338 = vmatpush.msra.mxu2 %v3576_v62 }
 0x9e4   :  { %1469 = vmatpush.msra.mxu1 %v3503_v45  ;;  %v176_v45 = vadd.f32 %v3777_v44, %v175_v1 }
 0x9e5   :  { %1339 = vmatpush.msra.mxu2 %v3581_v63 }
 0x9e6   :  { %1470 = vmatpush.msra.mxu1 %v3508_v46 }
 0x9e7   :  { %1340 = vmatpush.msra.mxu2 %v3591_v6 }
 0xa3e   :  { %v742_v37 = vpop.f32.mrf.mxu1 }
 0xa3f   :  { %v743_v38 = vadd.f32 %v3636_v14, %v742_v37 }
 0xa41   :  { %v2865_v39 = vmul.f32 -1.442695, %v743_v38 }
 0xa43   :  { %3018 = vpow2.f32 %v2865_v39 }
 0xa49   :  { %v3019_v41 = vpop.eup %3018 }
 0xa4a   :  { %v748_v43 = vadd.f32 1.0, %v3019_v41 }
 0xa4c   :  { %3020 = vrcp.f32 %v748_v43  ;;  %v760_v5 = vand.u32 2147483648, %v748_v43  ;;  %v758_v25 = vand.u32 2147483647, %v748_v43  ;;  %vm754_vm11 = vweird.f32 %v748_v43 }
 0xa4d   :  { %3022 = vtanh.f32 %v743_v38 }
 0xa4e   :  { %v761_v35 = vor.u32 1.1754944e-38, %v760_v5  ;;  %vm759_vm13 = vcmp.eq.f32.partialorder %v758_v25, 8.507059e+37 }
 0xa52   :  { %v3021_v27 = vpop.eup %3020 }
 0xa53   :  { %v750_v46 = vmul.f32 %v3021_v27, %v748_v43  ;;  %vm755_vm8 = vweird.f32 %v3021_v27  ;;  %v3023_v42 = vpop.eup %3022 }
 0xa54   :  { %v1002_v4 = vpop.f32.mrf.mxu1  ;;  %vm756_vm12 = vmor %vm754_vm11, %vm755_vm8 }
 0xa55   :  { %v1005_v28 = vadd.f32 %v1002_v4, %v176_v45  ;;  %v751_v29 = vsub.f32 1.0, %v750_v46 }
 0xa57   :  { %v2873_v30 = vmul.f32 -1.442695, %v1005_v28  ;;  %v752_v31 = vmul.f32 %v3021_v27, %v751_v29 }
 0xa59   :  { %3024 = vpow2.f32 %v2873_v30  ;;  %v753_v32 = vadd.f32 %v3021_v27, %v752_v31 }
 0xa5b   :  { %v872_v36 = vpop.f32.mrf.mxu2  ;;  %v757_v40 = vsel %vm756_vm12, %v3021_v27, %v753_v32 }
 0xa5c   :  { %v873_v33 = vadd.f32 %v3533_v58, %v872_v36  ;;  %v762_v48 = vsel %vm759_vm13, %v761_v35, %v757_v40 }
 0xa5d   :  { %v3783_v49 = vsel %vm3453_vm5, %v3023_v42, %v762_v48 }
 0xa5e   :  { %v2869_v50 = vmul.f32 -1.442695, %v873_v33  ;;  %768 = vrot.lane.b32.xlu1 %v3783_v49, %s3330_s14  ;;  %v766_v25 = vmul.f32 %v3783_v49, %v3721_v8 }
 0xa5f   :  { %v3025_v56 = vpop.eup %3024 }
 0xa60   :  { %v1009_v2 = vadd.f32 1.0, %v3025_v56  ;;  %3026 = vpow2.f32 %v2869_v50 }
 0xa62   :  { %3028 = vrcp.f32 %v1009_v2  ;;  %v1021_v58 = vand.u32 2147483648, %v1009_v2  ;;  %v1019_v16 = vand.u32 2147483647, %v1009_v2  ;;  %vm1015_vm15 = vweird.f32 %v1009_v2 }
 0xa64   :  { %v1022_v53 = vor.u32 1.1754944e-38, %v1021_v58  ;;  %vm1020_vm3 = vcmp.eq.f32.partialorder %v1019_v16, 8.507059e+37  ;;  %v3258_v58 = vld [vmem:[%s4390_s4 + $0x10] sm:$0xff]  ;;  %v3260_v16 = vld [vmem:[%s4390_s4 + $0x8] sm:$0xff] }
 0xa66   :  { %v3027_v9 = vpop.eup %3026 }
 0xa67   :  { %v878_v7 = vadd.f32 1.0, %v3027_v9 }
 0xa68   :  { %v3029_v10 = vpop.eup %3028 }
 0xa69   :  { %3030 = vrcp.f32 %v878_v7  ;;  %v1011_v47 = vmul.f32 %v3029_v10, %v1009_v2  ;;  %vm1016_vm14 = vweird.f32 %v3029_v10  ;;  %v890_v17 = vand.u32 2147483648, %v878_v7 }
 0xa6a   :  { %3032 = vtanh.f32 %v1005_v28  ;;  %vm1017_vm2 = vmor %vm1015_vm15, %vm1016_vm14  ;;  %v888_v26 = vand.u32 2147483647, %v878_v7  ;;  %vm884_vm6 = vweird.f32 %v878_v7 }
 0xa6b   :  { %v1012_v13 = vsub.f32 1.0, %v1011_v47  ;;  %3034 = vtanh.f32 %v873_v33  ;;  %v891_v37 = vor.u32 1.1754944e-38, %v890_v17 }
 0xa6c   :  { %vm889_vm8 = vcmp.eq.f32.partialorder %v888_v26, 8.507059e+37 }
 0xa6d   :  { %v1013_v3 = vmul.f32 %v3029_v10, %v1012_v13  ;;  %v3257_v13 = vld [vmem:[#allocation2 + $0x10] sm:$0xff] }
 0xa6f   :  { %v3031_v52 = vpop.eup %3030  ;;  %v1014_v11 = vadd.f32 %v3029_v10, %v1013_v3  ;;  %v3259_v3 = vld [vmem:[#allocation2 + $0x8] sm:$0xff] }
 0xa70   :  { %v880_v18 = vmul.f32 %v3031_v52, %v878_v7  ;;  %v3033_v20 = vpop.eup %3032  ;;  %vm885_vm4 = vweird.f32 %v3031_v52 }
 0xa71   :  { %v1018_v19 = vsel %vm1017_vm2, %v3029_v10, %v1014_v11  ;;  %vm886_vm7 = vmor %vm884_vm6, %vm885_vm4  ;;  %v3035_v39 = vpop.eup %3034  ;;  %v3262_v11 = vld [vmem:[%s4390_s4] sm:$0xff] }
 0xa72   :  { %v1023_v21 = vsel %vm1020_vm3, %v1022_v53, %v1018_v19  ;;  %v881_v22 = vsub.f32 1.0, %v880_v18 }
 0xa73   :  { %v1026_v55 = vsel %vm3453_vm5, %v3033_v20, %v1023_v21 }
 0xa74   :  { %1029 = vrot.lane.b32.xlu0 %v1026_v55, %s3330_s14  ;;  %v882_v24 = vmul.f32 %v3031_v52, %v881_v22 }
 0xa76   :  { %v883_v0 = vadd.f32 %v3031_v52, %v882_v24 }
 0xa78   :  { %v887_v38 = vsel %vm886_vm7, %v3031_v52, %v883_v0  ;;  %v3261_v52 = vld [vmem:[#allocation2] sm:$0xff] }
 0xa79   :  { %v892_v41 = vsel %vm889_vm8, %v891_v37, %v887_v38 }
 0xa7a   :  { %v895_v43 = vsel %vm3453_vm5, %v3035_v39, %v892_v41 }
 0xa7b   :  { %898 = vrot.lane.b32.xlu2 %v895_v43, %s3330_s14  ;;  %v896_v29 = vmul.f32 %v895_v43, %v3729_v15  ;;  %v1027_v15 = vmul.f32 %v1026_v55, %v3727_v12 }
 0xad0   :  { %v769_v1 = vpop.permute.xlu1 %768 }
 0xad1   :  { %v771_v45 = vmul.f32 %v769_v1, %v3783_v49 }
 0xad3   :  { %773 = vrot.lane.b32.xlu1 %v771_v45, %s3331_s15 }
 0xad5   :  { %v899_v27 = vpop.permute.xlu2 %898 }
 0xad6   :  { %v901_v46 = vmul.f32 %v899_v27, %v895_v43 }
 0xad8   :  { %903 = vrot.lane.b32.xlu2 %v901_v46, %s3331_s15 }
 0xae6   :  { %v1030_v4 = vpop.permute.xlu0 %1029 }
 0xae7   :  { %v1032_v28 = vmul.f32 %v1030_v4, %v1026_v55 }
 0xae9   :  { %1034 = vrot.lane.b32.xlu0 %v1032_v28, %s3331_s15 }
 0xb32   :  { %v904_v5 = vpop.permute.xlu2 %903 }
 0xb33   :  { %v3798_v30 = vadd.f32 %v904_v5, %v896_v29  ;;  %v3858_v29 = vld [vmem:[%s4392_s6 + $0x1] ss:$0 sm:$0xff] }
 0xb35   :  { %3036 = vtanh.f32 %v3798_v30 }
 0xb3b   :  { %v3037_v31 = vpop.eup %3036 }
 0xb3c   :  { %909 = vrot.lane.b32.xlu2 %v3037_v31, %s3330_s14 }
 0xb45   :  { %v774_v32 = vpop.permute.xlu1 %773 }
 0xb46   :  { %v3804_v35 = vadd.f32 %v774_v32, %v766_v25 }
 0xb48   :  { %3038 = vtanh.f32 %v3804_v35 }
 0xb4e   :  { %v3039_v36 = vpop.eup %3038 }
 0xb4f   :  { %779 = vrot.lane.b32.xlu1 %v3039_v36, %s3330_s14 }
 0xb5b   :  { %v1035_v40 = vpop.permute.xlu0 %1034 }
 0xb5c   :  { %v3809_v42 = vadd.f32 %v1035_v40, %v1027_v15 }
 0xb5e   :  { %3040 = vtanh.f32 %v3809_v42 }
 0xb64   :  { %v3041_v33 = vpop.eup %3040 }
 0xb65   :  { %1040 = vrot.lane.b32.xlu0 %v3041_v33, %s3330_s14 }
 0xb96   :  { %v910_v48 = vpop.permute.xlu2 %909 }
 0xb97   :  { %v912_v8 = vmul.f32 %v910_v48, %v895_v43 }
 0xb99   :  { %914 = vrot.lane.b32.xlu1 %v912_v8, %s3331_s15 }
 0xbc1   :  { %v780_v50 = vpop.permute.xlu1 %779 }
 0xbc2   :  { %v782_v56 = vmul.f32 %v780_v50, %v3783_v49  ;;  %v111_v49 = vld [vmem:[%s4386_s0 + $0x28] sm:$0xff]  ;;  %s3332_s0 = smov 1  }
 0xbc3   :  { %2846 = vmatmul.msk.f32.gmra.mxu0 %vm117_vm1, %v111_v49 }
 0xbc4   :  { %918 = vrot.lane.b32.xlu2 %v782_v56, %s3330_s14 }
 0xbd7   :  { %v1041_v2 = vpop.permute.xlu0 %1040 }
 0xbd8   :  { %v1043_v9 = vmul.f32 %v1041_v2, %v1026_v55 }
 0xbda   :  { %1045 = vrot.lane.b32.xlu0 %v1043_v9, %s3331_s15 }
 0xbe2   :  { %1048 = vrot.lane.b32.xlu0 %v912_v8, %s3330_s14 }
 0xc0b   :  { %v915_v12 = vpop.permute.xlu1 %914 }
 0xc1e   :  { %v919_v7 = vpop.permute.xlu2 %918 }
 0xc1f   :  { %v921_v10 = vsel %vm187_vm9, %v915_v12, %v919_v7 }
 0xc20   :  { %2870 = vmatmul.msk.f32.vlgmr.msrb.gmra.mxu3 %vm255_vm10, %v921_v10 }
 0xc21   :  { %1533 = vmatpush.msrb.mxu3 %v3555_v57 }
 0xc23   :  { %1534 = vmatpush.msrb.mxu3 %v3557_v34  ;;  %v3251_v34 = vld [vmem:[#allocation2 + $0x38] sm:$0xff] }
 0xc25   :  { %1535 = vmatpush.msrb.mxu3 %v3561_v59  ;;  %v3252_v59 = vld [vmem:[#allocation2 + $0x30] sm:$0xff] }
 0xc27   :  { %1536 = vmatpush.msrb.mxu3 %v3566_v60  ;;  %v3253_v60 = vld [vmem:[#allocation2 + $0x28] sm:$0xff] }
 0xc29   :  { %1537 = vmatpush.msrb.mxu3 %v3571_v61 }
 0xc2b   :  { %1538 = vmatpush.msrb.mxu3 %v3576_v62  ;;  %v3254_v62 = vld [vmem:[#allocation2 + $0x20] sm:$0xff] }
 0xc2d   :  { %1539 = vmatpush.msrb.mxu3 %v3581_v63  ;;  %v3255_v63 = vld [vmem:[#allocation2 + $0x18] sm:$0xff] }
 0xc2f   :  { %1540 = vmatpush.msrb.mxu3 %v3591_v6  ;;  %v3256_v6 = vld [vmem:[%s4390_s4 + $0x18] sm:$0xff] }
 0xc40   :  { %v178_v1 = vpop.f32.mrf.mxu0 }
 0xc41   :  { %v179_v45 = vadd.f32 %v3777_v44, %v178_v1 }
 0xc4c   :  { %v1046_v57 = vpop.permute.xlu0 %1045 }
 0xc4d   :  { %2878 = vmatmul.msk.f32.vlgmr.msrb.gmra.mxu2 %vm187_vm9, %v1046_v57 }
 0xc4e   :  { %1663 = vmatpush.msrb.mxu2 %v3251_v34 }
 0xc50   :  { %1664 = vmatpush.msrb.mxu2 %v3252_v59 }
 0xc52   :  { %1665 = vmatpush.msrb.mxu2 %v3253_v60 }
 0xc54   :  { %v1049_v61 = vpop.permute.xlu0 %1048  ;;  %1666 = vmatpush.msrb.mxu2 %v3254_v62 }
 0xc55   :  { %v1051_v47 = vsel %vm187_vm9, %v1046_v57, %v1049_v61 }
 0xc56   :  { %2874 = vmatmul.msk.f32.vlgmr.msrb.gmra.mxu0 %vm255_vm10, %v1051_v47  ;;  %1667 = vmatpush.msrb.mxu2 %v3255_v63 }
 0xc57   :  { %1597 = vmatpush.msrb.mxu0 %v3256_v6 }
 0xc58   :  { %1668 = vmatpush.msrb.mxu2 %v3257_v13 }
 0xc59   :  { %1598 = vmatpush.msrb.mxu0 %v3258_v58 }
 0xc5a   :  { %1669 = vmatpush.msrb.mxu2 %v3259_v3 }
 0xc5b   :  { %1599 = vmatpush.msrb.mxu0 %v3260_v16 }
 0xc5c   :  { %1670 = vmatpush.msrb.mxu2 %v3261_v52 }
 0xc5d   :  { %1600 = vmatpush.msrb.mxu0 %v3262_v11 }
 0xca3   :  { %v942_v53 = vpop.f32.mrf.mxu3 }
 0xca4   :  { %v943_v18 = vadd.f32 %v3636_v14, %v942_v53 }
 0xca6   :  { %v2871_v19 = vmul.f32 -1.442695, %v943_v18 }
 0xca8   :  { %3042 = vpow2.f32 %v2871_v19 }
 0xcae   :  { %v3043_v20 = vpop.eup %3042 }
 0xcaf   :  { %v948_v21 = vadd.f32 1.0, %v3043_v20 }
 0xcb1   :  { %3044 = vrcp.f32 %v948_v21  ;;  %v960_v24 = vand.u32 2147483648, %v948_v21  ;;  %v958_v0 = vand.u32 2147483647, %v948_v21  ;;  %vm954_vm12 = vweird.f32 %v948_v21 }
 0xcb2   :  { %3046 = vtanh.f32 %v943_v18 }
 0xcb3   :  { %v961_v38 = vor.u32 1.1754944e-38, %v960_v24  ;;  %vm959_vm14 = vcmp.eq.f32.partialorder %v958_v0, 8.507059e+37 }
 0xcb7   :  { %v3045_v22 = vpop.eup %3044 }
 0xcb8   :  { %v950_v55 = vmul.f32 %v3045_v22, %v948_v21  ;;  %vm955_vm11 = vweird.f32 %v3045_v22  ;;  %v3047_v14 = vpop.eup %3046 }
 0xcb9   :  { %vm956_vm13 = vmor %vm954_vm12, %vm955_vm11 }
 0xcba   :  { %v951_v17 = vsub.f32 1.0, %v950_v55 }
 0xcbc   :  { %v952_v26 = vmul.f32 %v3045_v22, %v951_v17 }
 0xcbe   :  { %v953_v37 = vadd.f32 %v3045_v22, %v952_v26 }
 0xcc0   :  { %v957_v39 = vsel %vm956_vm13, %v3045_v22, %v953_v37 }
 0xcc1   :  { %v962_v41 = vsel %vm959_vm14, %v961_v38, %v957_v39 }
 0xcc2   :  { %v3850_v43 = vsel %vm3453_vm5, %v3047_v14, %v962_v41 }
 0xcc3   :  { %968 = vrot.lane.b32.xlu0 %v3850_v43, %s3330_s14  ;;  %v966_v55 = vmul.f32 %v3850_v43, %v3804_v35 }
 0xcd0   :  { %v1202_v27 = vpop.f32.mrf.mxu2 }
 0xcd1   :  { %v1205_v46 = vadd.f32 %v1202_v27, %v179_v45 }
 0xcd3   :  { %v2879_v4 = vmul.f32 -1.442695, %v1205_v46  ;;  %v1072_v28 = vpop.f32.mrf.mxu0 }
 0xcd4   :  { %v1073_v5 = vadd.f32 %v3858_v29, %v1072_v28  ;;  %v3266_v28 = vld [vmem:[#allocation2 + $0x68] sm:$0xff] }
 0xcd5   :  { %3048 = vpow2.f32 %v2879_v4  ;;  %v3265_v4 = vld [vmem:[#allocation2 + $0x70] sm:$0xff] }
 0xcd6   :  { %v2875_v31 = vmul.f32 -1.442695, %v1073_v5 }
 0xcd8   :  { %3050 = vpow2.f32 %v2875_v31  ;;  %v3269_v31 = vld [vmem:[#allocation2 + $0x50] sm:$0xff] }
 0xcdb   :  { %v3049_v25 = vpop.eup %3048 }
 0xcdc   :  { %v1209_v32 = vadd.f32 1.0, %v3049_v25  ;;  %v3270_v25 = vld [vmem:[#allocation2 + $0x48] sm:$0xff] }
 0xcde   :  { %v3051_v36 = vpop.eup %3050  ;;  %3052 = vrcp.f32 %v1209_v32  ;;  %v1221_v50 = vand.u32 2147483648, %v1209_v32  ;;  %v1219_v9 = vand.u32 2147483647, %v1209_v32  ;;  %vm1215_vm2 = vweird.f32 %v1209_v32 }
 0xcdf   :  { %v1078_v15 = vadd.f32 1.0, %v3051_v36 }
 0xce0   :  { %v1222_v49 = vor.u32 1.1754944e-38, %v1221_v50  ;;  %vm1220_vm6 = vcmp.eq.f32.partialorder %v1219_v9, 8.507059e+37 }
 0xce1   :  { %3054 = vrcp.f32 %v1078_v15  ;;  %v1090_v10 = vand.u32 2147483648, %v1078_v15  ;;  %v1088_v34 = vand.u32 2147483647, %v1078_v15  ;;  %vm1084_vm7 = vweird.f32 %v1078_v15 }
 0xce2   :  { %3056 = vtanh.f32 %v1205_v46  ;;  %v3264_v46 = vld [vmem:[#allocation2 + $0x78] sm:$0xff] }
 0xce3   :  { %3058 = vtanh.f32 %v1073_v5  ;;  %v1091_v63 = vor.u32 1.1754944e-38, %v1090_v10  ;;  %vm1089_vm11 = vcmp.eq.f32.partialorder %v1088_v34, 8.507059e+37  ;;  %v3267_v5 = vld [vmem:[#allocation2 + $0x60] sm:$0xff] }
 0xce4   :  { %v3053_v40 = vpop.eup %3052 }
 0xce5   :  { %v1211_v33 = vmul.f32 %v3053_v40, %v1209_v32  ;;  %vm1216_vm15 = vweird.f32 %v3053_v40  ;;  %v3271_v32 = vld [vmem:[#allocation2 + $0x40] sm:$0xff] }
 0xce6   :  { %vm1217_vm3 = vmor %vm1215_vm2, %vm1216_vm15 }
 0xce7   :  { %v3055_v48 = vpop.eup %3054  ;;  %v1212_v8 = vsub.f32 1.0, %v1211_v33 }
 0xce8   :  { %v1080_v56 = vmul.f32 %v3055_v48, %v1078_v15  ;;  %vm1085_vm4 = vweird.f32 %v3055_v48  ;;  %v3057_v60 = vpop.eup %3056 }
 0xce9   :  { %v1213_v2 = vmul.f32 %v3053_v40, %v1212_v8  ;;  %vm1086_vm8 = vmor %vm1084_vm7, %vm1085_vm4  ;;  %v3059_v13 = vpop.eup %3058  ;;  %v182_v8 = vadd.f32 %v3777_v44, %v3525_v51 }
 0xcea   :  { %v1081_v12 = vsub.f32 1.0, %v1080_v56 }
 0xceb   :  { %v1214_v7 = vadd.f32 %v3053_v40, %v1213_v2 }
 0xcec   :  { %v1082_v57 = vmul.f32 %v3055_v48, %v1081_v12 }
 0xced   :  { %v1218_v59 = vsel %vm1217_vm3, %v3053_v40, %v1214_v7 }
 0xcee   :  { %v1223_v61 = vsel %vm1220_vm6, %v1222_v49, %v1218_v59  ;;  %v1083_v62 = vadd.f32 %v3055_v48, %v1082_v57 }
 0xcef   :  { %v1226_v47 = vsel %vm3453_vm5, %v3057_v60, %v1223_v61 }
 0xcf0   :  { %1229 = vrot.lane.b32.xlu2 %v1226_v47, %s3330_s14  ;;  %v1087_v6 = vsel %vm1086_vm8, %v3055_v48, %v1083_v62  ;;  %v1227_v20 = vmul.f32 %v1226_v47, %v3809_v42 }
 0xcf1   :  { %v1092_v58 = vsel %vm1089_vm11, %v1091_v63, %v1087_v6 }
 0xcf2   :  { %v1095_v3 = vsel %vm3453_vm5, %v3059_v13, %v1092_v58 }
 0xcf3   :  { %1098 = vrot.lane.b32.xlu1 %v1095_v3, %s3330_s14  ;;  %v1096_v42 = vmul.f32 %v1095_v3, %v3798_v30 }
 0xd35   :  { %v969_v16 = vpop.permute.xlu0 %968 }
 0xd36   :  { %v971_v52 = vmul.f32 %v969_v16, %v3850_v43 }
 0xd38   :  { %973 = vrot.lane.b32.xlu0 %v971_v52, %s3331_s15 }
 0xd4a   :  { %v1230_v11 = vpop.permute.xlu2 %1229 }
 0xd4b   :  { %v1232_v53 = vmul.f32 %v1230_v11, %v1226_v47  ;;  %v3909_v11 = vld [vmem:[%s4392_s6 + $0x2] ss:$0 sm:$0xff] }
 0xd4d   :  { %1234 = vrot.lane.b32.xlu2 %v1232_v53, %s3331_s15 }
 0xd65   :  { %v1099_v18 = vpop.permute.xlu1 %1098 }
 0xd66   :  { %v1101_v19 = vmul.f32 %v1099_v18, %v1095_v3 }
 0xd68   :  { %1103 = vrot.lane.b32.xlu1 %v1101_v19, %s3331_s15 }
 0xda7   :  { %v1235_v21 = vpop.permute.xlu2 %1234 }
 0xda8   :  { %v3872_v22 = vadd.f32 %v1235_v21, %v1227_v20 }
 0xdaa   :  { %3060 = vtanh.f32 %v3872_v22  ;;  %v974_v17 = vpop.permute.xlu0 %973 }
 0xdab   :  { %v3877_v24 = vadd.f32 %v974_v17, %v966_v55 }
 0xdad   :  { %3062 = vtanh.f32 %v3877_v24 }
 0xdb0   :  { %v3061_v26 = vpop.eup %3060 }
 0xdb1   :  { %1240 = vrot.lane.b32.xlu2 %v3061_v26, %s3330_s14 }
 0xdb3   :  { %v3063_v0 = vpop.eup %3062 }
 0xdb4   :  { %979 = vrot.lane.b32.xlu0 %v3063_v0, %s3330_s14 }
 0xdda   :  { %v1104_v37 = vpop.permute.xlu1 %1103 }
 0xddb   :  { %v3883_v38 = vadd.f32 %v1104_v37, %v1096_v42 }
 0xddd   :  { %3064 = vtanh.f32 %v3883_v38 }
 0xde3   :  { %v3065_v35 = vpop.eup %3064 }
 0xde4   :  { %1109 = vrot.lane.b32.xlu1 %v3065_v35, %s3330_s14 }
 0xe0b   :  { %v1241_v39 = vpop.permute.xlu2 %1240 }
 0xe0c   :  { %v1243_v14 = vmul.f32 %v1241_v39, %v1226_v47 }
 0xe0e   :  { %1245 = vrot.lane.b32.xlu1 %v1243_v14, %s3331_s15 }
 0xe26   :  { %v980_v41 = vpop.permute.xlu0 %979 }
 0xe27   :  { %v982_v1 = vmul.f32 %v980_v41, %v3850_v43  ;;  %v3268_v43 = vld [vmem:[#allocation2 + $0x58] sm:$0xff] }
 0xe29   :  { %1118 = vrot.lane.b32.xlu1 %v982_v1, %s3330_s14 }
 0xe56   :  { %v1110_v45 = vpop.permute.xlu1 %1109 }
 0xe57   :  { %v1112_v27 = vmul.f32 %v1110_v45, %v1095_v3 }
 0xe59   :  { %1114 = vrot.lane.b32.xlu0 %v1112_v27, %s3331_s15  ;;  %1248 = vrot.lane.b32.xlu2 %v1112_v27, %s3330_s14 }
 0xe80   :  { %v1246_v30 = vpop.permute.xlu1 %1245 }
 0xe81   :  { %2884 = vmatmul.msk.f32.vlgmr.msra.gmra.mxu0 %vm187_vm9, %v1246_v30 }
 0xe82   :  { %1733 = vmatpush.msra.mxu0 %v3264_v46 }
 0xe84   :  { %1734 = vmatpush.msra.mxu0 %v3265_v4 }
 0xe86   :  { %1735 = vmatpush.msra.mxu0 %v3266_v28 }
 0xe88   :  { %1736 = vmatpush.msra.mxu0 %v3267_v5 }
 0xe8a   :  { %1737 = vmatpush.msra.mxu0 %v3268_v43 }
 0xe8c   :  { %1738 = vmatpush.msra.mxu0 %v3269_v31 }
 0xe8e   :  { %1739 = vmatpush.msra.mxu0 %v3270_v25 }
 0xe90   :  { %1740 = vmatpush.msra.mxu0 %v3271_v32 }
 0xe9b   :  { %v1119_v40 = vpop.permute.xlu1 %1118 }
 0xeb3   :  { %v1249_v36 = vpop.permute.xlu2 %1248 }
 0xeb4   :  { %v1251_v15 = vsel %vm187_vm9, %v1246_v30, %v1249_v36 }
 0xeb5   :  { %2880 = vmatmul.msk.f32.vlgmr.msra.gmra.mxu3 %vm255_vm10, %v1251_v15 }
 0xecb   :  { %v1115_v33 = vpop.permute.xlu0 %1114 }
 0xecc   :  { %v1121_v48 = vsel %vm187_vm9, %v1115_v33, %v1119_v40 }
 0xecd   :  { %2876 = vmatmul.msk.f32.vlgmr.msrb.gmra.mxu1 %vm255_vm10, %v1121_v48 }
 0xefe   :  { %v1402_v50 = vpop.f32.mrf.mxu0 }
 0xeff   :  { %v1405_v56 = vadd.f32 %v1402_v50, %v182_v8 }
 0xf01   :  { %v2885_v2 = vmul.f32 -1.442695, %v1405_v56 }
 0xf03   :  { %3066 = vpow2.f32 %v2885_v2 }
 0xf09   :  { %v3067_v9 = vpop.eup %3066 }
 0xf0a   :  { %v1409_v12 = vadd.f32 1.0, %v3067_v9 }
 0xf0c   :  { %3068 = vrcp.f32 %v1409_v12  ;;  %v1421_v57 = vand.u32 2147483648, %v1409_v12  ;;  %v1419_v59 = vand.u32 2147483647, %v1409_v12  ;;  %vm1415_vm13 = vweird.f32 %v1409_v12 }
 0xf0d   :  { %3070 = vtanh.f32 %v1405_v56 }
 0xf0e   :  { %v1422_v61 = vor.u32 1.1754944e-38, %v1421_v57  ;;  %vm1420_vm15 = vcmp.eq.f32.partialorder %v1419_v59, 8.507059e+37 }
 0xf12   :  { %v3069_v7 = vpop.eup %3068 }
 0xf13   :  { %v1411_v10 = vmul.f32 %v3069_v7, %v1409_v12  ;;  %vm1416_vm12 = vweird.f32 %v3069_v7  ;;  %v3071_v62 = vpop.eup %3070 }
 0xf14   :  { %vm1417_vm14 = vmor %vm1415_vm13, %vm1416_vm12 }
 0xf15   :  { %v1412_v49 = vsub.f32 1.0, %v1411_v10 }
 0xf17   :  { %v1413_v34 = vmul.f32 %v3069_v7, %v1412_v49 }
 0xf19   :  { %v1414_v60 = vadd.f32 %v3069_v7, %v1413_v34 }
 0xf1b   :  { %v1418_v51 = vsel %vm1417_vm14, %v3069_v7, %v1414_v60 }
 0xf1c   :  { %v1423_v47 = vsel %vm1420_vm15, %v1422_v61, %v1418_v51 }
 0xf1d   :  { %v3901_v63 = vsel %vm3453_vm5, %v3071_v62, %v1423_v47 }
 0xf1e   :  { %1429 = vrot.lane.b32.xlu1 %v3901_v63, %s3330_s14  ;;  %v1427_v56 = vmul.f32 %v3901_v63, %v3872_v22 }
 0xf38   :  { %v1272_v6 = vpop.f32.mrf.mxu3 }
 0xf39   :  { %v1273_v13 = vadd.f32 %v3858_v29, %v1272_v6 }
 0xf3b   :  { %v2881_v58 = vmul.f32 -1.442695, %v1273_v13 }
 0xf3d   :  { %3072 = vpow2.f32 %v2881_v58 }
 0xf43   :  { %v3073_v3 = vpop.eup %3072 }
 0xf44   :  { %v1278_v16 = vadd.f32 1.0, %v3073_v3 }
 0xf46   :  { %3074 = vrcp.f32 %v1278_v16  ;;  %v1290_v55 = vand.u32 2147483648, %v1278_v16  ;;  %v1288_v26 = vand.u32 2147483647, %v1278_v16  ;;  %vm1284_vm3 = vweird.f32 %v1278_v16 }
 0xf48   :  { %v1291_v42 = vor.u32 1.1754944e-38, %v1290_v55  ;;  %vm1289_vm6 = vcmp.eq.f32.partialorder %v1288_v26, 8.507059e+37 }
 0xf4a   :  { %v1142_v52 = vpop.f32.mrf.mxu1 }
 0xf4b   :  { %v1143_v53 = vadd.f32 %v3909_v11, %v1142_v52  ;;  %v185_v52 = vadd.f32 %v3777_v44, %v3528_v54 }
 0xf4c   :  { %v3075_v18 = vpop.eup %3074 }
 0xf4d   :  { %v2877_v19 = vmul.f32 -1.442695, %v1143_v53  ;;  %v1280_v20 = vmul.f32 %v3075_v18, %v1278_v16  ;;  %vm1285_vm2 = vweird.f32 %v3075_v18 }
 0xf4e   :  { %vm1286_vm4 = vmor %vm1284_vm3, %vm1285_vm2 }
 0xf4f   :  { %3076 = vpow2.f32 %v2877_v19  ;;  %v1281_v21 = vsub.f32 1.0, %v1280_v20 }
 0xf50   :  { %3078 = vtanh.f32 %v1273_v13 }
 0xf51   :  { %v1282_v17 = vmul.f32 %v3075_v18, %v1281_v21 }
 0xf53   :  { %v1283_v0 = vadd.f32 %v3075_v18, %v1282_v17 }
 0xf55   :  { %v3077_v37 = vpop.eup %3076  ;;  %v1287_v35 = vsel %vm1286_vm4, %v3075_v18, %v1283_v0 }
 0xf56   :  { %v3079_v39 = vpop.eup %3078  ;;  %v1148_v14 = vadd.f32 1.0, %v3077_v37  ;;  %v1292_v41 = vsel %vm1289_vm6, %v1291_v42, %v1287_v35 }
 0xf57   :  { %v1295_v1 = vsel %vm3453_vm5, %v3079_v39, %v1292_v41 }
 0xf58   :  { %3080 = vrcp.f32 %v1148_v14  ;;  %1298 = vrot.lane.b32.xlu0 %v1295_v1, %s3330_s14  ;;  %v1160_v46 = vand.u32 2147483648, %v1148_v14  ;;  %v1158_v28 = vand.u32 2147483647, %v1148_v14  ;;  %vm1154_vm8 = vweird.f32 %v1148_v14 }
 0xf59   :  { %3082 = vtanh.f32 %v1143_v53  ;;  %v1296_v22 = vmul.f32 %v1295_v1, %v3883_v38 }
 0xf5a   :  { %v1161_v43 = vor.u32 1.1754944e-38, %v1160_v46  ;;  %vm1159_vm12 = vcmp.eq.f32.partialorder %v1158_v28, 8.507059e+37 }
 0xf5e   :  { %v3081_v45 = vpop.eup %3080 }
 0xf5f   :  { %v1150_v27 = vmul.f32 %v3081_v45, %v1148_v14  ;;  %vm1155_vm7 = vweird.f32 %v3081_v45  ;;  %v3083_v25 = vpop.eup %3082 }
 0xf60   :  { %vm1156_vm11 = vmor %vm1154_vm8, %vm1155_vm7 }
 0xf61   :  { %v1151_v30 = vsub.f32 1.0, %v1150_v27 }
 0xf63   :  { %v1152_v4 = vmul.f32 %v3081_v45, %v1151_v30 }
 0xf65   :  { %v1153_v5 = vadd.f32 %v3081_v45, %v1152_v4 }
 0xf67   :  { %v1157_v31 = vsel %vm1156_vm11, %v3081_v45, %v1153_v5 }
 0xf68   :  { %v1162_v32 = vsel %vm1159_vm12, %v1161_v43, %v1157_v31 }
 0xf69   :  { %v1165_v36 = vsel %vm3453_vm5, %v3083_v25, %v1162_v32 }
 0xf6a   :  { %1168 = vrot.lane.b32.xlu2 %v1165_v36, %s3330_s14  ;;  %v1166_v7 = vmul.f32 %v1165_v36, %v3877_v24 }
 0xf90   :  { %v1430_v15 = vpop.permute.xlu1 %1429 }
 0xf91   :  { %v1432_v40 = vmul.f32 %v1430_v15, %v3901_v63 }
 0xf93   :  { %1434 = vrot.lane.b32.xlu1 %v1432_v40, %s3331_s15 }
 0xfc4   :  { %v1169_v33 = vpop.permute.xlu2 %1168 }
 0xfc5   :  { %v1171_v48 = vmul.f32 %v1169_v33, %v1165_v36 }
 0xfc7   :  { %1173 = vrot.lane.b32.xlu2 %v1171_v48, %s3331_s15 }
 0xfca   :  { %v1299_v8 = vpop.permute.xlu0 %1298 }
 0xfcb   :  { %v1301_v50 = vmul.f32 %v1299_v8, %v1295_v1 }
 0xfcd   :  { %1303 = vrot.lane.b32.xlu0 %v1301_v50, %s3331_s15 }
0x1005   :  { %v1435_v2 = vpop.permute.xlu1 %1434 }
0x1006   :  { %v3924_v9 = vadd.f32 %v1435_v2, %v1427_v56 }
0x1008   :  { %3084 = vtanh.f32 %v3924_v9 }
0x100e   :  { %v3085_v12 = vpop.eup %3084 }
0x100f   :  { %1440 = vrot.lane.b32.xlu1 %v3085_v12, %s3330_s14 }
0x1021   :  { %v1174_v10 = vpop.permute.xlu2 %1173 }
0x1022   :  { %v3929_v49 = vadd.f32 %v1174_v10, %v1166_v7 }
0x1024   :  { %3086 = vtanh.f32 %v3929_v49 }
0x102a   :  { %v3087_v57 = vpop.eup %3086 }
0x102b   :  { %1179 = vrot.lane.b32.xlu2 %v3087_v57, %s3330_s14 }
0x103f   :  { %v1304_v34 = vpop.permute.xlu0 %1303 }
0x1040   :  { %v3934_v59 = vadd.f32 %v1304_v34, %v1296_v22 }
0x1042   :  { %3088 = vtanh.f32 %v3934_v59 }
0x1048   :  { %v3089_v60 = vpop.eup %3088 }
0x1049   :  { %1309 = vrot.lane.b32.xlu0 %v3089_v60, %s3330_s14 }
0x1081   :  { %v1441_v61 = vpop.permute.xlu1 %1440 }
0x1082   :  { %v1443_v24 = vmul.f32 %v1441_v61, %v3901_v63 }
0x1084   :  { %1445 = vrot.lane.b32.xlu1 %v1443_v24, %s3331_s15 }
0x1085   :  { %v1180_v51 = vpop.permute.xlu2 %1179 }
0x1086   :  { %v1182_v62 = vmul.f32 %v1180_v51, %v1165_v36 }
0x1088   :  { %1318 = vrot.lane.b32.xlu0 %v1182_v62, %s3330_s14 }
0x10bb   :  { %v1310_v47 = vpop.permute.xlu0 %1309 }
0x10bc   :  { %v1312_v6 = vmul.f32 %v1310_v47, %v1295_v1 }
0x10be   :  { %1314 = vrot.lane.b32.xlu2 %v1312_v6, %s3331_s15 }
0x10c6   :  { %1448 = vrot.lane.b32.xlu2 %v1312_v6, %s3330_s14 }
0x10f6   :  { %v1446_v38 = vpop.permute.xlu1 %1445 }
0x10f7   :  { %2890 = vmatmul.msk.f32.vlgmr.msrb.gmra.mxu0 %vm187_vm9, %v1446_v38 }
0x10fa   :  { %v1319_v13 = vpop.permute.xlu0 %1318 }
0x1118   :  { %v1315_v58 = vpop.permute.xlu2 %1314 }
0x1119   :  { %v1321_v3 = vsel %vm187_vm9, %v1315_v58, %v1319_v13 }
0x111a   :  { %2882 = vmatmul.msk.f32.vlgmr.msra.gmra.mxu2 %vm255_vm10, %v1321_v3 }
0x1120   :  { %v1449_v63 = vpop.permute.xlu2 %1448 }
0x1121   :  { %v1451_v16 = vsel %vm187_vm9, %v1446_v38, %v1449_v63 }
0x1122   :  { %2886 = vmatmul.msk.f32.vlgmr.msra.gmra.mxu1 %vm255_vm10, %v1451_v16 }
0x1174   :  { %v1602_v53 = vpop.f32.mrf.mxu0 }
0x1175   :  { %v1605_v18 = vadd.f32 %v1602_v53, %v185_v52 }
0x1177   :  { %v2891_v19 = vmul.f32 -1.442695, %v1605_v18 }
0x1179   :  { %3090 = vpow2.f32 %v2891_v19 }
0x117f   :  { %v3091_v20 = vpop.eup %3090 }
0x1180   :  { %v1609_v21 = vadd.f32 1.0, %v3091_v20 }
0x1182   :  { %3092 = vrcp.f32 %v1609_v21  ;;  %v1621_v0 = vand.u32 2147483648, %v1609_v21  ;;  %v1619_v37 = vand.u32 2147483647, %v1609_v21  ;;  %vm1615_vm14 = vweird.f32 %v1609_v21 }
0x1183   :  { %3094 = vtanh.f32 %v1605_v18 }
0x1184   :  { %v1622_v39 = vor.u32 1.1754944e-38, %v1621_v0  ;;  %vm1620_vm2 = vcmp.eq.f32.partialorder %v1619_v37, 8.507059e+37 }
0x1188   :  { %v3093_v55 = vpop.eup %3092 }
0x1189   :  { %v1611_v17 = vmul.f32 %v3093_v55, %v1609_v21  ;;  %vm1616_vm13 = vweird.f32 %v3093_v55  ;;  %v3095_v44 = vpop.eup %3094 }
0x118a   :  { %vm1617_vm15 = vmor %vm1615_vm14, %vm1616_vm13 }
0x118b   :  { %v1612_v26 = vsub.f32 1.0, %v1611_v17 }
0x118d   :  { %v1613_v42 = vmul.f32 %v3093_v55, %v1612_v26 }
0x118f   :  { %v1614_v35 = vadd.f32 %v3093_v55, %v1613_v42 }
0x1191   :  { %v1618_v54 = vsel %vm1617_vm15, %v3093_v55, %v1614_v35 }
0x1192   :  { %v1623_v14 = vsel %vm1620_vm2, %v1622_v39, %v1618_v54 }
0x1193   :  { %v3952_v41 = vsel %vm3453_vm5, %v3095_v44, %v1623_v14  ;;  %v3992_v44 = vld [vmem:[%s4394_s8 + $0x18] sm:$0xff]  ;;  %v3997_v14 = vld [vmem:[%s4394_s8 + $0x10] sm:$0xff] }
0x1194   :  { %1629 = vrot.lane.b32.xlu2 %v3952_v41, %s3330_s14  ;;  %v1627_v52 = vmul.f32 %v3952_v41, %v3924_v9  ;;  %1873 = vmatpush.msra.mxu3 %v3992_v44 }
0x1195   :  { %2073 = vmatpush.msrb.mxu0 %v3992_v44 }
0x1196   :  { %1874 = vmatpush.msra.mxu3 %v3997_v14 }
0x1197   :  { %2074 = vmatpush.msrb.mxu0 %v3997_v14 }
0x119d   :  { %v1342_v1 = vpop.f32.mrf.mxu2 }
0x119e   :  { %v1343_v45 = vadd.f32 %v3909_v11, %v1342_v1  ;;  %v4007_v1 = vld [vmem:[%s4394_s8 + $0x8] sm:$0xff] }
0x119f   :  { %v1472_v27 = vpop.f32.mrf.mxu1  ;;  %1875 = vmatpush.msra.mxu3 %v4007_v1  ;;  %2075 = vmatpush.msrb.mxu0 %v4007_v1 }
0x11a0   :  { %v2883_v30 = vmul.f32 -1.442695, %v1343_v45  ;;  %v1473_v46 = vadd.f32 %v3858_v29, %v1472_v27  ;;  %v1808_v27 = vld [vmem:[%s4387_s1] sm:$0xff] }
0x11a2   :  { %3096 = vpow2.f32 %v2883_v30  ;;  %v2887_v4 = vmul.f32 -1.442695, %v1473_v46 }
0x11a4   :  { %3098 = vpow2.f32 %v2887_v4 }
0x11a8   :  { %v3097_v28 = vpop.eup %3096 }
0x11a9   :  { %v1348_v5 = vadd.f32 1.0, %v3097_v28 }
0x11aa   :  { %v3099_v43 = vpop.eup %3098 }
0x11ab   :  { %3100 = vrcp.f32 %v1348_v5  ;;  %v1478_v31 = vadd.f32 1.0, %v3099_v43  ;;  %v1360_v33 = vand.u32 2147483648, %v1348_v5  ;;  %v1358_v8 = vand.u32 2147483647, %v1348_v5 }
0x11ac   :  { %vm1354_vm4 = vweird.f32 %v1348_v5 }
0x11ad   :  { %3102 = vrcp.f32 %v1478_v31  ;;  %v1490_v56 = vand.u32 2147483648, %v1478_v31  ;;  %v1488_v7 = vand.u32 2147483647, %v1478_v31  ;;  %v1361_v10 = vor.u32 1.1754944e-38, %v1360_v33 }
0x11ae   :  { %3104 = vtanh.f32 %v1343_v45  ;;  %vm1359_vm8 = vcmp.eq.f32.partialorder %v1358_v8, 8.507059e+37  ;;  %vm1484_vm11 = vweird.f32 %v1478_v31  ;;  %v4014_v45 = vld [vmem:[%s4394_s8] sm:$0xff] }
0x11af   :  { %3106 = vtanh.f32 %v1473_v46  ;;  %v1491_v61 = vor.u32 1.1754944e-38, %v1490_v56  ;;  %vm1489_vm13 = vcmp.eq.f32.partialorder %v1488_v7, 8.507059e+37  ;;  %1876 = vmatpush.msra.mxu3 %v4014_v45  ;;  %2076 = vmatpush.msrb.mxu0 %v4014_v45 }
0x11b1   :  { %v3101_v25 = vpop.eup %3100 }
0x11b2   :  { %v1350_v32 = vmul.f32 %v3101_v25, %v1348_v5  ;;  %vm1355_vm3 = vweird.f32 %v3101_v25 }
0x11b3   :  { %v3103_v36 = vpop.eup %3102  ;;  %vm1356_vm7 = vmor %vm1354_vm4, %vm1355_vm3 }
0x11b4   :  { %v1351_v15 = vsub.f32 1.0, %v1350_v32  ;;  %v1480_v40 = vmul.f32 %v3103_v36, %v1478_v31  ;;  %vm1485_vm6 = vweird.f32 %v3103_v36  ;;  %v3105_v34 = vpop.eup %3104  ;;  %v4034_v32 = vld [vmem:[%s4396_s10] ss:$0 sm:$0xff] }
0x11b5   :  { %vm1486_vm12 = vmor %vm1484_vm11, %vm1485_vm6  ;;  %v3107_v62 = vpop.eup %3106 }
0x11b6   :  { %v1352_v48 = vmul.f32 %v3101_v25, %v1351_v15  ;;  %v1481_v50 = vsub.f32 1.0, %v1480_v40 }
0x11b8   :  { %v1353_v2 = vadd.f32 %v3101_v25, %v1352_v48  ;;  %v1482_v12 = vmul.f32 %v3103_v36, %v1481_v50 }
0x11ba   :  { %v1357_v57 = vsel %vm1356_vm7, %v3101_v25, %v1353_v2  ;;  %v1483_v22 = vadd.f32 %v3103_v36, %v1482_v12 }
0x11bb   :  { %v1362_v60 = vsel %vm1359_vm8, %v1361_v10, %v1357_v57 }
0x11bc   :  { %v1365_v24 = vsel %vm3453_vm5, %v3105_v34, %v1362_v60  ;;  %v1487_v51 = vsel %vm1486_vm12, %v3103_v36, %v1483_v22 }
0x11bd   :  { %1368 = vrot.lane.b32.xlu0 %v1365_v24, %s3330_s14  ;;  %v1492_v47 = vsel %vm1489_vm13, %v1491_v61, %v1487_v51  ;;  %v1366_v20 = vmul.f32 %v1365_v24, %v3929_v49 }
0x11be   :  { %v1495_v6 = vsel %vm3453_vm5, %v3107_v62, %v1492_v47 }
0x11bf   :  { %1498 = vrot.lane.b32.xlu1 %v1495_v6, %s3330_s14  ;;  %v1496_v17 = vmul.f32 %v1495_v6, %v3934_v59 }
0x11ee   :  { %v1630_v38 = vpop.permute.xlu2 %1629 }
0x11ef   :  { %v1632_v13 = vmul.f32 %v1630_v38, %v3952_v41 }
0x11f1   :  { %1634 = vrot.lane.b32.xlu2 %v1632_v13, %s3331_s15 }
0x122f   :  { %v1369_v58 = vpop.permute.xlu0 %1368 }
0x1230   :  { %v1371_v3 = vmul.f32 %v1369_v58, %v1365_v24 }
0x1231   :  { %v1499_v63 = vpop.permute.xlu1 %1498 }
0x1232   :  { %v1501_v16 = vmul.f32 %v1499_v63, %v1495_v6  ;;  %1373 = vrot.lane.b32.xlu0 %v1371_v3, %s3331_s15 }
0x1234   :  { %1503 = vrot.lane.b32.xlu1 %v1501_v16, %s3331_s15 }
0x124b   :  { %v1635_v53 = vpop.permute.xlu2 %1634 }
0x124c   :  { %v3970_v18 = vadd.f32 %v1635_v53, %v1627_v52 }
0x124e   :  { %3108 = vtanh.f32 %v3970_v18 }
0x1254   :  { %v3109_v19 = vpop.eup %3108 }
0x1255   :  { %1640 = vrot.lane.b32.xlu2 %v3109_v19, %s3330_s14 }
0x12a4   :  { %v1374_v21 = vpop.permute.xlu0 %1373 }
0x12a5   :  { %v3975_v55 = vadd.f32 %v1374_v21, %v1366_v20 }
0x12a6   :  { %v1504_v26 = vpop.permute.xlu1 %1503 }
0x12a7   :  { %3110 = vtanh.f32 %v3975_v55  ;;  %v3979_v0 = vadd.f32 %v1504_v26, %v1496_v17 }
0x12a9   :  { %3112 = vtanh.f32 %v3979_v0 }
0x12ad   :  { %v3111_v9 = vpop.eup %3110 }
0x12ae   :  { %1379 = vrot.lane.b32.xlu0 %v3111_v9, %s3330_s14 }
0x12af   :  { %v3113_v42 = vpop.eup %3112  ;;  %v1641_v37 = vpop.permute.xlu2 %1640 }
0x12b0   :  { %v1643_v35 = vmul.f32 %v1641_v37, %v3952_v41  ;;  %1509 = vrot.lane.b32.xlu1 %v3113_v42, %s3330_s14  ;;  %v1812_v41 = vld [vmem:[%s4393_s7] sm:$0x3f] }
0x12b1   :  { %2896 = vmatpush.msk.msrb.mxu1 %vm142_vm0, %v1812_v41 }
0x12b2   :  { %1645 = vrot.lane.b32.xlu2 %v1643_v35, %s3331_s15  ;;  %2897 = vmatmul.msk.f32.vlgmr.msrb.gmra.mxu1 %vm117_vm1, %v1808_v27 }
0x130c   :  { %v1646_v28 = vpop.permute.xlu2 %1645 }
0x1320   :  { %v1380_v49 = vpop.permute.xlu0 %1379 }
0x1321   :  { %v1382_v59 = vmul.f32 %v1380_v49, %v1365_v24 }
0x1322   :  { %v1510_v39 = vpop.permute.xlu1 %1509 }
0x1323   :  { %v1512_v54 = vmul.f32 %v1510_v39, %v1495_v6  ;;  %1518 = vrot.lane.b32.xlu1 %v1382_v59, %s3330_s14 }
0x1325   :  { %1514 = vrot.lane.b32.xlu0 %v1512_v54, %s3331_s15 }
0x132d   :  { %1648 = vrot.lane.b32.xlu0 %v1512_v54, %s3330_s14 }
0x132f   :  { %v1847_v36 = vpop.f32.mrf.mxu1 }
0x1330   :  { %v1848_v40 = vadd.f32 %v4034_v32, %v1847_v36 }
0x1395   :  { %v1519_v30 = vpop.permute.xlu1 %1518 }
0x1397   :  { %v1515_v46 = vpop.permute.xlu0 %1514 }
0x1398   :  { %v1521_v4 = vsel %vm187_vm9, %v1515_v46, %v1519_v30 }
0x1399   :  { %2888 = vmatmul.msk.f32.vlgmr.msrb.gmra.mxu3 %vm255_vm10, %v1521_v4 }
0x139f   :  { %v1649_v5 = vpop.permute.xlu0 %1648 }
0x13a0   :  { %v1651_v43 = vsel %vm187_vm9, %v1646_v28, %v1649_v5 }
0x13a1   :  { %2892 = vmatmul.msk.f32.vlgmr.msrb.gmra.mxu2 %vm255_vm10, %v1651_v43  ;;  %2901 = vmatmul.msk.f32.vlgmr.msra.gmra.mxu3 %vm187_vm9, %v1646_v28 }
0x141c   :  { %v1542_v31 = vpop.f32.mrf.mxu3 }
0x141d   :  { %v1543_v25 = vadd.f32 %v3909_v11, %v1542_v31 }
0x141f   :  { %v2889_v15 = vmul.f32 -1.442695, %v1543_v25 }
0x1421   :  { %3114 = vpow2.f32 %v2889_v15 }
0x1424   :  { %v1672_v33 = vpop.f32.mrf.mxu2  ;;  %v1878_v48 = vpop.f32.mrf.mxu3 }
0x1425   :  { %v1673_v8 = vadd.f32 %v3858_v29, %v1672_v33  ;;  %v1881_v50 = vadd.f32 %v1878_v48, %v1848_v40 }
0x1427   :  { %v3115_v56 = vpop.eup %3114  ;;  %v2893_v2 = vmul.f32 -1.442695, %v1673_v8  ;;  %v2902_v12 = vmul.f32 -1.442695, %v1881_v50 }
0x1428   :  { %v1548_v7 = vadd.f32 1.0, %v3115_v56 }
0x1429   :  { %3116 = vpow2.f32 %v2893_v2 }
0x142a   :  { %3118 = vrcp.f32 %v1548_v7  ;;  %v1560_v51 = vand.u32 2147483648, %v1548_v7  ;;  %v1558_v62 = vand.u32 2147483647, %v1548_v7  ;;  %vm1554_vm14 = vweird.f32 %v1548_v7 }
0x142b   :  { %3120 = vpow2.f32 %v2902_v12 }
0x142c   :  { %v1561_v38 = vor.u32 1.1754944e-38, %v1560_v51  ;;  %vm1559_vm2 = vcmp.eq.f32.partialorder %v1558_v62, 8.507059e+37  ;;  %v4075_v51 = vld [vmem:[#allocation4 + $0x38] sm:$0xff]  ;;  %v4080_v62 = vld [vmem:[#allocation4 + $0x28] sm:$0xff] }
0x142d   :  { %1939 = vmatpush.msra.mxu2 %v4075_v51 }
0x142f   :  { %v3117_v10 = vpop.eup %3116 }
0x1430   :  { %v3119_v57 = vpop.eup %3118  ;;  %v1678_v22 = vadd.f32 1.0, %v3117_v10 }
0x1431   :  { %v3121_v34 = vpop.eup %3120  ;;  %v1550_v60 = vmul.f32 %v3119_v57, %v1548_v7  ;;  %vm1555_vm0 = vweird.f32 %v3119_v57 }
0x1432   :  { %3122 = vrcp.f32 %v1678_v22  ;;  %v1885_v61 = vadd.f32 1.0, %v3121_v34  ;;  %vm1556_vm15 = vmor %vm1554_vm14, %vm1555_vm0  ;;  %v1690_v20 = vand.u32 2147483648, %v1678_v22  ;;  %v1688_v26 = vand.u32 2147483647, %v1678_v22 }
0x1433   :  { %3124 = vtanh.f32 %v1543_v25  ;;  %v1551_v24 = vsub.f32 1.0, %v1550_v60  ;;  %vm1684_vm4 = vweird.f32 %v1678_v22 }
0x1434   :  { %3126 = vrcp.f32 %v1885_v61  ;;  %v1897_v9 = vand.u32 2147483648, %v1885_v61  ;;  %v1895_v37 = vand.u32 2147483647, %v1885_v61  ;;  %v1691_v49 = vor.u32 1.1754944e-38, %v1690_v20 }
0x1435   :  { %v1552_v29 = vmul.f32 %v3119_v57, %v1551_v24  ;;  %3128 = vtanh.f32 %v1673_v8  ;;  %vm1891_vm8 = vweird.f32 %v1885_v61  ;;  %vm1689_vm11 = vcmp.eq.f32.partialorder %v1688_v26, 8.507059e+37 }
0x1436   :  { %3130 = vtanh.f32 %v1881_v50  ;;  %v1898_v41 = vor.u32 1.1754944e-38, %v1897_v9  ;;  %vm1896_vm13 = vcmp.eq.f32.partialorder %v1895_v37, 8.507059e+37 }
0x1437   :  { %v1553_v47 = vadd.f32 %v3119_v57, %v1552_v29  ;;  %v4077_v29 = vld [vmem:[#allocation4 + $0x30] sm:$0xff] }
0x1438   :  { %v3123_v6 = vpop.eup %3122  ;;  %1940 = vmatpush.msra.mxu2 %v4077_v29 }
0x1439   :  { %v3125_v13 = vpop.eup %3124  ;;  %v1557_v58 = vsel %vm1556_vm15, %v3119_v57, %v1553_v47  ;;  %v1680_v3 = vmul.f32 %v3123_v6, %v1678_v22  ;;  %vm1685_vm3 = vweird.f32 %v3123_v6  ;;  %v1809_v47 = vld [vmem:[%s4387_s1 + $0x8] sm:$0xff] }
0x143a   :  { %v3127_v63 = vpop.eup %3126  ;;  %v1562_v16 = vsel %vm1559_vm2, %v1561_v38, %v1557_v58  ;;  %vm1686_vm7 = vmor %vm1684_vm4, %vm1685_vm3  ;;  %2898 = vmatmul.msk.f32.gmra.mxu1 %vm117_vm1, %v1809_v47  ;;  %1941 = vmatpush.msra.mxu2 %v4080_v62  ;;  %v4090_v38 = vld [vmem:[#allocation4 + $0x18] sm:$0xff]  ;;  %v4096_v58 = vld [vmem:[#allocation4 + $0x8] sm:$0xff] }
0x143b   :  { %v4040_v52 = vsel %vm3453_vm5, %v3125_v13, %v1562_v16  ;;  %v1887_v53 = vmul.f32 %v3127_v63, %v1885_v61  ;;  %v1681_v19 = vsub.f32 1.0, %v1680_v3  ;;  %vm1892_vm6 = vweird.f32 %v3127_v63  ;;  %v3129_v54 = vpop.eup %3128  ;;  %v4093_v13 = vld [vmem:[#allocation4 + $0x10] sm:$0xff] }
0x143c   :  { %1568 = vrot.lane.b32.xlu1 %v4040_v52, %s3330_s14  ;;  %vm1893_vm12 = vmor %vm1891_vm8, %vm1892_vm6  ;;  %v3131_v4 = vpop.eup %3130  ;;  %v1566_v56 = vmul.f32 %v4040_v52, %v3975_v55 }
0x143d   :  { %v1888_v21 = vsub.f32 1.0, %v1887_v53  ;;  %v1682_v17 = vmul.f32 %v3123_v6, %v1681_v19 }
0x143f   :  { %v1889_v42 = vmul.f32 %v3127_v63, %v1888_v21  ;;  %v1683_v35 = vadd.f32 %v3123_v6, %v1682_v17 }
0x1441   :  { %v1890_v59 = vadd.f32 %v3127_v63, %v1889_v42  ;;  %v1687_v39 = vsel %vm1686_vm7, %v3123_v6, %v1683_v35  ;;  %v4087_v6 = vld [vmem:[#allocation4 + $0x20] sm:$0xff] }
0x1442   :  { %v1692_v27 = vsel %vm1689_vm11, %v1691_v49, %v1687_v39  ;;  %1942 = vmatpush.msra.mxu2 %v4087_v6 }
0x1443   :  { %v1894_v30 = vsel %vm1893_vm12, %v3127_v63, %v1890_v59  ;;  %v1695_v46 = vsel %vm3453_vm5, %v3129_v54, %v1692_v27 }
0x1444   :  { %v1899_v28 = vsel %vm1896_vm13, %v1898_v41, %v1894_v30  ;;  %1698 = vrot.lane.b32.xlu2 %v1695_v46, %s3330_s14  ;;  %v1696_v33 = vmul.f32 %v1695_v46, %v3979_v0  ;;  %1943 = vmatpush.msra.mxu2 %v4090_v38 }
0x1445   :  { %v1902_v5 = vsel %vm3453_vm5, %v3131_v4, %v1899_v28 }
0x1446   :  { %1905 = vrot.lane.b32.xlu0 %v1902_v5, %s3330_s14  ;;  %v1903_v10 = vmul.f32 %v1902_v5, %v3970_v18  ;;  %1944 = vmatpush.msra.mxu2 %v4093_v13 }
0x1448   :  { %1945 = vmatpush.msra.mxu2 %v4096_v58 }
0x149e   :  { %v1699_v43 = vpop.permute.xlu2 %1698 }
0x149f   :  { %v1701_v31 = vmul.f32 %v1699_v43, %v1695_v46 }
0x14a1   :  { %1703 = vrot.lane.b32.xlu2 %v1701_v31, %s3331_s15 }
0x14ae   :  { %v1569_v25 = vpop.permute.xlu1 %1568 }
0x14af   :  { %v1571_v36 = vmul.f32 %v1569_v25, %v4040_v52 }
0x14b1   :  { %1573 = vrot.lane.b32.xlu1 %v1571_v36, %s3331_s15 }
0x14b7   :  { %v1850_v39 = vpop.f32.mrf.mxu1 }
0x14b8   :  { %v1906_v15 = vpop.permute.xlu0 %1905  ;;  %v1851_v41 = vadd.f32 %v4034_v32, %v1850_v39 }
0x14b9   :  { %v1908_v40 = vmul.f32 %v1906_v15, %v1902_v5 }
0x14bb   :  { %1910 = vrot.lane.b32.xlu0 %v1908_v40, %s3331_s15 }
0x14fb   :  { %v1704_v48 = vpop.permute.xlu2 %1703 }
0x14fc   :  { %v4055_v8 = vadd.f32 %v1704_v48, %v1696_v33 }
0x14fe   :  { %3132 = vtanh.f32 %v4055_v8 }
0x1504   :  { %v3133_v50 = vpop.eup %3132 }
0x1505   :  { %1709 = vrot.lane.b32.xlu2 %v3133_v50, %s3330_s14 }
0x1523   :  { %v1574_v2 = vpop.permute.xlu1 %1573 }
0x1524   :  { %v4061_v12 = vadd.f32 %v1574_v2, %v1566_v56 }
0x1526   :  { %3134 = vtanh.f32 %v4061_v12 }
0x152c   :  { %v3135_v7 = vpop.eup %3134 }
0x152d   :  { %v1911_v0 = vpop.permute.xlu0 %1910  ;;  %1579 = vrot.lane.b32.xlu1 %v3135_v7, %s3330_s14 }
0x152e   :  { %v4066_v57 = vadd.f32 %v1911_v0, %v1903_v10 }
0x1530   :  { %3136 = vtanh.f32 %v4066_v57 }
0x1536   :  { %v3137_v22 = vpop.eup %3136 }
0x1537   :  { %1916 = vrot.lane.b32.xlu0 %v3137_v22, %s3330_s14 }
0x155f   :  { %v1710_v34 = vpop.permute.xlu2 %1709 }
0x1560   :  { %v1712_v55 = vmul.f32 %v1710_v34, %v1695_v46 }
0x1562   :  { %1714 = vrot.lane.b32.xlu1 %v1712_v55, %s3331_s15 }
0x156a   :  { %1924 = vrot.lane.b32.xlu1 %v1712_v55, %s3330_s14 }
0x159f   :  { %v1580_v60 = vpop.permute.xlu1 %1579 }
0x15a0   :  { %v1582_v61 = vmul.f32 %v1580_v60, %v4040_v52  ;;  %v4102_v52 = vld [vmem:[#allocation4] sm:$0xff] }
0x15a1   :  { %1946 = vmatpush.msra.mxu2 %v4102_v52 }
0x15a2   :  { %1718 = vrot.lane.b32.xlu2 %v1582_v61, %s3330_s14 }
0x15a3   :  { %2273 = vmatpush.msrb.mxu2 %v3992_v44 }
0x15a5   :  { %2274 = vmatpush.msrb.mxu2 %v3997_v14 }
0x15a7   :  { %2275 = vmatpush.msrb.mxu2 %v4007_v1 }
0x15a9   :  { %v1917_v18 = vpop.permute.xlu0 %1916  ;;  %2276 = vmatpush.msrb.mxu2 %v4014_v45 }
0x15aa   :  { %v1919_v24 = vmul.f32 %v1917_v18, %v1902_v5  ;;  %v4135_v5 = vld [vmem:[%s4396_s10 + $0x1] ss:$0 sm:$0xff] }
0x15ac   :  { %1921 = vrot.lane.b32.xlu0 %v1919_v24, %s3331_s15 }
0x15d4   :  { %v1715_v3 = vpop.permute.xlu1 %1714 }
0x15dc   :  { %v1925_v53 = vpop.permute.xlu1 %1924 }
0x15fc   :  { %v1719_v63 = vpop.permute.xlu2 %1718 }
0x15fd   :  { %v1721_v16 = vsel %vm187_vm9, %v1715_v3, %v1719_v63 }
0x15fe   :  { %2894 = vmatmul.msk.f32.vlgmr.msra.gmra.mxu0 %vm255_vm10, %v1721_v16 }
0x15ff   :  { %2139 = vmatpush.msra.mxu0 %v4075_v51 }
0x1601   :  { %2140 = vmatpush.msra.mxu0 %v4077_v29 }
0x1603   :  { %2141 = vmatpush.msra.mxu0 %v4080_v62 }
0x1605   :  { %2142 = vmatpush.msra.mxu0 %v4087_v6 }
0x1607   :  { %2143 = vmatpush.msra.mxu0 %v4090_v38 }
0x1609   :  { %2144 = vmatpush.msra.mxu0 %v4093_v13 }
0x160b   :  { %2145 = vmatpush.msra.mxu0 %v4096_v58 }
0x160d   :  { %2146 = vmatpush.msra.mxu0 %v4102_v52 }
0x161e   :  { %v1922_v19 = vpop.permute.xlu0 %1921 }
0x161f   :  { %v1927_v20 = vsel %vm187_vm9, %v1922_v19, %v1925_v53  ;;  %2907 = vmatmul.msk.f32.vlgmr.msrb.gmra.mxu0 %vm187_vm9, %v1922_v19 }
0x1620   :  { %2903 = vmatmul.msk.f32.vlgmr.msra.gmra.mxu2 %vm255_vm10, %v1927_v20  ;;  %2473 = vmatpush.msrb.mxu0 %v3992_v44 }
0x1622   :  { %2474 = vmatpush.msrb.mxu0 %v3997_v14 }
0x1624   :  { %2475 = vmatpush.msrb.mxu0 %v4007_v1 }
0x1626   :  { %2476 = vmatpush.msrb.mxu0 %v4014_v45 }
0x167b   :  { %v1742_v21 = vpop.f32.mrf.mxu0 }
0x167c   :  { %v1743_v17 = vadd.f32 %v3909_v11, %v1742_v21 }
0x167e   :  { %v2895_v26 = vmul.f32 -1.442695, %v1743_v17 }
0x1680   :  { %3138 = vpow2.f32 %v2895_v26 }
0x1686   :  { %v3139_v9 = vpop.eup %3138 }
0x1687   :  { %v1748_v42 = vadd.f32 1.0, %v3139_v9 }
0x1689   :  { %3140 = vrcp.f32 %v1748_v42  ;;  %v1760_v59 = vand.u32 2147483648, %v1748_v42  ;;  %v1758_v14 = vand.u32 2147483647, %v1748_v42  ;;  %vm1754_vm14 = vweird.f32 %v1748_v42 }
0x168a   :  { %3142 = vtanh.f32 %v1743_v17 }
0x168b   :  { %v1761_v45 = vor.u32 1.1754944e-38, %v1760_v59  ;;  %vm1759_vm2 = vcmp.eq.f32.partialorder %v1758_v14, 8.507059e+37 }
0x168f   :  { %v3141_v37 = vpop.eup %3140 }
0x1690   :  { %v1750_v35 = vmul.f32 %v3141_v37, %v1748_v42  ;;  %vm1755_vm0 = vweird.f32 %v3141_v37  ;;  %v3143_v11 = vpop.eup %3142 }
0x1691   :  { %vm1756_vm15 = vmor %vm1754_vm14, %vm1755_vm0 }
0x1692   :  { %v1751_v49 = vsub.f32 1.0, %v1750_v35 }
0x1694   :  { %v1752_v44 = vmul.f32 %v3141_v37, %v1751_v49 }
0x1696   :  { %v1753_v1 = vadd.f32 %v3141_v37, %v1752_v44 }
0x1698   :  { %v1757_v54 = vsel %vm1756_vm15, %v3141_v37, %v1753_v1 }
0x1699   :  { %v1762_v27 = vsel %vm1759_vm2, %v1761_v45, %v1757_v54 }
0x169a   :  { %v4128_v30 = vsel %vm3453_vm5, %v3143_v11, %v1762_v27 }
0x169b   :  { %1768 = vrot.lane.b32.xlu0 %v4128_v30, %s3330_s14  ;;  %v1766_v45 = vmul.f32 %v4128_v30, %v4061_v12 }
0x169c   :  { %v2078_v46 = vpop.f32.mrf.mxu0 }
0x169d   :  { %v2081_v4 = vadd.f32 %v2078_v46, %v1851_v41 }
0x169f   :  { %v2908_v28 = vmul.f32 -1.442695, %v2081_v4 }
0x16a1   :  { %3144 = vpow2.f32 %v2908_v28 }
0x16a3   :  { %v1948_v43 = vpop.f32.mrf.mxu2 }
0x16a4   :  { %v1949_v31 = vadd.f32 %v4135_v5, %v1948_v43 }
0x16a6   :  { %v2904_v25 = vmul.f32 -1.442695, %v1949_v31 }
0x16a7   :  { %v3145_v36 = vpop.eup %3144 }
0x16a8   :  { %v2085_v15 = vadd.f32 1.0, %v3145_v36  ;;  %3146 = vpow2.f32 %v2904_v25 }
0x16aa   :  { %3148 = vrcp.f32 %v2085_v15  ;;  %v2097_v2 = vand.u32 2147483648, %v2085_v15  ;;  %v2095_v10 = vand.u32 2147483647, %v2085_v15  ;;  %vm2091_vm4 = vweird.f32 %v2085_v15 }
0x16ac   :  { %v2098_v34 = vor.u32 1.1754944e-38, %v2097_v2  ;;  %vm2096_vm7 = vcmp.eq.f32.partialorder %v2095_v10, 8.507059e+37  ;;  %v1797_v2 = vld [vmem:[#allocation4 + $0x48] sm:$0xff] }
0x16ae   :  { %v3147_v40 = vpop.eup %3146 }
0x16af   :  { %v1954_v33 = vadd.f32 1.0, %v3147_v40  ;;  %v1803_v40 = vld [vmem:[#allocation4 + $0x78] sm:$0xff] }
0x16b0   :  { %v3149_v48 = vpop.eup %3148  ;;  %2009 = vmatpush.msrb.mxu3 %v1803_v40  ;;  %2209 = vmatpush.msra.mxu1 %v1803_v40 }
0x16b1   :  { %3150 = vrcp.f32 %v1954_v33  ;;  %v2087_v50 = vmul.f32 %v3149_v48, %v2085_v15  ;;  %vm2092_vm3 = vweird.f32 %v3149_v48  ;;  %v1966_v3 = vand.u32 2147483648, %v1954_v33  ;;  %2409 = vmatpush.msra.mxu2 %v1803_v40 }
0x16b2   :  { %3152 = vtanh.f32 %v2081_v4  ;;  %vm2093_vm6 = vmor %vm2091_vm4, %vm2092_vm3  ;;  %v1964_v16 = vand.u32 2147483647, %v1954_v33  ;;  %vm1960_vm11 = vweird.f32 %v1954_v33 }
0x16b3   :  { %v2088_v56 = vsub.f32 1.0, %v2087_v50  ;;  %3154 = vtanh.f32 %v1949_v31  ;;  %v1967_v19 = vor.u32 1.1754944e-38, %v1966_v3  ;;  %v1799_v50 = vld [vmem:[#allocation4 + $0x58] sm:$0xff] }
0x16b4   :  { %vm1965_vm13 = vcmp.eq.f32.partialorder %v1964_v16, 8.507059e+37 }
0x16b5   :  { %v2089_v7 = vmul.f32 %v3149_v48, %v2088_v56  ;;  %v1798_v56 = vld [vmem:[#allocation4 + $0x50] sm:$0xff] }
0x16b7   :  { %v3151_v0 = vpop.eup %3150  ;;  %v2090_v22 = vadd.f32 %v3149_v48, %v2089_v7  ;;  %v1796_v7 = vld [vmem:[#allocation4 + $0x40] sm:$0xff] }
0x16b8   :  { %v1956_v55 = vmul.f32 %v3151_v0, %v1954_v33  ;;  %v3153_v61 = vpop.eup %3152  ;;  %vm1961_vm8 = vweird.f32 %v3151_v0  ;;  %v1802_v33 = vld [vmem:[#allocation4 + $0x70] sm:$0xff] }
0x16b9   :  { %v2094_v60 = vsel %vm2093_vm6, %v3149_v48, %v2090_v22  ;;  %vm1962_vm12 = vmor %vm1960_vm11, %vm1961_vm8  ;;  %v3155_v21 = vpop.eup %3154  ;;  %2010 = vmatpush.msrb.mxu3 %v1802_v33  ;;  %2210 = vmatpush.msra.mxu1 %v1802_v33  ;;  %v1800_v48 = vld [vmem:[#allocation4 + $0x60] sm:$0xff] }
0x16ba   :  { %v2099_v18 = vsel %vm2096_vm7, %v2098_v34, %v2094_v60  ;;  %v1957_v24 = vsub.f32 1.0, %v1956_v55  ;;  %2410 = vmatpush.msra.mxu2 %v1802_v33 }
0x16bb   :  { %v2102_v47 = vsel %vm3453_vm5, %v3153_v61, %v2099_v18 }
0x16bc   :  { %2105 = vrot.lane.b32.xlu2 %v2102_v47, %s3330_s14  ;;  %v1958_v63 = vmul.f32 %v3151_v0, %v1957_v24  ;;  %v2103_v44 = vmul.f32 %v2102_v47, %v4066_v57 }
0x16be   :  { %v1959_v53 = vadd.f32 %v3151_v0, %v1958_v63 }
0x16c0   :  { %v1963_v20 = vsel %vm1962_vm12, %v3151_v0, %v1959_v53 }
0x16c1   :  { %v1968_v17 = vsel %vm1965_vm13, %v1967_v19, %v1963_v20 }
0x16c2   :  { %v1971_v26 = vsel %vm3453_vm5, %v3155_v21, %v1968_v17 }
0x16c3   :  { %1974 = vrot.lane.b32.xlu1 %v1971_v26, %s3330_s14  ;;  %v1972_v57 = vmul.f32 %v1971_v26, %v4055_v8  ;;  %v1810_v8 = vld [vmem:[%s4387_s1 + $0x10] sm:$0xff] }
0x16c4   :  { %2899 = vmatmul.msk.f32.gmra.mxu1 %vm117_vm1, %v1810_v8 }
0x170d   :  { %v1769_v9 = vpop.permute.xlu0 %1768 }
0x170e   :  { %v1771_v42 = vmul.f32 %v1769_v9, %v4128_v30 }
0x1710   :  { %1773 = vrot.lane.b32.xlu0 %v1771_v42, %s3331_s15 }
0x1716   :  { %v2106_v37 = vpop.permute.xlu2 %2105 }
0x1717   :  { %v2108_v35 = vmul.f32 %v2106_v37, %v2102_v47 }
0x1719   :  { %2110 = vrot.lane.b32.xlu2 %v2108_v35, %s3331_s15 }
0x1735   :  { %v1975_v49 = vpop.permute.xlu1 %1974 }
0x1736   :  { %v1977_v59 = vmul.f32 %v1975_v49, %v1971_v26 }
0x1738   :  { %1979 = vrot.lane.b32.xlu1 %v1977_v59, %s3331_s15 }
0x1773   :  { %v2111_v14 = vpop.permute.xlu2 %2110 }
0x1774   :  { %v4149_v39 = vadd.f32 %v2111_v14, %v2103_v44 }
0x1776   :  { %3156 = vtanh.f32 %v4149_v39 }
0x177c   :  { %v3157_v1 = vpop.eup %3156 }
0x177d   :  { %2116 = vrot.lane.b32.xlu2 %v3157_v1, %s3330_s14  ;;  %v4205_v1 = vld [vmem:[%s4396_s10 + $0x2] ss:$0 sm:$0xff] }
0x1782   :  { %v1774_v54 = vpop.permute.xlu0 %1773 }
0x1783   :  { %v4155_v11 = vadd.f32 %v1774_v54, %v1766_v45 }
0x1785   :  { %3158 = vtanh.f32 %v4155_v11 }
0x178b   :  { %v3159_v41 = vpop.eup %3158 }
0x178c   :  { %1779 = vrot.lane.b32.xlu0 %v3159_v41, %s3330_s14 }
0x17aa   :  { %v1980_v27 = vpop.permute.xlu1 %1979 }
0x17ab   :  { %v4160_v46 = vadd.f32 %v1980_v27, %v1972_v57 }
0x17ad   :  { %3160 = vtanh.f32 %v4160_v46 }
0x17b3   :  { %v3161_v4 = vpop.eup %3160 }
0x17b4   :  { %1985 = vrot.lane.b32.xlu1 %v3161_v4, %s3330_s14 }
0x17d7   :  { %v2117_v28 = vpop.permute.xlu2 %2116 }
0x17d8   :  { %v2119_v12 = vmul.f32 %v2117_v28, %v2102_v47 }
0x17da   :  { %2121 = vrot.lane.b32.xlu2 %v2119_v12, %s3331_s15 }
0x17fe   :  { %v1780_v43 = vpop.permute.xlu0 %1779 }
0x17ff   :  { %v1782_v31 = vmul.f32 %v1780_v43, %v4128_v30  ;;  %v1801_v30 = vld [vmem:[#allocation4 + $0x68] sm:$0xff] }
0x1800   :  { %2011 = vmatpush.msrb.mxu3 %v1801_v30  ;;  %2211 = vmatpush.msra.mxu1 %v1801_v30 }
0x1801   :  { %1994 = vrot.lane.b32.xlu1 %v1782_v31, %s3330_s14  ;;  %2411 = vmatpush.msra.mxu2 %v1801_v30 }
0x1802   :  { %2012 = vmatpush.msrb.mxu3 %v1800_v48  ;;  %2212 = vmatpush.msra.mxu1 %v1800_v48 }
0x1803   :  { %2412 = vmatpush.msra.mxu2 %v1800_v48 }
0x1804   :  { %2013 = vmatpush.msrb.mxu3 %v1799_v50  ;;  %2213 = vmatpush.msra.mxu1 %v1799_v50 }
0x1805   :  { %2413 = vmatpush.msra.mxu2 %v1799_v50 }
0x1806   :  { %2014 = vmatpush.msrb.mxu3 %v1798_v56  ;;  %2214 = vmatpush.msra.mxu1 %v1798_v56 }
0x1807   :  { %2414 = vmatpush.msra.mxu2 %v1798_v56 }
0x1808   :  { %2015 = vmatpush.msrb.mxu3 %v1797_v2  ;;  %2215 = vmatpush.msra.mxu1 %v1797_v2 }
0x1809   :  { %2415 = vmatpush.msra.mxu2 %v1797_v2 }
0x180a   :  { %2016 = vmatpush.msrb.mxu3 %v1796_v7  ;;  %2216 = vmatpush.msra.mxu1 %v1796_v7 }
0x180b   :  { %2416 = vmatpush.msra.mxu2 %v1796_v7 }
0x180c   :  { %2339 = vmatpush.msra.mxu3 %v4075_v51  ;;  %2539 = vmatpush.msrb.mxu1 %v4075_v51 }
0x180e   :  { %2340 = vmatpush.msra.mxu3 %v4077_v29  ;;  %2540 = vmatpush.msrb.mxu1 %v4077_v29 }
0x1810   :  { %2341 = vmatpush.msra.mxu3 %v4080_v62  ;;  %2541 = vmatpush.msrb.mxu1 %v4080_v62 }
0x1812   :  { %2342 = vmatpush.msra.mxu3 %v4087_v6  ;;  %2542 = vmatpush.msrb.mxu1 %v4087_v6  ;;  %v1853_v6 = vpop.f32.mrf.mxu1 }
0x1814   :  { %2343 = vmatpush.msra.mxu3 %v4090_v38  ;;  %2543 = vmatpush.msrb.mxu1 %v4090_v38  ;;  %v1854_v38 = vadd.f32 %v4034_v32, %v1853_v6 }
0x1816   :  { %2344 = vmatpush.msra.mxu3 %v4093_v13  ;;  %2544 = vmatpush.msrb.mxu1 %v4093_v13 }
0x1818   :  { %2345 = vmatpush.msra.mxu3 %v4096_v58  ;;  %2545 = vmatpush.msrb.mxu1 %v4096_v58 }
0x181a   :  { %2346 = vmatpush.msra.mxu3 %v4102_v52  ;;  %2546 = vmatpush.msrb.mxu1 %v4102_v52 }
0x1826   :  { %v1986_v25 = vpop.permute.xlu1 %1985 }
0x1827   :  { %v1988_v36 = vmul.f32 %v1986_v25, %v1971_v26 }
0x1829   :  { %2124 = vrot.lane.b32.xlu2 %v1988_v36, %s3330_s14  ;;  %1990 = vrot.lane.b32.xlu0 %v1988_v36, %s3331_s15 }
0x1834   :  { %v2122_v15 = vpop.permute.xlu2 %2121 }
0x1835   :  { %2913 = vmatmul.msk.f32.vlgmr.msrb.gmra.mxu2 %vm187_vm9, %v2122_v15 }
0x1873   :  { %v1995_v51 = vpop.permute.xlu1 %1994 }
0x1883   :  { %v2125_v10 = vpop.permute.xlu2 %2124 }
0x1884   :  { %v2127_v0 = vsel %vm187_vm9, %v2122_v15, %v2125_v10 }
0x1885   :  { %2909 = vmatmul.msk.f32.vlgmr.msra.gmra.mxu0 %vm255_vm10, %v2127_v0 }
0x189b   :  { %v1991_v29 = vpop.permute.xlu0 %1990 }
0x189c   :  { %v1997_v62 = vsel %vm187_vm9, %v1991_v29, %v1995_v51 }
0x189d   :  { %2905 = vmatmul.msk.f32.vlgmr.msrb.gmra.mxu3 %vm255_vm10, %v1997_v62 }
0x189e   :  { %2609 = vmatpush.msrb.mxu3 %v1803_v40 }
0x18a0   :  { %2610 = vmatpush.msrb.mxu3 %v1802_v33 }
0x18a2   :  { %2611 = vmatpush.msrb.mxu3 %v1801_v30 }
0x18a4   :  { %2612 = vmatpush.msrb.mxu3 %v1800_v48 }
0x18a6   :  { %2613 = vmatpush.msrb.mxu3 %v1799_v50 }
0x18a8   :  { %2614 = vmatpush.msrb.mxu3 %v1798_v56 }
0x18aa   :  { %2615 = vmatpush.msrb.mxu3 %v1797_v2 }
0x18ac   :  { %2616 = vmatpush.msrb.mxu3 %v1796_v7 }
0x18b8   :  { %v2278_v13 = vpop.f32.mrf.mxu2 }
0x18b9   :  { %v2281_v58 = vadd.f32 %v2278_v13, %v1854_v38 }
0x18bb   :  { %v2914_v52 = vmul.f32 -1.442695, %v2281_v58 }
0x18bd   :  { %3162 = vpow2.f32 %v2914_v52 }
0x18c3   :  { %v3163_v22 = vpop.eup %3162 }
0x18c4   :  { %v2285_v34 = vadd.f32 1.0, %v3163_v22 }
0x18c6   :  { %3164 = vrcp.f32 %v2285_v34  ;;  %v2297_v18 = vand.u32 2147483648, %v2285_v34  ;;  %v2295_v47 = vand.u32 2147483647, %v2285_v34  ;;  %vm2291_vm14 = vweird.f32 %v2285_v34 }
0x18c7   :  { %3166 = vtanh.f32 %v2281_v58 }
0x18c8   :  { %v2298_v63 = vor.u32 1.1754944e-38, %v2297_v18  ;;  %vm2296_vm2 = vcmp.eq.f32.partialorder %v2295_v47, 8.507059e+37 }
0x18cc   :  { %v3165_v55 = vpop.eup %3164 }
0x18cd   :  { %v2287_v60 = vmul.f32 %v3165_v55, %v2285_v34  ;;  %vm2292_vm0 = vweird.f32 %v3165_v55  ;;  %v3167_v53 = vpop.eup %3166 }
0x18ce   :  { %vm2293_vm15 = vmor %vm2291_vm14, %vm2292_vm0 }
0x18cf   :  { %v2288_v61 = vsub.f32 1.0, %v2287_v60 }
0x18d1   :  { %v2289_v24 = vmul.f32 %v3165_v55, %v2288_v61 }
0x18d3   :  { %v2290_v3 = vadd.f32 %v3165_v55, %v2289_v24 }
0x18d5   :  { %v2294_v16 = vsel %vm2293_vm15, %v3165_v55, %v2290_v3 }
0x18d6   :  { %v2299_v19 = vsel %vm2296_vm2, %v2298_v63, %v2294_v16 }
0x18d7   :  { %v4197_v20 = vsel %vm3453_vm5, %v3167_v53, %v2299_v19 }
0x18d8   :  { %2305 = vrot.lane.b32.xlu1 %v4197_v20, %s3330_s14  ;;  %v2303_v13 = vmul.f32 %v4197_v20, %v4149_v39 }
0x1902   :  { %v2148_v21 = vpop.f32.mrf.mxu0 }
0x1903   :  { %v2149_v17 = vadd.f32 %v4135_v5, %v2148_v21 }
0x1905   :  { %v2910_v26 = vmul.f32 -1.442695, %v2149_v17 }
0x1907   :  { %3168 = vpow2.f32 %v2910_v26 }
0x190d   :  { %v3169_v9 = vpop.eup %3168 }
0x190e   :  { %v2154_v42 = vadd.f32 1.0, %v3169_v9 }
0x1910   :  { %3170 = vrcp.f32 %v2154_v42  ;;  %v2166_v59 = vand.u32 2147483648, %v2154_v42  ;;  %v2164_v14 = vand.u32 2147483647, %v2154_v42  ;;  %vm2160_vm4 = vweird.f32 %v2154_v42 }
0x1911   :  { %3172 = vtanh.f32 %v2149_v17 }
0x1912   :  { %v2167_v54 = vor.u32 1.1754944e-38, %v2166_v59  ;;  %vm2165_vm7 = vcmp.eq.f32.partialorder %v2164_v14, 8.507059e+37 }
0x1916   :  { %v3171_v37 = vpop.eup %3170 }
0x1917   :  { %v2156_v35 = vmul.f32 %v3171_v37, %v2154_v42  ;;  %vm2161_vm3 = vweird.f32 %v3171_v37  ;;  %v3173_v57 = vpop.eup %3172 }
0x1918   :  { %vm2162_vm6 = vmor %vm2160_vm4, %vm2161_vm3 }
0x1919   :  { %v2157_v49 = vsub.f32 1.0, %v2156_v35 }
0x191b   :  { %v2158_v44 = vmul.f32 %v3171_v37, %v2157_v49 }
0x191d   :  { %v2159_v45 = vadd.f32 %v3171_v37, %v2158_v44 }
0x191f   :  { %v2163_v41 = vsel %vm2162_vm6, %v3171_v37, %v2159_v45 }
0x1920   :  { %v2018_v27 = vpop.f32.mrf.mxu3  ;;  %v2168_v4 = vsel %vm2165_vm7, %v2167_v54, %v2163_v41 }
0x1921   :  { %v2019_v28 = vadd.f32 %v4205_v1, %v2018_v27  ;;  %v2171_v12 = vsel %vm3453_vm5, %v3173_v57, %v2168_v4 }
0x1922   :  { %2174 = vrot.lane.b32.xlu0 %v2171_v12, %s3330_s14  ;;  %v2172_v39 = vmul.f32 %v2171_v12, %v4160_v46  ;;  %v1811_v46 = vld [vmem:[%s4387_s1 + $0x18] sm:$0xff] }
0x1923   :  { %v2906_v43 = vmul.f32 -1.442695, %v2019_v28  ;;  %2900 = vmatmul.msk.f32.gmra.mxu1 %vm117_vm1, %v1811_v46 }
0x1925   :  { %3174 = vpow2.f32 %v2906_v43 }
0x192b   :  { %v3175_v31 = vpop.eup %3174 }
0x192c   :  { %v2024_v8 = vadd.f32 1.0, %v3175_v31 }
0x192e   :  { %3176 = vrcp.f32 %v2024_v8  ;;  %v2036_v40 = vand.u32 2147483648, %v2024_v8  ;;  %v2034_v30 = vand.u32 2147483647, %v2024_v8  ;;  %vm2030_vm11 = vweird.f32 %v2024_v8 }
0x192f   :  { %3178 = vtanh.f32 %v2019_v28 }
0x1930   :  { %v2037_v50 = vor.u32 1.1754944e-38, %v2036_v40  ;;  %vm2035_vm13 = vcmp.eq.f32.partialorder %v2034_v30, 8.507059e+37 }
0x1934   :  { %v3177_v25 = vpop.eup %3176 }
0x1935   :  { %v2026_v36 = vmul.f32 %v3177_v25, %v2024_v8  ;;  %vm2031_vm8 = vweird.f32 %v3177_v25  ;;  %v3179_v2 = vpop.eup %3178 }
0x1936   :  { %vm2032_vm12 = vmor %vm2030_vm11, %vm2031_vm8 }
0x1937   :  { %v2027_v15 = vsub.f32 1.0, %v2026_v36 }
0x1939   :  { %v2028_v33 = vmul.f32 %v3177_v25, %v2027_v15 }
0x193b   :  { %v2029_v48 = vadd.f32 %v3177_v25, %v2028_v33 }
0x193d   :  { %v2033_v56 = vsel %vm2032_vm12, %v3177_v25, %v2029_v48 }
0x193e   :  { %v2038_v7 = vsel %vm2035_vm13, %v2037_v50, %v2033_v56 }
0x193f   :  { %v2041_v10 = vsel %vm3453_vm5, %v3179_v2, %v2038_v7 }
0x1940   :  { %2044 = vrot.lane.b32.xlu2 %v2041_v10, %s3330_s14  ;;  %v2042_v34 = vmul.f32 %v2041_v10, %v4155_v11 }
0x194a   :  { %v2306_v0 = vpop.permute.xlu1 %2305 }
0x194b   :  { %v2308_v51 = vmul.f32 %v2306_v0, %v4197_v20 }
0x194d   :  { %2310 = vrot.lane.b32.xlu1 %v2308_v51, %s3331_s15 }
0x1994   :  { %v2175_v29 = vpop.permute.xlu0 %2174 }
0x1995   :  { %v2177_v62 = vmul.f32 %v2175_v29, %v2171_v12 }
0x1997   :  { %2179 = vrot.lane.b32.xlu0 %v2177_v62, %s3331_s15 }
0x199a   :  { %v2045_v6 = vpop.permute.xlu2 %2044 }
0x199b   :  { %v2047_v38 = vmul.f32 %v2045_v6, %v2041_v10 }
0x199d   :  { %2049 = vrot.lane.b32.xlu2 %v2047_v38, %s3331_s15 }
0x19a0   :  { %v1856_v37 = vpop.f32.mrf.mxu1 }
0x19a1   :  { %v1857_v35 = vadd.f32 %v4034_v32, %v1856_v37 }
0x19bf   :  { %v2311_v58 = vpop.permute.xlu1 %2310 }
0x19c0   :  { %v4220_v52 = vadd.f32 %v2311_v58, %v2303_v13 }
0x19c2   :  { %3180 = vtanh.f32 %v4220_v52 }
0x19c8   :  { %v3181_v22 = vpop.eup %3180 }
0x19c9   :  { %2316 = vrot.lane.b32.xlu1 %v3181_v22, %s3330_s14 }
0x19f7   :  { %v2050_v55 = vpop.permute.xlu2 %2049 }
0x19f8   :  { %v4225_v60 = vadd.f32 %v2050_v55, %v2042_v34 }
0x19fa   :  { %3182 = vtanh.f32 %v4225_v60 }
0x1a00   :  { %v3183_v61 = vpop.eup %3182 }
0x1a01   :  { %2055 = vrot.lane.b32.xlu2 %v3183_v61, %s3330_s14 }
0x1a09   :  { %v2180_v18 = vpop.permute.xlu0 %2179 }
0x1a0a   :  { %v4230_v24 = vadd.f32 %v2180_v18, %v2172_v39 }
0x1a0c   :  { %3184 = vtanh.f32 %v4230_v24 }
0x1a12   :  { %v3185_v47 = vpop.eup %3184 }
0x1a13   :  { %2185 = vrot.lane.b32.xlu0 %v3185_v47, %s3330_s14 }
0x1a3b   :  { %v2317_v3 = vpop.permute.xlu1 %2316 }
0x1a3c   :  { %v2319_v11 = vmul.f32 %v2317_v3, %v4197_v20 }
0x1a3e   :  { %2321 = vrot.lane.b32.xlu0 %v2319_v11, %s3331_s15 }
0x1a5b   :  { %v2056_v63 = vpop.permute.xlu2 %2055 }
0x1a5c   :  { %v4236_v16 = vmul.f32 %v2056_v63, %v2041_v10 }
0x1a5e   :  { %2194 = vrot.lane.b32.xlu0 %v4236_v16, %s3330_s14 }
0x1a85   :  { %v2186_v53 = vpop.permute.xlu0 %2185 }
0x1a86   :  { %v2188_v19 = vmul.f32 %v2186_v53, %v2171_v12 }
0x1a88   :  { %2190 = vrot.lane.b32.xlu2 %v2188_v19, %s3331_s15  ;;  %2324 = vrot.lane.b32.xlu1 %v2188_v19, %s3330_s14 }
0x1ab0   :  { %v2322_v20 = vpop.permute.xlu0 %2321 }
0x1ab1   :  { %2919 = vmatmul.msk.f32.vlgmr.msrb.gmra.mxu0 %vm187_vm9, %v2322_v20 }
0x1ad0   :  { %v2195_v21 = vpop.permute.xlu0 %2194 }
0x1ae2   :  { %v2191_v17 = vpop.permute.xlu2 %2190 }
0x1ae3   :  { %v2197_v26 = vsel %vm187_vm9, %v2191_v17, %v2195_v21 }
0x1ae4   :  { %2911 = vmatmul.msk.f32.vlgmr.msra.gmra.mxu1 %vm255_vm10, %v2197_v26 }
0x1afa   :  { %v2325_v9 = vpop.permute.xlu1 %2324 }
0x1afb   :  { %v2327_v42 = vsel %vm187_vm9, %v2322_v20, %v2325_v9 }
0x1afc   :  { %2915 = vmatmul.msk.f32.vlgmr.msra.gmra.mxu3 %vm255_vm10, %v2327_v42 }
0x1b2e   :  { %v2478_v49 = vpop.f32.mrf.mxu0 }
0x1b2f   :  { %v2481_v59 = vadd.f32 %v2478_v49, %v1857_v35 }
0x1b31   :  { %v2920_v44 = vmul.f32 -1.442695, %v2481_v59 }
0x1b33   :  { %3186 = vpow2.f32 %v2920_v44 }
0x1b39   :  { %v3187_v14 = vpop.eup %3186 }
0x1b3a   :  { %v2485_v45 = vadd.f32 1.0, %v3187_v14 }
0x1b3c   :  { %3188 = vrcp.f32 %v2485_v45  ;;  %v2497_v27 = vand.u32 2147483648, %v2485_v45  ;;  %v2495_v28 = vand.u32 2147483647, %v2485_v45  ;;  %vm2491_vm0 = vweird.f32 %v2485_v45 }
0x1b3d   :  { %3190 = vtanh.f32 %v2481_v59 }
0x1b3e   :  { %v2498_v43 = vor.u32 1.1754944e-38, %v2497_v27  ;;  %vm2496_vm15 = vcmp.eq.f32.partialorder %v2495_v28, 8.507059e+37 }
0x1b42   :  { %v3189_v54 = vpop.eup %3188 }
0x1b43   :  { %v2487_v41 = vmul.f32 %v3189_v54, %v2485_v45  ;;  %vm2492_vm1 = vweird.f32 %v3189_v54  ;;  %v3191_v31 = vpop.eup %3190 }
0x1b44   :  { %vm2493_vm14 = vmor %vm2491_vm0, %vm2492_vm1 }
0x1b45   :  { %v2488_v57 = vsub.f32 1.0, %v2487_v41 }
0x1b47   :  { %v2489_v4 = vmul.f32 %v3189_v54, %v2488_v57 }
0x1b49   :  { %v2490_v12 = vadd.f32 %v3189_v54, %v2489_v4 }
0x1b4b   :  { %v2494_v32 = vsel %vm2493_vm14, %v3189_v54, %v2490_v12 }
0x1b4c   :  { %v2499_v8 = vsel %vm2496_vm15, %v2498_v43, %v2494_v32 }
0x1b4d   :  { %v4254_v25 = vsel %vm3453_vm5, %v3191_v31, %v2499_v8 }
0x1b4e   :  { %2505 = vrot.lane.b32.xlu0 %v4254_v25, %s3330_s14  ;;  %v2503_v49 = vmul.f32 %v4254_v25, %v4220_v52 }
0x1b61   :  { %v2218_v36 = vpop.f32.mrf.mxu1 }
0x1b62   :  { %v2219_v15 = vadd.f32 %v4205_v1, %v2218_v36 }
0x1b64   :  { %v2912_v40 = vmul.f32 -1.442695, %v2219_v15 }
0x1b66   :  { %3192 = vpow2.f32 %v2912_v40 }
0x1b6c   :  { %v3193_v33 = vpop.eup %3192 }
0x1b6d   :  { %v2224_v30 = vadd.f32 1.0, %v3193_v33 }
0x1b6f   :  { %3194 = vrcp.f32 %v2224_v30  ;;  %v2236_v2 = vand.u32 2147483648, %v2224_v30  ;;  %v2234_v10 = vand.u32 2147483647, %v2224_v30  ;;  %vm2230_vm3 = vweird.f32 %v2224_v30 }
0x1b70   :  { %3196 = vtanh.f32 %v2219_v15 }
0x1b71   :  { %v2237_v51 = vor.u32 1.1754944e-38, %v2236_v2  ;;  %vm2235_vm6 = vcmp.eq.f32.partialorder %v2234_v10, 8.507059e+37 }
0x1b75   :  { %v3195_v48 = vpop.eup %3194 }
0x1b76   :  { %v2226_v50 = vmul.f32 %v3195_v48, %v2224_v30  ;;  %vm2231_vm2 = vweird.f32 %v3195_v48  ;;  %v3197_v62 = vpop.eup %3196 }
0x1b77   :  { %vm2232_vm4 = vmor %vm2230_vm3, %vm2231_vm2 }
0x1b78   :  { %v2227_v56 = vsub.f32 1.0, %v2226_v50 }
0x1b7a   :  { %v2228_v7 = vmul.f32 %v3195_v48, %v2227_v56 }
0x1b7c   :  { %v2229_v0 = vadd.f32 %v3195_v48, %v2228_v7 }
0x1b7e   :  { %v2233_v29 = vsel %vm2232_vm4, %v3195_v48, %v2229_v0 }
0x1b7f   :  { %v2348_v6 = vpop.f32.mrf.mxu3  ;;  %v2238_v38 = vsel %vm2235_vm6, %v2237_v51, %v2233_v29 }
0x1b80   :  { %v2349_v13 = vadd.f32 %v4135_v5, %v2348_v6  ;;  %v2241_v58 = vsel %vm3453_vm5, %v3197_v62, %v2238_v38 }
0x1b81   :  { %2244 = vrot.lane.b32.xlu1 %v2241_v58, %s3330_s14  ;;  %v2242_v27 = vmul.f32 %v2241_v58, %v4225_v60 }
0x1b82   :  { %v2916_v22 = vmul.f32 -1.442695, %v2349_v13 }
0x1b84   :  { %3198 = vpow2.f32 %v2916_v22 }
0x1b8a   :  { %v3199_v34 = vpop.eup %3198 }
0x1b8b   :  { %v2354_v55 = vadd.f32 1.0, %v3199_v34 }
0x1b8d   :  { %3200 = vrcp.f32 %v2354_v55  ;;  %v2366_v47 = vand.u32 2147483648, %v2354_v55  ;;  %v2364_v11 = vand.u32 2147483647, %v2354_v55  ;;  %vm2360_vm8 = vweird.f32 %v2354_v55 }
0x1b8e   :  { %3202 = vtanh.f32 %v2349_v13 }
0x1b8f   :  { %v2367_v46 = vor.u32 1.1754944e-38, %v2366_v47  ;;  %vm2365_vm12 = vcmp.eq.f32.partialorder %v2364_v11, 8.507059e+37 }
0x1b93   :  { %v3201_v61 = vpop.eup %3200 }
0x1b94   :  { %v2356_v39 = vmul.f32 %v3201_v61, %v2354_v55  ;;  %vm2361_vm7 = vweird.f32 %v3201_v61  ;;  %v3203_v19 = vpop.eup %3202 }
0x1b95   :  { %vm2362_vm11 = vmor %vm2360_vm8, %vm2361_vm7 }
0x1b96   :  { %v2357_v18 = vsub.f32 1.0, %v2356_v39 }
0x1b98   :  { %v2358_v3 = vmul.f32 %v3201_v61, %v2357_v18 }
0x1b9a   :  { %v2359_v63 = vadd.f32 %v3201_v61, %v2358_v3 }
0x1b9c   :  { %v2363_v53 = vsel %vm2362_vm11, %v3201_v61, %v2359_v63 }
0x1b9d   :  { %v2368_v20 = vsel %vm2365_vm12, %v2367_v46, %v2363_v53 }
0x1b9e   :  { %v2371_v21 = vsel %vm3453_vm5, %v3203_v19, %v2368_v20 }
0x1b9f   :  { %2374 = vrot.lane.b32.xlu2 %v2371_v21, %s3330_s14  ;;  %v2372_v45 = vmul.f32 %v2371_v21, %v4230_v24 }
0x1bc0   :  { %v2506_v17 = vpop.permute.xlu0 %2505 }
0x1bc1   :  { %v2508_v26 = vmul.f32 %v2506_v17, %v4254_v25 }
0x1bc3   :  { %2510 = vrot.lane.b32.xlu0 %v2508_v26, %s3331_s15 }
0x1bf3   :  { %v2245_v9 = vpop.permute.xlu1 %2244 }
0x1bf4   :  { %v2247_v42 = vmul.f32 %v2245_v9, %v2241_v58 }
0x1bf6   :  { %2249 = vrot.lane.b32.xlu1 %v2247_v42, %s3331_s15 }
0x1bf9   :  { %v2375_v37 = vpop.permute.xlu2 %2374 }
0x1bfa   :  { %v2377_v35 = vmul.f32 %v2375_v37, %v2371_v21 }
0x1bfc   :  { %2379 = vrot.lane.b32.xlu2 %v2377_v35, %s3331_s15 }
0x1c35   :  { %v2511_v59 = vpop.permute.xlu0 %2510 }
0x1c36   :  { %v2513_v44 = vadd.f32 %v2511_v59, %v2503_v49 }
0x1c38   :  { %3204 = vtanh.f32 %v2513_v44 }
0x1c3e   :  { %v3205_v14 = vpop.eup %3204 }
0x1c3f   :  { %2516 = vrot.lane.b32.xlu0 %v3205_v14, %s3330_s14 }
0x1c56   :  { %v2380_v54 = vpop.permute.xlu2 %2379 }
0x1c57   :  { %v4274_v41 = vadd.f32 %v2380_v54, %v2372_v45 }
0x1c59   :  { %3206 = vtanh.f32 %v4274_v41 }
0x1c5f   :  { %v3207_v57 = vpop.eup %3206 }
0x1c60   :  { %2385 = vrot.lane.b32.xlu2 %v3207_v57, %s3330_s14 }
0x1c68   :  { %v2250_v4 = vpop.permute.xlu1 %2249 }
0x1c69   :  { %v4279_v52 = vadd.f32 %v2250_v4, %v2242_v27 }
0x1c6b   :  { %3208 = vtanh.f32 %v4279_v52 }
0x1c71   :  { %v3209_v28 = vpop.eup %3208 }
0x1c72   :  { %2255 = vrot.lane.b32.xlu1 %v3209_v28, %s3330_s14 }
0x1cb1   :  { %v2517_v12 = vpop.permute.xlu0 %2516 }
0x1cb2   :  { %v2519_v24 = vmul.f32 %v2517_v12, %v4254_v25 }
0x1cb4   :  { %2521 = vrot.lane.b32.xlu0 %v2519_v24, %s3331_s15 }
0x1cba   :  { %v2386_v43 = vpop.permute.xlu2 %2385 }
0x1cbb   :  { %v2388_v32 = vmul.f32 %v2386_v43, %v2371_v21 }
0x1cbd   :  { %2390 = vrot.lane.b32.xlu1 %v2388_v32, %s3331_s15 }
0x1cc5   :  { %2524 = vrot.lane.b32.xlu1 %v2388_v32, %s3330_s14 }
0x1ce4   :  { %v2256_v60 = vpop.permute.xlu1 %2255 }
0x1ce5   :  { %v4287_v31 = vmul.f32 %v2256_v60, %v2241_v58 }
0x1ce7   :  { %2394 = vrot.lane.b32.xlu2 %v4287_v31, %s3330_s14 }
0x1d26   :  { %v2522_v36 = vpop.permute.xlu0 %2521 }
0x1d2f   :  { %v2391_v8 = vpop.permute.xlu1 %2390 }
0x1d37   :  { %v2525_v15 = vpop.permute.xlu1 %2524 }
0x1d38   :  { %v2527_v40 = vsel %vm187_vm9, %v2522_v36, %v2525_v15 }
0x1d39   :  { %2921 = vmatmul.msk.f32.vlgmr.msrb.gmra.mxu1 %vm255_vm10, %v2527_v40 }
0x1d41   :  { %v2395_v25 = vpop.permute.xlu2 %2394 }
0x1d42   :  { %v2397_v33 = vsel %vm187_vm9, %v2391_v8, %v2395_v25 }
0x1d43   :  { %2917 = vmatmul.msk.f32.vlgmr.msra.gmra.mxu2 %vm255_vm10, %v2397_v33 }
0x1db6   :  { %v2548_v30 = vpop.f32.mrf.mxu1 }
0x1db7   :  { %v2549_v48 = vadd.f32 %v4135_v5, %v2548_v30 }
0x1db9   :  { %v2922_v50 = vmul.f32 -1.442695, %v2549_v48 }
0x1dbb   :  { %3210 = vpow2.f32 %v2922_v50 }
0x1dc1   :  { %v3211_v56 = vpop.eup %3210 }
0x1dc2   :  { %v2554_v2 = vadd.f32 1.0, %v3211_v56 }
0x1dc4   :  { %3212 = vrcp.f32 %v2554_v2  ;;  %v2566_v6 = vand.u32 2147483648, %v2554_v2  ;;  %v2564_v13 = vand.u32 2147483647, %v2554_v2  ;;  %vm2560_vm1 = vweird.f32 %v2554_v2 }
0x1dc6   :  { %v2418_v7 = vpop.f32.mrf.mxu2  ;;  %v2567_v34 = vor.u32 1.1754944e-38, %v2566_v6  ;;  %vm2565_vm14 = vcmp.eq.f32.partialorder %v2564_v13, 8.507059e+37  ;;  %v2660_v6 = vld [vmem:[%s4397_s11 + $0x8] sm:$0xff] }
0x1dc7   :  { %v2419_v10 = vadd.f32 %v4205_v1, %v2418_v7 }
0x1dc9   :  { %v2918_v0 = vmul.f32 -1.442695, %v2419_v10 }
0x1dca   :  { %v3213_v51 = vpop.eup %3212 }
0x1dcb   :  { %3214 = vpow2.f32 %v2918_v0  ;;  %v2556_v29 = vmul.f32 %v3213_v51, %v2554_v2  ;;  %vm2561_vm13 = vweird.f32 %v3213_v51 }
0x1dcc   :  { %3216 = vtanh.f32 %v2549_v48  ;;  %vm2562_vm0 = vmor %vm2560_vm1, %vm2561_vm13  ;;  %vm2829_vm1 = vcmask 7168  }
0x1dcd   :  { %v2557_v62 = vsub.f32 1.0, %v2556_v29  ;;  %v2662_v29 = vld [vmem:[%s4397_s11 + $0x18] sm:$0xff] }
0x1dce   :  { %2696 = vmatpush.msra.mxu0 %v2662_v29 }
0x1dcf   :  { %v2558_v38 = vmul.f32 %v3213_v51, %v2557_v62  ;;  %v2661_v62 = vld [vmem:[%s4397_s11 + $0x10] sm:$0xff] }
0x1dd0   :  { %2697 = vmatpush.msra.mxu0 %v2661_v62 }
0x1dd1   :  { %v3215_v58 = vpop.eup %3214  ;;  %v2559_v5 = vadd.f32 %v3213_v51, %v2558_v38 }
0x1dd2   :  { %v2424_v22 = vadd.f32 1.0, %v3215_v58  ;;  %v3217_v61 = vpop.eup %3216  ;;  %2698 = vmatpush.msra.mxu0 %v2660_v6  ;;  %v2785_v58 = vld [vmem:[%s4388_s2] sm:$0xff] }
0x1dd3   :  { %v2563_v55 = vsel %vm2562_vm0, %v3213_v51, %v2559_v5 }
0x1dd4   :  { %3218 = vrcp.f32 %v2424_v22  ;;  %v2568_v39 = vsel %vm2565_vm14, %v2567_v34, %v2563_v55  ;;  %v2436_v63 = vand.u32 2147483648, %v2424_v22  ;;  %v2434_v53 = vand.u32 2147483647, %v2424_v22  ;;  %2699 = vmatpush.msra.mxu0 %v2659_v23 }
0x1dd5   :  { %v2571_v18 = vsel %vm3453_vm5, %v3217_v61, %v2568_v39  ;;  %3220 = vtanh.f32 %v2419_v10  ;;  %vm2430_vm2 = vweird.f32 %v2424_v22  ;;  %v4349_v39 = vld [vmem:[%s4398_s12] ss:$0 sm:$0xff]  ;;  %s3333_s12 = smov 127  }
0x1dd6   :  { %2574 = vrot.lane.b32.xlu0 %v2571_v18, %s3330_s14  ;;  %v2437_v20 = vor.u32 1.1754944e-38, %v2436_v63  ;;  %vm2435_vm4 = vcmp.eq.f32.partialorder %v2434_v53, 8.507059e+37  ;;  %v2572_v59 = vmul.f32 %v2571_v18, %v4274_v41 }
0x1dda   :  { %v3219_v47 = vpop.eup %3218 }
0x1ddb   :  { %v2426_v3 = vmul.f32 %v3219_v47, %v2424_v22  ;;  %vm2431_vm15 = vweird.f32 %v3219_v47  ;;  %v3221_v17 = vpop.eup %3220 }
0x1ddc   :  { %vm2432_vm3 = vmor %vm2430_vm2, %vm2431_vm15 }
0x1ddd   :  { %v2427_v11 = vsub.f32 1.0, %v2426_v3 }
0x1ddf   :  { %v2428_v46 = vmul.f32 %v3219_v47, %v2427_v11 }
0x1de1   :  { %v2429_v19 = vadd.f32 %v3219_v47, %v2428_v46 }
0x1de3   :  { %v2433_v21 = vsel %vm2432_vm3, %v3219_v47, %v2429_v19 }
0x1de4   :  { %v2438_v26 = vsel %vm2435_vm4, %v2437_v20, %v2433_v21 }
0x1de5   :  { %v2441_v9 = vsel %vm3453_vm5, %v3221_v17, %v2438_v26 }
0x1de6   :  { %2444 = vrot.lane.b32.xlu2 %v2441_v9, %s3330_s14  ;;  %v2442_v54 = vmul.f32 %v2441_v9, %v4279_v52 }
0x1e40   :  { %v2445_v42 = vpop.permute.xlu2 %2444 }
0x1e41   :  { %v2447_v37 = vmul.f32 %v2445_v42, %v2441_v9 }
0x1e43   :  { %2449 = vrot.lane.b32.xlu1 %v2447_v37, %s3331_s15 }
0x1e48   :  { %v2575_v35 = vpop.permute.xlu0 %2574 }
0x1e49   :  { %v2577_v49 = vmul.f32 %v2575_v35, %v2571_v18 }
0x1e4b   :  { %2579 = vrot.lane.b32.xlu2 %v2577_v49, %s3331_s15 }
0x1ea5   :  { %v2580_v44 = vpop.permute.xlu2 %2579 }
0x1ea6   :  { %v2582_v14 = vadd.f32 %v2580_v44, %v2572_v59 }
0x1ea8   :  { %3222 = vtanh.f32 %v2582_v14 }
0x1eae   :  { %v3223_v45 = vpop.eup %3222 }
0x1eaf   :  { %2585 = vrot.lane.b32.xlu1 %v3223_v45, %s3330_s14 }
0x1eb5   :  { %v2450_v57 = vpop.permute.xlu1 %2449 }
0x1eb6   :  { %v2452_v27 = vadd.f32 %v2450_v57, %v2442_v54  ;;  %v2787_v57 = vld [vmem:[%s4388_s2 + $0x10] sm:$0xff] }
0x1eb8   :  { %3224 = vtanh.f32 %v2452_v27 }
0x1ebe   :  { %v3225_v4 = vpop.eup %3224 }
0x1ebf   :  { %2455 = vrot.lane.b32.xlu0 %v3225_v4, %s3330_s14 }
0x1f21   :  { %v2586_v28 = vpop.permute.xlu1 %2585 }
0x1f22   :  { %v2588_v12 = vmul.f32 %v2586_v28, %v2571_v18 }
0x1f24   :  { %2590 = vrot.lane.b32.xlu2 %v2588_v12, %s3331_s15 }
0x1f31   :  { %v2456_v24 = vpop.permute.xlu0 %2455 }
0x1f32   :  { %v2458_v41 = vmul.f32 %v2456_v24, %v2441_v9 }
0x1f34   :  { %2594 = vrot.lane.b32.xlu0 %v2458_v41, %s3330_s14 }
0x1f7e   :  { %v2591_v43 = vpop.permute.xlu2 %2590 }
0x1fa6   :  { %v2595_v32 = vpop.permute.xlu0 %2594 }
0x1fa7   :  { %v2597_v60 = vsel %vm187_vm9, %v2591_v43, %v2595_v32 }
0x1fa8   :  { %2923 = vmatmul.msk.f32.vlgmr.msrb.gmra.mxu3 %vm255_vm10, %v2597_v60 }
0x202b   :  { %v2618_v52 = vpop.f32.mrf.mxu3 }
0x202c   :  { %v2619_v8 = vadd.f32 %v4205_v1, %v2618_v52 }
0x202e   :  { %v2924_v36 = vmul.f32 -1.442695, %v2619_v8 }
0x2030   :  { %3226 = vpow2.f32 %v2924_v36 }
0x2036   :  { %v3227_v15 = vpop.eup %3226 }
0x2037   :  { %v2624_v40 = vadd.f32 1.0, %v3227_v15 }
0x2039   :  { %3228 = vrcp.f32 %v2624_v40  ;;  %v2636_v48 = vand.u32 2147483648, %v2624_v40  ;;  %v2634_v56 = vand.u32 2147483647, %v2624_v40  ;;  %vm2630_vm7 = vweird.f32 %v2624_v40 }
0x203a   :  { %3230 = vtanh.f32 %v2619_v8 }
0x203b   :  { %v2637_v7 = vor.u32 1.1754944e-38, %v2636_v48  ;;  %vm2635_vm10 = vcmp.eq.f32.partialorder %v2634_v56, 8.507059e+37 }
0x203f   :  { %v3229_v25 = vpop.eup %3228 }
0x2040   :  { %v2626_v33 = vmul.f32 %v3229_v25, %v2624_v40  ;;  %vm2631_vm6 = vweird.f32 %v3229_v25  ;;  %v3231_v1 = vpop.eup %3230 }
0x2041   :  { %vm2632_vm8 = vmor %vm2630_vm7, %vm2631_vm6 }
0x2042   :  { %v2627_v30 = vsub.f32 1.0, %v2626_v33 }
0x2044   :  { %v2628_v50 = vmul.f32 %v3229_v25, %v2627_v30 }
0x2046   :  { %v2629_v2 = vadd.f32 %v3229_v25, %v2628_v50 }
0x2048   :  { %v2633_v10 = vsel %vm2632_vm8, %v3229_v25, %v2629_v2 }
0x2049   :  { %v2638_v0 = vsel %vm2635_vm10, %v2637_v7, %v2633_v10  ;;  %v2788_v10 = vld [vmem:[%s4388_s2 + $0x18] sm:$0xff] }
0x204a   :  { %v2641_v51 = vsel %vm3453_vm5, %v3231_v1, %v2638_v0 }
0x204b   :  { %2644 = vrot.lane.b32.xlu1 %v2641_v51, %s3330_s14  ;;  %v2642_v5 = vmul.f32 %v2641_v51, %v2452_v27 }
0x2053   :  { %2668 = vrot.lane.b32.xlu1 %v4236_v16, %s3331_s15 }
0x20bd   :  { %v2645_v16 = vpop.permute.xlu1 %2644 }
0x20be   :  { %v2647_v38 = vmul.f32 %v2645_v16, %v2641_v51 }
0x20c0   :  { %2649 = vrot.lane.b32.xlu2 %v2647_v38, %s3331_s15 }
0x20c5   :  { %v2669_v13 = vpop.permute.xlu1 %2668 }
0x20c6   :  { %2925 = vmatmul.msk.f32.vlgmr.msra.gmra.mxu0 %vm187_vm9, %v2669_v13 }
0x20c8   :  { %2670 = vrot.lane.b32.xlu2 %v4287_v31, %s3331_s15  ;;  %v2786_v31 = vld [vmem:[%s4388_s2 + $0x8] sm:$0xff] }
0x20d0   :  { %2793 = vrot.lane.b32.xlu2 %v2785_v58, %s3332_s0 }
0x20d8   :  { %2799 = vrot.lane.b32.xlu2 %v2788_v10, %s3332_s0 }
0x211a   :  { %v2650_v22 = vpop.permute.xlu2 %2649 }
0x211b   :  { %v2652_v34 = vadd.f32 %v2650_v22, %v2642_v5 }
0x211d   :  { %3232 = vtanh.f32 %v2652_v34 }
0x2122   :  { %v2671_v55 = vpop.permute.xlu2 %2670 }
0x2123   :  { %v3233_v61 = vpop.eup %3232  ;;  %2926 = vmatmul.msk.f32.gmra.mxu0 %vm187_vm9, %v2671_v55 }
0x2124   :  { %2655 = vrot.lane.b32.xlu0 %v3233_v61, %s3330_s14 }
0x212a   :  { %v2794_v35 = vpop.permute.xlu2 %2793 }
0x212c   :  { %2672 = vrot.lane.b32.xlu0 %v2458_v41, %s3331_s15 }
0x2134   :  { %2795 = vrot.lane.b32.xlu0 %v2786_v31, %s3332_s0 }
0x2143   :  { %v2701_v18 = vpop.f32.mrf.mxu0 }
0x2144   :  { %v2702_v47 = vadd.f32 %v4349_v39, %v2701_v18 }
0x2146   :  { %v2725_v3 = vand.u32 2147483647, %v2702_v47  ;;  %v2713_v42 = vmax.f32 %v2702_v47, 0.0  ;;  %vm2717_vm11 = vcmp.ne.f32.partialorder %v2702_v47, %v2702_v47 }
0x2148   :  { %v2729_v11 = vsub.f32 0.0, %v2725_v3 }
0x214a   :  { %v2733_v63 = vmul.f32 1.442695, %v2729_v11 }
0x214c   :  { %3234 = vpow2.f32 %v2733_v63 }
0x2152   :  { %v3235_v46 = vpop.eup %3234 }
0x2153   :  { %v2741_v53 = vadd.f32 1.0, %v3235_v46  ;;  %v2744_v19 = vmul.f32 -0.5, %v3235_v46  ;;  %v2747_v21 = vand.u32 2147483647, %v3235_v46 }
0x2155   :  { %3236 = vlog2.f32 %v2741_v53  ;;  %v2745_v20 = vadd.f32 1.0, %v2744_v19  ;;  %vm2748_vm5 = vcmp.lt.f32.partialorder %v2747_v21, 0.0004427343  ;;  %v2800_v19 = vpop.permute.xlu2 %2799 }
0x2157   :  { %v2746_v9 = vmul.f32 %v3235_v46, %v2745_v20 }
0x215b   :  { %v3237_v17 = vpop.eup %3236 }
0x215c   :  { %v2743_v26 = vmul.f32 0.6931472, %v3237_v17 }
0x215e   :  { %v2749_v37 = vsel %vm2748_vm5, %v2746_v9, %v2743_v26 }
0x215f   :  { %v2777_v49 = vadd.f32 %v2749_v37, %v2713_v42 }
0x2161   :  { %v2781_v59 = vsel %vm2717_vm11, %v2702_v47, %v2777_v49 }
0x2162   :  { %v2805_v44 = vmul.f32 %v2794_v35, %v2781_v59 }
0x2164   :  { %2813 = vrot.lane.b32.xlu0 %v2805_v44, %s3333_s12 }
0x2196   :  { %v2656_v14 = vpop.permute.xlu0 %2655 }
0x2197   :  { %v2658_v45 = vmul.f32 %v2656_v14, %v2641_v51 }
0x2199   :  { %2674 = vrot.lane.b32.xlu1 %v2658_v45, %s3331_s15 }
0x219e   :  { %v2673_v54 = vpop.permute.xlu0 %2672 }
0x219f   :  { %2927 = vmatmul.msk.f32.gmra.mxu0 %vm187_vm9, %v2673_v54 }
0x21a0   :  { %v2704_v27 = vpop.f32.mrf.mxu0 }
0x21a1   :  { %v2705_v4 = vadd.f32 %v4349_v39, %v2704_v27  ;;  %2797 = vrot.lane.b32.xlu1 %v2787_v57, %s3332_s0 }
0x21a3   :  { %v2726_v28 = vand.u32 2147483647, %v2705_v4  ;;  %v2714_v40 = vmax.f32 %v2705_v4, 0.0  ;;  %vm2718_vm13 = vcmp.ne.f32.partialorder %v2705_v4, %v2705_v4 }
0x21a5   :  { %v2730_v12 = vsub.f32 0.0, %v2726_v28 }
0x21a6   :  { %v2796_v30 = vpop.permute.xlu0 %2795 }
0x21a7   :  { %v2735_v24 = vmul.f32 1.442695, %v2730_v12 }
0x21a9   :  { %3238 = vpow2.f32 %v2735_v24 }
0x21af   :  { %v3239_v41 = vpop.eup %3238 }
0x21b0   :  { %v2750_v43 = vadd.f32 1.0, %v3239_v41  ;;  %v2753_v32 = vmul.f32 -0.5, %v3239_v41  ;;  %v2756_v52 = vand.u32 2147483647, %v3239_v41 }
0x21b2   :  { %3240 = vlog2.f32 %v2750_v43  ;;  %v2754_v60 = vadd.f32 1.0, %v2753_v32  ;;  %vm2757_vm12 = vcmp.lt.f32.partialorder %v2756_v52, 0.0004427343 }
0x21b4   :  { %v2755_v15 = vmul.f32 %v3239_v41, %v2754_v60 }
0x21b8   :  { %v3241_v8 = vpop.eup %3240 }
0x21b9   :  { %v2752_v36 = vmul.f32 0.6931472, %v3241_v8 }
0x21bb   :  { %v2758_v25 = vsel %vm2757_vm12, %v2755_v15, %v2752_v36 }
0x21bc   :  { %v2778_v33 = vadd.f32 %v2758_v25, %v2714_v40 }
0x21be   :  { %v2782_v48 = vsel %vm2718_vm13, %v2705_v4, %v2778_v33 }
0x21bf   :  { %v2806_v50 = vmul.f32 %v2796_v30, %v2782_v48 }
0x21c1   :  { %2815 = vrot.lane.b32.xlu1 %v2806_v50, %s3333_s12 }
0x21d6   :  { %v2814_v56 = vpop.permute.xlu0 %2813 }
0x21d7   :  { %v2825_v2 = vadd.f32 %v2814_v56, %v2702_v47 }
0x21d9   :  { %2830 = vst.msk [vmem:[%s4399_s13] sm:$0xff] %vm2829_vm1, %v2825_v2 }
0x220b   :  { %v2675_v7 = vpop.permute.xlu1 %2674 }
0x220c   :  { %2928 = vmatmul.msk.f32.gmra.mxu0 %vm187_vm9, %v2675_v7 }
0x2213   :  { %v2798_v6 = vpop.permute.xlu1 %2797 }
0x221c   :  { %v2707_v1 = vpop.f32.mrf.mxu0 }
0x221d   :  { %v2708_v0 = vadd.f32 %v4349_v39, %v2707_v1 }
0x221f   :  { %v2727_v51 = vand.u32 2147483647, %v2708_v0  ;;  %v2715_v31 = vmax.f32 %v2708_v0, 0.0  ;;  %vm2719_vm0 = vcmp.ne.f32.partialorder %v2708_v0, %v2708_v0 }
0x2221   :  { %v2731_v29 = vsub.f32 0.0, %v2727_v51 }
0x2223   :  { %v2737_v62 = vmul.f32 1.442695, %v2731_v29 }
0x2225   :  { %3242 = vpow2.f32 %v2737_v62 }
0x222b   :  { %v3243_v23 = vpop.eup %3242 }
0x222c   :  { %v2759_v16 = vadd.f32 1.0, %v3243_v23  ;;  %v2762_v38 = vmul.f32 -0.5, %v3243_v23  ;;  %v2765_v58 = vand.u32 2147483647, %v3243_v23 }
0x222e   :  { %3244 = vlog2.f32 %v2759_v16  ;;  %v2763_v13 = vadd.f32 1.0, %v2762_v38  ;;  %vm2766_vm9 = vcmp.lt.f32.partialorder %v2765_v58, 0.0004427343 }
0x2230   :  { %v2764_v61 = vmul.f32 %v3243_v23, %v2763_v13 }
0x2233   :  { %v2816_v5 = vpop.permute.xlu1 %2815 }
0x2234   :  { %v3245_v22 = vpop.eup %3244  ;;  %v2826_v34 = vadd.f32 %v2816_v5, %v2705_v4 }
0x2235   :  { %v2761_v55 = vmul.f32 0.6931472, %v3245_v22 }
0x2236   :  { %2831 = vst.msk [vmem:[%s4399_s13 + $0x8] sm:$0xff] %vm2829_vm1, %v2826_v34 }
0x2237   :  { %v2767_v18 = vsel %vm2766_vm9, %v2764_v61, %v2761_v55 }
0x2238   :  { %v2779_v47 = vadd.f32 %v2767_v18, %v2715_v31 }
0x223a   :  { %v2783_v3 = vsel %vm2719_vm0, %v2708_v0, %v2779_v47 }
0x223b   :  { %v2807_v11 = vmul.f32 %v2798_v6, %v2783_v3 }
0x223d   :  { %2817 = vrot.lane.b32.xlu2 %v2807_v11, %s3333_s12 }
0x2289   :  { %v2710_v63 = vpop.f32.mrf.mxu0 }
0x228a   :  { %v2711_v46 = vadd.f32 %v4349_v39, %v2710_v63 }
0x228c   :  { %v2728_v53 = vand.u32 2147483647, %v2711_v46  ;;  %v2716_v14 = vmax.f32 %v2711_v46, 0.0  ;;  %vm2720_vm15 = vcmp.ne.f32.partialorder %v2711_v46, %v2711_v46 }
0x228e   :  { %v2732_v20 = vsub.f32 0.0, %v2728_v53 }
0x2290   :  { %v2739_v21 = vmul.f32 1.442695, %v2732_v20 }
0x2292   :  { %3246 = vpow2.f32 %v2739_v21 }
0x2297   :  { %v2818_v17 = vpop.permute.xlu2 %2817 }
0x2298   :  { %v3247_v26 = vpop.eup %3246  ;;  %v2827_v9 = vadd.f32 %v2818_v17, %v2708_v0 }
0x2299   :  { %v2768_v42 = vadd.f32 1.0, %v3247_v26  ;;  %v2771_v37 = vmul.f32 -0.5, %v3247_v26  ;;  %v2774_v49 = vand.u32 2147483647, %v3247_v26 }
0x229a   :  { %2832 = vst.msk [vmem:[%s4399_s13 + $0x10] sm:$0xff] %vm2829_vm1, %v2827_v9 }
0x229b   :  { %3248 = vlog2.f32 %v2768_v42  ;;  %v2772_v35 = vadd.f32 1.0, %v2771_v37  ;;  %vm2775_vm14 = vcmp.lt.f32.partialorder %v2774_v49, 0.0004427343 }
0x229d   :  { %v2773_v44 = vmul.f32 %v3247_v26, %v2772_v35 }
0x22a1   :  { %v3249_v59 = vpop.eup %3248 }
0x22a2   :  { %v2770_v39 = vmul.f32 0.6931472, %v3249_v59 }
0x22a4   :  { %v2776_v45 = vsel %vm2775_vm14, %v2773_v44, %v2770_v39 }
0x22a5   :  { %v2780_v54 = vadd.f32 %v2776_v45, %v2716_v14 }
0x22a7   :  { %v2784_v57 = vsel %vm2720_vm15, %v2711_v46, %v2780_v54 }
0x22a8   :  { %v2808_v27 = vmul.f32 %v2800_v19, %v2784_v57 }
0x22aa   :  { %2819 = vrot.lane.b32.xlu0 %v2808_v27, %s3333_s12 }
0x231c   :  { %v2820_v4 = vpop.permute.xlu0 %2819 }
0x231d   :  { %v2828_v28 = vadd.f32 %v2820_v4, %v2711_v46 }
0x231f   :  { %2833 = vst.msk [vmem:[%s4399_s13 + $0x18] sm:$0xff] %vm2829_vm1, %v2828_v28 }
0x2320   :  { %2838 = vsyncpa [#allocation3], 1 }
0x2321   :  { %2839 = vsyncpa [#allocation5], 1 }

</bundles_post_ra>
